<compile_context>
chip_gen: v6e
topology: v6e:2x2x1
jax: 0.10.0
libtpu: 0.0.40
codegen_flags: <defaults>
</compile_context>

<pallas_src>
import functools

import numpy as np
import jax
import jax.numpy as jnp
from jax import lax
from jax.experimental import pallas as pl
from jax.experimental.pallas import tpu as pltpu


# ----------------------------------------------------------------------------
# Small helpers
# ----------------------------------------------------------------------------
def _one_hot_shift(n_rows, n_cols, offset):
    """(n_rows, n_cols) f32 selection matrix with M[r, c] = 1 iff r == c+offset.

    (C, n_rows) @ M extracts columns [offset, offset + n_cols) exactly -- an
    MXU-friendly way to take an arbitrary lane window of a value without any
    unaligned lane slicing (products are 0/1, so the result is exact)."""
    rows = lax.broadcasted_iota(jnp.int32, (n_rows, n_cols), 0)
    cols = lax.broadcasted_iota(jnp.int32, (n_rows, n_cols), 1)
    return (rows == cols + offset).astype(jnp.float32)


# ----------------------------------------------------------------------------
# Fused whole-network kernel
# ----------------------------------------------------------------------------
def _fused_tcn_kernel(*refs, block_cfgs, tile_t, out_ch, carry_halo):
    """Whole-TCN forward for one (batch, time-tile) grid cell.

    Ref layout (in order):
      x_ref                                (1, C_in0, tile_t)  NCT input tile
      per block i: w_ref    (K, C_out, C_in)   conv taps
                   wres_ref (C_out, C_in)      1x1 residual conv
                   g_ref    (1, C_out, 1)      FiLM gamma (this batch element)
                   b_ref    (1, C_out, 1)      FiLM beta  (conv bias folded in)
      prelu_ref  SMEM (n_blocks,)              PReLU slopes
      wout_ref   (C_last, out_ch)              final 1x1 out_net conv
      out_ref    (1, out_ch, tile_t)           NCT output tile
      per block i: halo_ref VMEM (C_in, pad)   carried causal context

    All activations stay in f32 inside the kernel (no HBM round trips between
    blocks); time lives on the lane axis so all VPU work / stores are
    lane-dense.
    """
    n_blocks = len(block_cfgs)
    x_ref = refs[0]
    blk_refs = [refs[1 + 4 * i: 1 + 4 * (i + 1)] for i in range(n_blocks)]
    prelu_ref = refs[1 + 4 * n_blocks]
    wout_ref = refs[2 + 4 * n_blocks]
    out_ref = refs[3 + 4 * n_blocks]
    halo_refs = refs[4 + 4 * n_blocks: 4 + 5 * n_blocks]

    t = pl.program_id(1)

    # Causal left context is zero at the start of every sequence.
    # NOTE: the halo-carry scheme relies on the t grid axis running strictly
    # sequentially on a single core (it stays "arbitrary"); only the batch
    # axis may be sharded (halos are re-zeroed at t == 0 for every b).
    @pl.when(t == 0)
    def _zero_halos():
        for hr in halo_refs:
            hr[...] = jnp.zeros_like(hr)

    h = x_ref[0].astype(jnp.float32)                     # (C_in0, tile_t)

    for i, (K, dil, c_in, c_out) in enumerate(block_cfgs):
        w_ref, wres_ref, g_ref, b_ref = blk_refs[i]
        halo_ref = halo_refs[i]
        pad = (K - 1) * dil

        halo = halo_ref[...] if pad > 0 else None        # (c_in, pad)

        if carry_halo and pad > 0:
            # Save the last `pad` input samples of this block for the next
            # time tile (exact one-hot matmul, no unaligned lane slice).
            sel = _one_hot_shift(tile_t, pad, tile_t - pad)
            halo_ref[...] = jnp.dot(h, sel, preferred_element_type=jnp.float32)

        # Dilated causal conv + 1x1 residual, accumulated in f32.
        acc = jnp.zeros((c_out, tile_t), jnp.float32)
        for k in range(K):
            s = pad - k * dil          # how far tap k reaches into the history
            if s == 0:
                tap = h
            else:
                piece = jnp.dot(halo,
                                _one_hot_shift(pad, min(s, tile_t), k * dil),
                                preferred_element_type=jnp.float32)
                if s >= tile_t:        # degenerate: tile fully inside the halo
                    tap = piece
                else:
                    tap = jnp.concatenate([piece, h[:, :tile_t - s]], axis=1)
            wk = w_ref[k]              # (c_out, c_in)
            if c_in == 1:
                acc = acc + wk * tap   # VPU broadcast mul-add, lane-dense
            else:
                acc = acc + jnp.dot(wk, tap, preferred_element_type=jnp.float32)
        if c_in == 1:
            res = wres_ref[...] * h
        else:
            res = jnp.dot(wres_ref[...], h, preferred_element_type=jnp.float32)

        # FiLM (conv bias pre-folded into beta on the host) + PReLU + residual.
        acc = acc * g_ref[0] + b_ref[0]
        alpha = prelu_ref[i]                              # SMEM scalar
        acc = jnp.where(acc > 0, acc, alpha * acc)
        h = acc + res                                     # (c_out, tile_t)

    # Final 1x1 out_net conv, emitted lane-dense along T (NCT output).
    wo = wout_ref[...]                                    # (C_last, out_ch)
    if out_ch == 1:
        # An M=1 matmul wastes the MXU; VPU broadcast + sublane reduce instead.
        y = jnp.sum(wo * h, axis=0, keepdims=True)        # (1, tile_t)
    else:
        y = lax.dot_general(wo, h, (((0,), (0,)), ((), ())),
                            preferred_element_type=jnp.float32)
    out_ref[0] = y.astype(out_ref.dtype)


# ----------------------------------------------------------------------------
# Wrapper calling pallas_call
# ----------------------------------------------------------------------------
def _pick_tile_t(T, max_pad, max_tile_t):
    """Largest time tile (multiple of 128, divides T, >= causal context) up to
    max_tile_t; falls back to the whole sequence."""
    for cand in (1024, 768, 512, 384, 256, 128):
        if cand <= max_tile_t and cand <= T and T % cand == 0 and cand >= max_pad:
            return cand
    # TODO(synk): for max_pad larger than any candidate (huge dilations) carry
    # a multi-tile halo history instead of a single whole-T tile.
    return T


def tcn_forward(x_nct, cond, params, *, dilations, kernel_size, max_tile_t=1024):
    """Full TCN forward as ONE fused Pallas kernel.

    x_nct: (B, in_ch, T) float32 (PyTorch NCT), cond: (B, cond_dim).
    Returns (B, out_ch, T) float32, matching the PyTorch module.
    """
    B, in_ch, T = x_nct.shape
    pads = [(kernel_size - 1) * d for d in dilations]
    max_pad = max(pads)
    tile_t = _pick_tile_t(T, max_pad, max_tile_t)
    assert T % tile_t == 0
    n_t = T // tile_t
    carry_halo = n_t > 1
    if carry_halo:
        assert tile_t >= max_pad, "time tile must cover the causal context"

    x = x_nct.astype(jnp.float32)

    operands = [x]
    in_specs = [pl.BlockSpec((1, in_ch, tile_t), lambda b, t: (b, 0, t))]
    scratch = []
    block_cfgs = []
    prelu_vals = []

    c_in = in_ch
    for i, dil in enumerate(dilations):
        p = params["blocks"][i]
        K, cin_w, c_out = p["w_conv"].shape
        assert K == kernel_size and cin_w == c_in
        # torch Conv1d weight (C_out, C_in, K) is stored here as (K, C_in, C_out);
        # the kernel wants per-tap (C_out, C_in) matrices -> (K, C_out, C_in).
        w_taps = jnp.transpose(p["w_conv"], (0, 2, 1)).astype(jnp.float32)
        w_res = jnp.transpose(p["w_res"]).astype(jnp.float32)      # (C_out, C_in)

        # FiLM adaptor Linear (cond_dim -> 2*C_out): tiny, plain-JAX glue.
        # Fold the conv bias into beta:  (conv+b)*g + be == conv*g + (b*g + be).
        gb = cond @ p["adaptor_w"].T + p["adaptor_b"]               # (B, 2*C_out)
        gamma, beta = jnp.split(gb, 2, axis=-1)
        beta = beta + gamma * p["b_conv"].reshape(1, c_out)
        gamma = gamma[..., None].astype(jnp.float32)                # (B, C_out, 1)
        beta = beta[..., None].astype(jnp.float32)

        operands += [w_taps, w_res, gamma, beta]
        in_specs += [
            pl.BlockSpec((kernel_size, c_out, c_in), lambda b, t: (0, 0, 0)),
            pl.BlockSpec((c_out, c_in), lambda b, t: (0, 0)),
            pl.BlockSpec((1, c_out, 1), lambda b, t: (b, 0, 0)),
            pl.BlockSpec((1, c_out, 1), lambda b, t: (b, 0, 0)),
        ]
        scratch.append(pltpu.VMEM((c_in, max(pads[i], 1)), jnp.float32))
        block_cfgs.append((kernel_size, dil, c_in, c_out))
        prelu_vals.append(jnp.asarray(p["prelu"], jnp.float32).reshape(()))
        c_in = c_out

    prelu_all = jnp.stack(prelu_vals)                               # (n_blocks,)
    w_out = params["out_w"].astype(jnp.float32)                     # (C_last, out_ch)
    out_ch = w_out.shape[1]
    operands += [prelu_all, w_out]
    in_specs += [
        pl.BlockSpec(memory_space=pltpu.MemorySpace.SMEM),          # prelu slopes
        pl.BlockSpec((w_out.shape[0], out_ch), lambda b, t: (0, 0)),
    ]

    kernel = functools.partial(
        _fused_tcn_kernel, block_cfgs=tuple(block_cfgs), tile_t=tile_t,
        out_ch=out_ch, carry_halo=carry_halo)

    return pl.pallas_call(
        kernel,
        out_shape=jax.ShapeDtypeStruct((B, out_ch, T), jnp.float32),
        grid=(B, n_t),
        in_specs=in_specs,
        out_specs=pl.BlockSpec((1, out_ch, tile_t), lambda b, t: (b, 0, t)),
        scratch_shapes=scratch,
        compiler_params=pltpu.CompilerParams(
            # t carries the per-block causal halo in VMEM scratch -> it MUST
            # run sequentially on one core; only the batch axis is parallel.
            # TODO(synk): pltpu.CORE_PARALLEL on the batch axis for v7x.
            dimension_semantics=("parallel", "arbitrary")),
    )(*operands)


# ----------------------------------------------------------------------------
# Pure-JAX reference (same math, no Pallas) for a sanity check
# ----------------------------------------------------------------------------
def tcn_reference(x_nct, cond, params, *, dilations, kernel_size):
    hp = lax.Precision.HIGHEST
    x = jnp.transpose(x_nct, (0, 2, 1))
    B, T, _ = x.shape
    for i, dil in enumerate(dilations):
        p = params["blocks"][i]
        pad = (kernel_size - 1) * dil
        xp = jnp.pad(x, ((0, 0), (pad, 0), (0, 0)))
        y = sum(jnp.einsum("btc,cd->btd", xp[:, k * dil:k * dil + T, :],
                           p["w_conv"][k], precision=hp)
                for k in range(kernel_size))
        y = y + p["b_conv"][0][None, None, :]
        gb = cond @ p["adaptor_w"].T + p["adaptor_b"]
        g, b = jnp.split(gb, 2, axis=-1)
        y = y * g[:, None, :] + b[:, None, :]
        a = p["prelu"][0, 0]
        y = jnp.where(y > 0, y, a * y)
        res = jnp.einsum("btc,cd->btd", x, p["w_res"], precision=hp)
        x = y + res
    y = jnp.einsum("btc,cd->btd", x, params["out_w"], precision=hp)
    return jnp.transpose(y, (0, 2, 1))


# ----------------------------------------------------------------------------
# Deterministic parameter init (synthetic; shapes follow the nn.Module)
# ----------------------------------------------------------------------------
def init_params(key, *, channels, in_ch, out_ch, kernel_size, cond_dim):
    params = {"blocks": []}
    block_in = in_ch
    for c_out in channels:
        key, k1, k2, k3, k4, k5 = jax.random.split(key, 6)
        blk = {
            # torch Conv1d weight is (C_out, C_in, K); stored here as (K, C_in, C_out)
            "w_conv": 0.1 * jax.random.normal(k1, (kernel_size, block_in, c_out),
                                              jnp.float32),
            "b_conv": 0.1 * jax.random.normal(k2, (1, c_out), jnp.float32),
            # nn.Linear(cond_dim, 2*C_out)
            "adaptor_w": 0.1 * jax.random.normal(k3, (2 * c_out, cond_dim),
                                                 jnp.float32),
            "adaptor_b": 0.1 * jax.random.normal(k4, (2 * c_out,), jnp.float32),
            # nn.PReLU() default: single parameter, init 0.25
            "prelu": jnp.full((1, 1), 0.25, jnp.float32),
            # 1x1 residual conv, no bias: (C_out, C_in, 1) -> stored (C_in, C_out)
            "w_res": 0.1 * jax.random.normal(k5, (block_in, c_out), jnp.float32),
        }
        params["blocks"].append(blk)
        block_in = c_out
    key, ko = jax.random.split(key)
    # out_net: Conv1d(channels[-1], out_ch, 1, bias=False) -> (C_last, out_ch)
    params["out_w"] = 0.1 * jax.random.normal(ko, (channels[-1], out_ch),
                                              jnp.float32)
    return params


# ----------------------------------------------------------------------------
if __name__ == "__main__":
    # Small config consistent with TCN(channels, dilations, in_ch, out_ch, ...)
    B, T = 2, 512
    in_ch, out_ch = 1, 1
    cond_dim = 3
    channels = [32, 32, 64]
    dilations = [1, 2, 4]
    kernel_size = 5

    key = jax.random.PRNGKey(0)
    key, kx, kc, kp = jax.random.split(key, 4)
    x = jax.random.normal(kx, (B, in_ch, T), jnp.float32)     # PyTorch NCT input
    cond = jax.random.normal(kc, (B, cond_dim), jnp.float32)
    params = init_params(kp, channels=channels, in_ch=in_ch, out_ch=out_ch,
                         kernel_size=kernel_size, cond_dim=cond_dim)

    ref = jax.block_until_ready(
        tcn_reference(x, cond, params, dilations=dilations,
                      kernel_size=kernel_size))

    # Whole sequence in one time tile (tile_t == T).
    out = jax.block_until_ready(
        tcn_forward(x, cond, params, dilations=dilations,
                    kernel_size=kernel_size))
    assert out.shape == (B, out_ch, T), out.shape
    np.testing.assert_allclose(np.asarray(out), np.asarray(ref),
                               rtol=1e-4, atol=1e-4)

    # Tiled time axis (tile_t = 128 -> 4 sequential tiles): exercises the
    # causal halo carried across time tiles in VMEM scratch.
    out_tiled = jax.block_until_ready(
        tcn_forward(x, cond, params, dilations=dilations,
                    kernel_size=kernel_size, max_tile_t=128))
    np.testing.assert_allclose(np.asarray(out_tiled), np.asarray(ref),
                               rtol=1e-4, atol=1e-4)

    print("KERNEL_OK")
</pallas_src>

<mosaic_0001>
module attributes {stable_mosaic.version = 11 : i64} {
  func.func @_fused_tcn_kernel(%arg0: i32, %arg1: i32, %arg2: memref<1x1x512xf32, #tpu.memory_space<vmem>>, %arg3: memref<5x32x1xf32, #tpu.memory_space<vmem>>, %arg4: memref<32x1xf32, #tpu.memory_space<vmem>>, %arg5: memref<1x32x1xf32, #tpu.memory_space<vmem>>, %arg6: memref<1x32x1xf32, #tpu.memory_space<vmem>>, %arg7: memref<5x32x32xf32, #tpu.memory_space<vmem>>, %arg8: memref<32x32xf32, #tpu.memory_space<vmem>>, %arg9: memref<1x32x1xf32, #tpu.memory_space<vmem>>, %arg10: memref<1x32x1xf32, #tpu.memory_space<vmem>>, %arg11: memref<5x64x32xf32, #tpu.memory_space<vmem>>, %arg12: memref<64x32xf32, #tpu.memory_space<vmem>>, %arg13: memref<1x64x1xf32, #tpu.memory_space<vmem>>, %arg14: memref<1x64x1xf32, #tpu.memory_space<vmem>>, %arg15: memref<3xf32, #tpu.memory_space<smem>>, %arg16: memref<64x1xf32, #tpu.memory_space<vmem>>, %arg17: memref<1x1x512xf32, #tpu.memory_space<vmem>>, %arg18: memref<1x4xf32, #tpu.memory_space<vmem>>, %arg19: memref<32x8xf32, #tpu.memory_space<vmem>>, %arg20: memref<32x16xf32, #tpu.memory_space<vmem>>) attributes {dimension_semantics = [#tpu.dimension_semantics<parallel>, #tpu.dimension_semantics<arbitrary>], iteration_bounds = array<i64: 2, 1>, scalar_prefetch = 0 : i64, scratch_operands = 3 : i64, tpu.core_type = #tpu.core_type<tc>, window_params = [{transform_indices = @transform_0, window_bounds = array<i64: 1, 1, 512>}, {pipeline_mode = #tpu.pipeline_mode<synchronous>, transform_indices = @transform_1, window_bounds = array<i64: 5, 32, 1>}, {pipeline_mode = #tpu.pipeline_mode<synchronous>, transform_indices = @transform_2, window_bounds = array<i64: 32, 1>}, {transform_indices = @transform_3, window_bounds = array<i64: 1, 32, 1>}, {transform_indices = @transform_4, window_bounds = array<i64: 1, 32, 1>}, {pipeline_mode = #tpu.pipeline_mode<synchronous>, transform_indices = @transform_5, window_bounds = array<i64: 5, 32, 32>}, {pipeline_mode = #tpu.pipeline_mode<synchronous>, transform_indices = @transform_6, window_bounds = array<i64: 32, 32>}, {transform_indices = @transform_7, window_bounds = array<i64: 1, 32, 1>}, {transform_indices = @transform_8, window_bounds = array<i64: 1, 32, 1>}, {pipeline_mode = #tpu.pipeline_mode<synchronous>, transform_indices = @transform_9, window_bounds = array<i64: 5, 64, 32>}, {pipeline_mode = #tpu.pipeline_mode<synchronous>, transform_indices = @transform_10, window_bounds = array<i64: 64, 32>}, {transform_indices = @transform_11, window_bounds = array<i64: 1, 64, 1>}, {transform_indices = @transform_12, window_bounds = array<i64: 1, 64, 1>}, {transform_indices = @transform_13, window_bounds = array<i64: 3>}, {pipeline_mode = #tpu.pipeline_mode<synchronous>, transform_indices = @transform_14, window_bounds = array<i64: 64, 1>}, {transform_indices = @transform_15, window_bounds = array<i64: 1, 1, 512>}]} {
    %c0_i32 = arith.constant 0 : i32
    %0 = arith.cmpi eq, %arg1, %c0_i32 : i32
    %1 = arith.extui %0 : i1 to i32
    %c0_i32_0 = arith.constant 0 : i32
    %2 = arith.cmpi ne, %1, %c0_i32_0 : i32
    scf.if %2 {
      %cst_117 = arith.constant 0.000000e+00 : f32
      %262 = vector.broadcast %cst_117 : f32 to vector<1x4xf32>
      %c0_118 = arith.constant 0 : index
      %c0_119 = arith.constant 0 : index
      %263 = vector.load %arg18[%c0_118, %c0_119] : memref<1x4xf32, #tpu.memory_space<vmem>>, vector<1x4xf32>
      tpu.vector_store %arg18[%c0_118, %c0_119], %262 {strides = array<i32>} : memref<1x4xf32, #tpu.memory_space<vmem>>, vector<1x4xf32>,
      %cst_120 = arith.constant 0.000000e+00 : f32
      %264 = vector.broadcast %cst_120 : f32 to vector<32x8xf32>
      %c0_121 = arith.constant 0 : index
      %c0_122 = arith.constant 0 : index
      %265 = vector.load %arg19[%c0_121, %c0_122] : memref<32x8xf32, #tpu.memory_space<vmem>>, vector<32x8xf32>
      tpu.vector_store %arg19[%c0_121, %c0_122], %264 {strides = array<i32>} : memref<32x8xf32, #tpu.memory_space<vmem>>, vector<32x8xf32>,
      %cst_123 = arith.constant 0.000000e+00 : f32
      %266 = vector.broadcast %cst_123 : f32 to vector<32x16xf32>
      %c0_124 = arith.constant 0 : index
      %c0_125 = arith.constant 0 : index
      %267 = vector.load %arg20[%c0_124, %c0_125] : memref<32x16xf32, #tpu.memory_space<vmem>>, vector<32x16xf32>
      tpu.vector_store %arg20[%c0_124, %c0_125], %266 {strides = array<i32>} : memref<32x16xf32, #tpu.memory_space<vmem>>, vector<32x16xf32>,
    } else {
    }
    %c0 = arith.constant 0 : index
    %c0_1 = arith.constant 0 : index
    %c0_2 = arith.constant 0 : index
    %3 = vector.load %arg2[%c0, %c0_1, %c0_2] : memref<1x1x512xf32, #tpu.memory_space<vmem>>, vector<1x1x512xf32>
    %4 = vector.shape_cast %3 : vector<1x1x512xf32> to vector<1x512xf32>
    %c0_3 = arith.constant 0 : index
    %c0_4 = arith.constant 0 : index
    %5 = vector.load %arg18[%c0_3, %c0_4] : memref<1x4xf32, #tpu.memory_space<vmem>>, vector<1x4xf32>
    %cst = arith.constant 0.000000e+00 : f32
    %6 = vector.broadcast %cst : f32 to vector<32x512xf32>
    %7 = tpu.iota {dimensions = array<i32: 0>} : vector<4x4xi32>
    %8 = tpu.iota {dimensions = array<i32: 1>} : vector<4x4xi32>
    %c0_i32_5 = arith.constant 0 : i32
    %9 = vector.broadcast %c0_i32_5 : i32 to vector<4x4xi32>
    %10 = arith.addi %8, %9 : vector<4x4xi32>
    %11 = arith.cmpi eq, %7, %10 : vector<4x4xi32>
    %12 = arith.extui %11 : vector<4x4xi1> to vector<4x4xi32>
    %13 = arith.sitofp %12 : vector<4x4xi32> to vector<4x4xf32>
    %cst_6 = arith.constant dense<0.000000e+00> : vector<1x4xf32>
    %14 = tpu.matmul %5, %13, %cst_6 {dimension_numbers = #tpu.dot_dimension_numbers<[1], [0], [0], [1], [0, 0, 1, 1], [], []>} : vector<1x4xf32>, vector<4x4xf32>, vector<1x4xf32> -> vector<1x4xf32>
    %15 = vector.extract_strided_slice %4 {offsets = [0, 0], sizes = [1, 508], strides = [1, 1]} : vector<1x512xf32> to vector<1x508xf32>
    %16 = tpu.concatenate %14, %15 in 1 : vector<1x4xf32>, vector<1x508xf32> -> vector<1x512xf32>
    %c0_7 = arith.constant 0 : index
    %c0_8 = arith.constant 0 : index
    %c0_9 = arith.constant 0 : index
    %17 = vector.load %arg3[%c0_7, %c0_8, %c0_9] : memref<5x32x1xf32, #tpu.memory_space<vmem>>, vector<1x32x1xf32>
    %18 = vector.shape_cast %17 : vector<1x32x1xf32> to vector<32x1xf32>
    %19 = vector.broadcast %18 : vector<32x1xf32> to vector<32x512xf32>
    %20 = vector.broadcast %16 : vector<1x512xf32> to vector<32x512xf32>
    %21 = arith.mulf %19, %20 : vector<32x512xf32>
    %22 = arith.addf %6, %21 : vector<32x512xf32>
    %23 = tpu.iota {dimensions = array<i32: 0>} : vector<4x3xi32>
    %24 = tpu.iota {dimensions = array<i32: 1>} : vector<4x3xi32>
    %c1_i32 = arith.constant 1 : i32
    %25 = vector.broadcast %c1_i32 : i32 to vector<4x3xi32>
    %26 = arith.addi %24, %25 : vector<4x3xi32>
    %27 = arith.cmpi eq, %23, %26 : vector<4x3xi32>
    %28 = arith.extui %27 : vector<4x3xi1> to vector<4x3xi32>
    %29 = arith.sitofp %28 : vector<4x3xi32> to vector<4x3xf32>
    %cst_10 = arith.constant dense<0.000000e+00> : vector<1x3xf32>
    %30 = tpu.matmul %5, %29, %cst_10 {dimension_numbers = #tpu.dot_dimension_numbers<[1], [0], [0], [1], [0, 0, 1, 1], [], []>} : vector<1x4xf32>, vector<4x3xf32>, vector<1x3xf32> -> vector<1x3xf32>
    %31 = vector.extract_strided_slice %4 {offsets = [0, 0], sizes = [1, 509], strides = [1, 1]} : vector<1x512xf32> to vector<1x509xf32>
    %32 = tpu.concatenate %30, %31 in 1 : vector<1x3xf32>, vector<1x509xf32> -> vector<1x512xf32>
    %c1 = arith.constant 1 : index
    %c0_11 = arith.constant 0 : index
    %c0_12 = arith.constant 0 : index
    %33 = vector.load %arg3[%c1, %c0_11, %c0_12] : memref<5x32x1xf32, #tpu.memory_space<vmem>>, vector<1x32x1xf32>
    %34 = vector.shape_cast %33 : vector<1x32x1xf32> to vector<32x1xf32>
    %35 = vector.broadcast %34 : vector<32x1xf32> to vector<32x512xf32>
    %36 = vector.broadcast %32 : vector<1x512xf32> to vector<32x512xf32>
    %37 = arith.mulf %35, %36 : vector<32x512xf32>
    %38 = arith.addf %22, %37 : vector<32x512xf32>
    %39 = tpu.iota {dimensions = array<i32: 0>} : vector<4x2xi32>
    %40 = tpu.iota {dimensions = array<i32: 1>} : vector<4x2xi32>
    %c2_i32 = arith.constant 2 : i32
    %41 = vector.broadcast %c2_i32 : i32 to vector<4x2xi32>
    %42 = arith.addi %40, %41 : vector<4x2xi32>
    %43 = arith.cmpi eq, %39, %42 : vector<4x2xi32>
    %44 = arith.extui %43 : vector<4x2xi1> to vector<4x2xi32>
    %45 = arith.sitofp %44 : vector<4x2xi32> to vector<4x2xf32>
    %cst_13 = arith.constant dense<0.000000e+00> : vector<1x2xf32>
    %46 = tpu.matmul %5, %45, %cst_13 {dimension_numbers = #tpu.dot_dimension_numbers<[1], [0], [0], [1], [0, 0, 1, 1], [], []>} : vector<1x4xf32>, vector<4x2xf32>, vector<1x2xf32> -> vector<1x2xf32>
    %47 = vector.extract_strided_slice %4 {offsets = [0, 0], sizes = [1, 510], strides = [1, 1]} : vector<1x512xf32> to vector<1x510xf32>
    %48 = tpu.concatenate %46, %47 in 1 : vector<1x2xf32>, vector<1x510xf32> -> vector<1x512xf32>
    %c2 = arith.constant 2 : index
    %c0_14 = arith.constant 0 : index
    %c0_15 = arith.constant 0 : index
    %49 = vector.load %arg3[%c2, %c0_14, %c0_15] : memref<5x32x1xf32, #tpu.memory_space<vmem>>, vector<1x32x1xf32>
    %50 = vector.shape_cast %49 : vector<1x32x1xf32> to vector<32x1xf32>
    %51 = vector.broadcast %50 : vector<32x1xf32> to vector<32x512xf32>
    %52 = vector.broadcast %48 : vector<1x512xf32> to vector<32x512xf32>
    %53 = arith.mulf %51, %52 : vector<32x512xf32>
    %54 = arith.addf %38, %53 : vector<32x512xf32>
    %55 = tpu.iota {dimensions = array<i32: 0>} : vector<4x1xi32>
    %56 = tpu.iota {dimensions = array<i32: 1>} : vector<4x1xi32>
    %c3_i32 = arith.constant 3 : i32
    %57 = vector.broadcast %c3_i32 : i32 to vector<4x1xi32>
    %58 = arith.addi %56, %57 : vector<4x1xi32>
    %59 = arith.cmpi eq, %55, %58 : vector<4x1xi32>
    %60 = arith.extui %59 : vector<4x1xi1> to vector<4x1xi32>
    %61 = arith.sitofp %60 : vector<4x1xi32> to vector<4x1xf32>
    %cst_16 = arith.constant dense<0.000000e+00> : vector<1x1xf32>
    %62 = tpu.matmul %5, %61, %cst_16 {dimension_numbers = #tpu.dot_dimension_numbers<[1], [0], [0], [1], [0, 0, 1, 1], [], []>} : vector<1x4xf32>, vector<4x1xf32>, vector<1x1xf32> -> vector<1x1xf32>
    %63 = vector.extract_strided_slice %4 {offsets = [0, 0], sizes = [1, 511], strides = [1, 1]} : vector<1x512xf32> to vector<1x511xf32>
    %64 = tpu.concatenate %62, %63 in 1 : vector<1x1xf32>, vector<1x511xf32> -> vector<1x512xf32>
    %c3 = arith.constant 3 : index
    %c0_17 = arith.constant 0 : index
    %c0_18 = arith.constant 0 : index
    %65 = vector.load %arg3[%c3, %c0_17, %c0_18] : memref<5x32x1xf32, #tpu.memory_space<vmem>>, vector<1x32x1xf32>
    %66 = vector.shape_cast %65 : vector<1x32x1xf32> to vector<32x1xf32>
    %67 = vector.broadcast %66 : vector<32x1xf32> to vector<32x512xf32>
    %68 = vector.broadcast %64 : vector<1x512xf32> to vector<32x512xf32>
    %69 = arith.mulf %67, %68 : vector<32x512xf32>
    %70 = arith.addf %54, %69 : vector<32x512xf32>
    %c4 = arith.constant 4 : index
    %c0_19 = arith.constant 0 : index
    %c0_20 = arith.constant 0 : index
    %71 = vector.load %arg3[%c4, %c0_19, %c0_20] : memref<5x32x1xf32, #tpu.memory_space<vmem>>, vector<1x32x1xf32>
    %72 = vector.shape_cast %71 : vector<1x32x1xf32> to vector<32x1xf32>
    %73 = vector.broadcast %72 : vector<32x1xf32> to vector<32x512xf32>
    %74 = vector.broadcast %4 : vector<1x512xf32> to vector<32x512xf32>
    %75 = arith.mulf %73, %74 : vector<32x512xf32>
    %76 = arith.addf %70, %75 : vector<32x512xf32>
    %c0_21 = arith.constant 0 : index
    %c0_22 = arith.constant 0 : index
    %77 = vector.load %arg4[%c0_21, %c0_22] : memref<32x1xf32, #tpu.memory_space<vmem>>, vector<32x1xf32>
    %78 = vector.broadcast %77 : vector<32x1xf32> to vector<32x512xf32>
    %79 = vector.broadcast %4 : vector<1x512xf32> to vector<32x512xf32>
    %80 = arith.mulf %78, %79 : vector<32x512xf32>
    %c0_23 = arith.constant 0 : index
    %c0_24 = arith.constant 0 : index
    %c0_25 = arith.constant 0 : index
    %81 = vector.load %arg5[%c0_23, %c0_24, %c0_25] : memref<1x32x1xf32, #tpu.memory_space<vmem>>, vector<1x32x1xf32>
    %82 = vector.shape_cast %81 : vector<1x32x1xf32> to vector<32x1xf32>
    %83 = vector.broadcast %82 : vector<32x1xf32> to vector<32x512xf32>
    %84 = arith.mulf %76, %83 : vector<32x512xf32>
    %c0_26 = arith.constant 0 : index
    %c0_27 = arith.constant 0 : index
    %c0_28 = arith.constant 0 : index
    %85 = vector.load %arg6[%c0_26, %c0_27, %c0_28] : memref<1x32x1xf32, #tpu.memory_space<vmem>>, vector<1x32x1xf32>
    %86 = vector.shape_cast %85 : vector<1x32x1xf32> to vector<32x1xf32>
    %87 = vector.broadcast %86 : vector<32x1xf32> to vector<32x512xf32>
    %88 = arith.addf %84, %87 : vector<32x512xf32>
    %c0_29 = arith.constant 0 : index
    %89 = memref.load %arg15[%c0_29] : memref<3xf32, #tpu.memory_space<smem>>
    %cst_30 = arith.constant 0.000000e+00 : f32
    %90 = vector.broadcast %cst_30 : f32 to vector<32x512xf32>
    %91 = arith.cmpf ogt, %88, %90 : vector<32x512xf32>
    %92 = vector.broadcast %89 : f32 to vector<32x512xf32>
    %93 = arith.mulf %92, %88 : vector<32x512xf32>
    %94 = arith.select %91, %88, %93 : vector<32x512xi1>, vector<32x512xf32>
    %95 = arith.addf %94, %80 : vector<32x512xf32>
    %c0_31 = arith.constant 0 : index
    %c0_32 = arith.constant 0 : index
    %96 = vector.load %arg19[%c0_31, %c0_32] : memref<32x8xf32, #tpu.memory_space<vmem>>, vector<32x8xf32>
    %cst_33 = arith.constant 0.000000e+00 : f32
    %97 = vector.broadcast %cst_33 : f32 to vector<32x512xf32>
    %98 = tpu.iota {dimensions = array<i32: 0>} : vector<8x8xi32>
    %99 = tpu.iota {dimensions = array<i32: 1>} : vector<8x8xi32>
    %c0_i32_34 = arith.constant 0 : i32
    %100 = vector.broadcast %c0_i32_34 : i32 to vector<8x8xi32>
    %101 = arith.addi %99, %100 : vector<8x8xi32>
    %102 = arith.cmpi eq, %98, %101 : vector<8x8xi32>
    %103 = arith.extui %102 : vector<8x8xi1> to vector<8x8xi32>
    %104 = arith.sitofp %103 : vector<8x8xi32> to vector<8x8xf32>
    %cst_35 = arith.constant dense<0.000000e+00> : vector<32x8xf32>
    %105 = tpu.matmul %96, %104, %cst_35 {dimension_numbers = #tpu.dot_dimension_numbers<[1], [0], [0], [1], [0, 0, 1, 1], [], []>} : vector<32x8xf32>, vector<8x8xf32>, vector<32x8xf32> -> vector<32x8xf32>
    %106 = vector.extract_strided_slice %95 {offsets = [0, 0], sizes = [32, 504], strides = [1, 1]} : vector<32x512xf32> to vector<32x504xf32>
    %107 = tpu.concatenate %105, %106 in 1 : vector<32x8xf32>, vector<32x504xf32> -> vector<32x512xf32>
    %c0_36 = arith.constant 0 : index
    %c0_37 = arith.constant 0 : index
    %c0_38 = arith.constant 0 : index
    %108 = vector.load %arg7[%c0_36, %c0_37, %c0_38] : memref<5x32x32xf32, #tpu.memory_space<vmem>>, vector<1x32x32xf32>
    %109 = vector.shape_cast %108 : vector<1x32x32xf32> to vector<32x32xf32>
    %cst_39 = arith.constant dense<0.000000e+00> : vector<32x512xf32>
    %110 = tpu.matmul %109, %107, %cst_39 {dimension_numbers = #tpu.dot_dimension_numbers<[1], [0], [0], [1], [0, 0, 1, 1], [], []>} : vector<32x32xf32>, vector<32x512xf32>, vector<32x512xf32> -> vector<32x512xf32>
    %111 = arith.addf %97, %110 : vector<32x512xf32>
    %112 = tpu.iota {dimensions = array<i32: 0>} : vector<8x6xi32>
    %113 = tpu.iota {dimensions = array<i32: 1>} : vector<8x6xi32>
    %c2_i32_40 = arith.constant 2 : i32
    %114 = vector.broadcast %c2_i32_40 : i32 to vector<8x6xi32>
    %115 = arith.addi %113, %114 : vector<8x6xi32>
    %116 = arith.cmpi eq, %112, %115 : vector<8x6xi32>
    %117 = arith.extui %116 : vector<8x6xi1> to vector<8x6xi32>
    %118 = arith.sitofp %117 : vector<8x6xi32> to vector<8x6xf32>
    %cst_41 = arith.constant dense<0.000000e+00> : vector<32x6xf32>
    %119 = tpu.matmul %96, %118, %cst_41 {dimension_numbers = #tpu.dot_dimension_numbers<[1], [0], [0], [1], [0, 0, 1, 1], [], []>} : vector<32x8xf32>, vector<8x6xf32>, vector<32x6xf32> -> vector<32x6xf32>
    %120 = vector.extract_strided_slice %95 {offsets = [0, 0], sizes = [32, 506], strides = [1, 1]} : vector<32x512xf32> to vector<32x506xf32>
    %121 = tpu.concatenate %119, %120 in 1 : vector<32x6xf32>, vector<32x506xf32> -> vector<32x512xf32>
    %c1_42 = arith.constant 1 : index
    %c0_43 = arith.constant 0 : index
    %c0_44 = arith.constant 0 : index
    %122 = vector.load %arg7[%c1_42, %c0_43, %c0_44] : memref<5x32x32xf32, #tpu.memory_space<vmem>>, vector<1x32x32xf32>
    %123 = vector.shape_cast %122 : vector<1x32x32xf32> to vector<32x32xf32>
    %cst_45 = arith.constant dense<0.000000e+00> : vector<32x512xf32>
    %124 = tpu.matmul %123, %121, %cst_45 {dimension_numbers = #tpu.dot_dimension_numbers<[1], [0], [0], [1], [0, 0, 1, 1], [], []>} : vector<32x32xf32>, vector<32x512xf32>, vector<32x512xf32> -> vector<32x512xf32>
    %125 = arith.addf %111, %124 : vector<32x512xf32>
    %126 = tpu.iota {dimensions = array<i32: 0>} : vector<8x4xi32>
    %127 = tpu.iota {dimensions = array<i32: 1>} : vector<8x4xi32>
    %c4_i32 = arith.constant 4 : i32
    %128 = vector.broadcast %c4_i32 : i32 to vector<8x4xi32>
    %129 = arith.addi %127, %128 : vector<8x4xi32>
    %130 = arith.cmpi eq, %126, %129 : vector<8x4xi32>
    %131 = arith.extui %130 : vector<8x4xi1> to vector<8x4xi32>
    %132 = arith.sitofp %131 : vector<8x4xi32> to vector<8x4xf32>
    %cst_46 = arith.constant dense<0.000000e+00> : vector<32x4xf32>
    %133 = tpu.matmul %96, %132, %cst_46 {dimension_numbers = #tpu.dot_dimension_numbers<[1], [0], [0], [1], [0, 0, 1, 1], [], []>} : vector<32x8xf32>, vector<8x4xf32>, vector<32x4xf32> -> vector<32x4xf32>
    %134 = vector.extract_strided_slice %95 {offsets = [0, 0], sizes = [32, 508], strides = [1, 1]} : vector<32x512xf32> to vector<32x508xf32>
    %135 = tpu.concatenate %133, %134 in 1 : vector<32x4xf32>, vector<32x508xf32> -> vector<32x512xf32>
    %c2_47 = arith.constant 2 : index
    %c0_48 = arith.constant 0 : index
    %c0_49 = arith.constant 0 : index
    %136 = vector.load %arg7[%c2_47, %c0_48, %c0_49] : memref<5x32x32xf32, #tpu.memory_space<vmem>>, vector<1x32x32xf32>
    %137 = vector.shape_cast %136 : vector<1x32x32xf32> to vector<32x32xf32>
    %cst_50 = arith.constant dense<0.000000e+00> : vector<32x512xf32>
    %138 = tpu.matmul %137, %135, %cst_50 {dimension_numbers = #tpu.dot_dimension_numbers<[1], [0], [0], [1], [0, 0, 1, 1], [], []>} : vector<32x32xf32>, vector<32x512xf32>, vector<32x512xf32> -> vector<32x512xf32>
    %139 = arith.addf %125, %138 : vector<32x512xf32>
    %140 = tpu.iota {dimensions = array<i32: 0>} : vector<8x2xi32>
    %141 = tpu.iota {dimensions = array<i32: 1>} : vector<8x2xi32>
    %c6_i32 = arith.constant 6 : i32
    %142 = vector.broadcast %c6_i32 : i32 to vector<8x2xi32>
    %143 = arith.addi %141, %142 : vector<8x2xi32>
    %144 = arith.cmpi eq, %140, %143 : vector<8x2xi32>
    %145 = arith.extui %144 : vector<8x2xi1> to vector<8x2xi32>
    %146 = arith.sitofp %145 : vector<8x2xi32> to vector<8x2xf32>
    %cst_51 = arith.constant dense<0.000000e+00> : vector<32x2xf32>
    %147 = tpu.matmul %96, %146, %cst_51 {dimension_numbers = #tpu.dot_dimension_numbers<[1], [0], [0], [1], [0, 0, 1, 1], [], []>} : vector<32x8xf32>, vector<8x2xf32>, vector<32x2xf32> -> vector<32x2xf32>
    %148 = vector.extract_strided_slice %95 {offsets = [0, 0], sizes = [32, 510], strides = [1, 1]} : vector<32x512xf32> to vector<32x510xf32>
    %149 = tpu.concatenate %147, %148 in 1 : vector<32x2xf32>, vector<32x510xf32> -> vector<32x512xf32>
    %c3_52 = arith.constant 3 : index
    %c0_53 = arith.constant 0 : index
    %c0_54 = arith.constant 0 : index
    %150 = vector.load %arg7[%c3_52, %c0_53, %c0_54] : memref<5x32x32xf32, #tpu.memory_space<vmem>>, vector<1x32x32xf32>
    %151 = vector.shape_cast %150 : vector<1x32x32xf32> to vector<32x32xf32>
    %cst_55 = arith.constant dense<0.000000e+00> : vector<32x512xf32>
    %152 = tpu.matmul %151, %149, %cst_55 {dimension_numbers = #tpu.dot_dimension_numbers<[1], [0], [0], [1], [0, 0, 1, 1], [], []>} : vector<32x32xf32>, vector<32x512xf32>, vector<32x512xf32> -> vector<32x512xf32>
    %153 = arith.addf %139, %152 : vector<32x512xf32>
    %c4_56 = arith.constant 4 : index
    %c0_57 = arith.constant 0 : index
    %c0_58 = arith.constant 0 : index
    %154 = vector.load %arg7[%c4_56, %c0_57, %c0_58] : memref<5x32x32xf32, #tpu.memory_space<vmem>>, vector<1x32x32xf32>
    %155 = vector.shape_cast %154 : vector<1x32x32xf32> to vector<32x32xf32>
    %cst_59 = arith.constant dense<0.000000e+00> : vector<32x512xf32>
    %156 = tpu.matmul %155, %95, %cst_59 {dimension_numbers = #tpu.dot_dimension_numbers<[1], [0], [0], [1], [0, 0, 1, 1], [], []>} : vector<32x32xf32>, vector<32x512xf32>, vector<32x512xf32> -> vector<32x512xf32>
    %157 = arith.addf %153, %156 : vector<32x512xf32>
    %c0_60 = arith.constant 0 : index
    %c0_61 = arith.constant 0 : index
    %158 = vector.load %arg8[%c0_60, %c0_61] : memref<32x32xf32, #tpu.memory_space<vmem>>, vector<32x32xf32>
    %cst_62 = arith.constant dense<0.000000e+00> : vector<32x512xf32>
    %159 = tpu.matmul %158, %95, %cst_62 {dimension_numbers = #tpu.dot_dimension_numbers<[1], [0], [0], [1], [0, 0, 1, 1], [], []>} : vector<32x32xf32>, vector<32x512xf32>, vector<32x512xf32> -> vector<32x512xf32>
    %c0_63 = arith.constant 0 : index
    %c0_64 = arith.constant 0 : index
    %c0_65 = arith.constant 0 : index
    %160 = vector.load %arg9[%c0_63, %c0_64, %c0_65] : memref<1x32x1xf32, #tpu.memory_space<vmem>>, vector<1x32x1xf32>
    %161 = vector.shape_cast %160 : vector<1x32x1xf32> to vector<32x1xf32>
    %162 = vector.broadcast %161 : vector<32x1xf32> to vector<32x512xf32>
    %163 = arith.mulf %157, %162 : vector<32x512xf32>
    %c0_66 = arith.constant 0 : index
    %c0_67 = arith.constant 0 : index
    %c0_68 = arith.constant 0 : index
    %164 = vector.load %arg10[%c0_66, %c0_67, %c0_68] : memref<1x32x1xf32, #tpu.memory_space<vmem>>, vector<1x32x1xf32>
    %165 = vector.shape_cast %164 : vector<1x32x1xf32> to vector<32x1xf32>
    %166 = vector.broadcast %165 : vector<32x1xf32> to vector<32x512xf32>
    %167 = arith.addf %163, %166 : vector<32x512xf32>
    %c1_69 = arith.constant 1 : index
    %168 = memref.load %arg15[%c1_69] : memref<3xf32, #tpu.memory_space<smem>>
    %cst_70 = arith.constant 0.000000e+00 : f32
    %169 = vector.broadcast %cst_70 : f32 to vector<32x512xf32>
    %170 = arith.cmpf ogt, %167, %169 : vector<32x512xf32>
    %171 = vector.broadcast %168 : f32 to vector<32x512xf32>
    %172 = arith.mulf %171, %167 : vector<32x512xf32>
    %173 = arith.select %170, %167, %172 : vector<32x512xi1>, vector<32x512xf32>
    %174 = arith.addf %173, %159 : vector<32x512xf32>
    %c0_71 = arith.constant 0 : index
    %c0_72 = arith.constant 0 : index
    %175 = vector.load %arg20[%c0_71, %c0_72] : memref<32x16xf32, #tpu.memory_space<vmem>>, vector<32x16xf32>
    %cst_73 = arith.constant 0.000000e+00 : f32
    %176 = vector.broadcast %cst_73 : f32 to vector<64x512xf32>
    %177 = tpu.iota {dimensions = array<i32: 0>} : vector<16x16xi32>
    %178 = tpu.iota {dimensions = array<i32: 1>} : vector<16x16xi32>
    %c0_i32_74 = arith.constant 0 : i32
    %179 = vector.broadcast %c0_i32_74 : i32 to vector<16x16xi32>
    %180 = arith.addi %178, %179 : vector<16x16xi32>
    %181 = arith.cmpi eq, %177, %180 : vector<16x16xi32>
    %182 = arith.extui %181 : vector<16x16xi1> to vector<16x16xi32>
    %183 = arith.sitofp %182 : vector<16x16xi32> to vector<16x16xf32>
    %cst_75 = arith.constant dense<0.000000e+00> : vector<32x16xf32>
    %184 = tpu.matmul %175, %183, %cst_75 {dimension_numbers = #tpu.dot_dimension_numbers<[1], [0], [0], [1], [0, 0, 1, 1], [], []>} : vector<32x16xf32>, vector<16x16xf32>, vector<32x16xf32> -> vector<32x16xf32>
    %185 = vector.extract_strided_slice %174 {offsets = [0, 0], sizes = [32, 496], strides = [1, 1]} : vector<32x512xf32> to vector<32x496xf32>
    %186 = tpu.concatenate %184, %185 in 1 : vector<32x16xf32>, vector<32x496xf32> -> vector<32x512xf32>
    %c0_76 = arith.constant 0 : index
    %c0_77 = arith.constant 0 : index
    %c0_78 = arith.constant 0 : index
    %187 = vector.load %arg11[%c0_76, %c0_77, %c0_78] : memref<5x64x32xf32, #tpu.memory_space<vmem>>, vector<1x64x32xf32>
    %188 = vector.shape_cast %187 : vector<1x64x32xf32> to vector<64x32xf32>
    %cst_79 = arith.constant dense<0.000000e+00> : vector<64x512xf32>
    %189 = tpu.matmul %188, %186, %cst_79 {dimension_numbers = #tpu.dot_dimension_numbers<[1], [0], [0], [1], [0, 0, 1, 1], [], []>} : vector<64x32xf32>, vector<32x512xf32>, vector<64x512xf32> -> vector<64x512xf32>
    %190 = arith.addf %176, %189 : vector<64x512xf32>
    %191 = tpu.iota {dimensions = array<i32: 0>} : vector<16x12xi32>
    %192 = tpu.iota {dimensions = array<i32: 1>} : vector<16x12xi32>
    %c4_i32_80 = arith.constant 4 : i32
    %193 = vector.broadcast %c4_i32_80 : i32 to vector<16x12xi32>
    %194 = arith.addi %192, %193 : vector<16x12xi32>
    %195 = arith.cmpi eq, %191, %194 : vector<16x12xi32>
    %196 = arith.extui %195 : vector<16x12xi1> to vector<16x12xi32>
    %197 = arith.sitofp %196 : vector<16x12xi32> to vector<16x12xf32>
    %cst_81 = arith.constant dense<0.000000e+00> : vector<32x12xf32>
    %198 = tpu.matmul %175, %197, %cst_81 {dimension_numbers = #tpu.dot_dimension_numbers<[1], [0], [0], [1], [0, 0, 1, 1], [], []>} : vector<32x16xf32>, vector<16x12xf32>, vector<32x12xf32> -> vector<32x12xf32>
    %199 = vector.extract_strided_slice %174 {offsets = [0, 0], sizes = [32, 500], strides = [1, 1]} : vector<32x512xf32> to vector<32x500xf32>
    %200 = tpu.concatenate %198, %199 in 1 : vector<32x12xf32>, vector<32x500xf32> -> vector<32x512xf32>
    %c1_82 = arith.constant 1 : index
    %c0_83 = arith.constant 0 : index
    %c0_84 = arith.constant 0 : index
    %201 = vector.load %arg11[%c1_82, %c0_83, %c0_84] : memref<5x64x32xf32, #tpu.memory_space<vmem>>, vector<1x64x32xf32>
    %202 = vector.shape_cast %201 : vector<1x64x32xf32> to vector<64x32xf32>
    %cst_85 = arith.constant dense<0.000000e+00> : vector<64x512xf32>
    %203 = tpu.matmul %202, %200, %cst_85 {dimension_numbers = #tpu.dot_dimension_numbers<[1], [0], [0], [1], [0, 0, 1, 1], [], []>} : vector<64x32xf32>, vector<32x512xf32>, vector<64x512xf32> -> vector<64x512xf32>
    %204 = arith.addf %190, %203 : vector<64x512xf32>
    %205 = tpu.iota {dimensions = array<i32: 0>} : vector<16x8xi32>
    %206 = tpu.iota {dimensions = array<i32: 1>} : vector<16x8xi32>
    %c8_i32 = arith.constant 8 : i32
    %207 = vector.broadcast %c8_i32 : i32 to vector<16x8xi32>
    %208 = arith.addi %206, %207 : vector<16x8xi32>
    %209 = arith.cmpi eq, %205, %208 : vector<16x8xi32>
    %210 = arith.extui %209 : vector<16x8xi1> to vector<16x8xi32>
    %211 = arith.sitofp %210 : vector<16x8xi32> to vector<16x8xf32>
    %cst_86 = arith.constant dense<0.000000e+00> : vector<32x8xf32>
    %212 = tpu.matmul %175, %211, %cst_86 {dimension_numbers = #tpu.dot_dimension_numbers<[1], [0], [0], [1], [0, 0, 1, 1], [], []>} : vector<32x16xf32>, vector<16x8xf32>, vector<32x8xf32> -> vector<32x8xf32>
    %213 = vector.extract_strided_slice %174 {offsets = [0, 0], sizes = [32, 504], strides = [1, 1]} : vector<32x512xf32> to vector<32x504xf32>
    %214 = tpu.concatenate %212, %213 in 1 : vector<32x8xf32>, vector<32x504xf32> -> vector<32x512xf32>
    %c2_87 = arith.constant 2 : index
    %c0_88 = arith.constant 0 : index
    %c0_89 = arith.constant 0 : index
    %215 = vector.load %arg11[%c2_87, %c0_88, %c0_89] : memref<5x64x32xf32, #tpu.memory_space<vmem>>, vector<1x64x32xf32>
    %216 = vector.shape_cast %215 : vector<1x64x32xf32> to vector<64x32xf32>
    %cst_90 = arith.constant dense<0.000000e+00> : vector<64x512xf32>
    %217 = tpu.matmul %216, %214, %cst_90 {dimension_numbers = #tpu.dot_dimension_numbers<[1], [0], [0], [1], [0, 0, 1, 1], [], []>} : vector<64x32xf32>, vector<32x512xf32>, vector<64x512xf32> -> vector<64x512xf32>
    %218 = arith.addf %204, %217 : vector<64x512xf32>
    %219 = tpu.iota {dimensions = array<i32: 0>} : vector<16x4xi32>
    %220 = tpu.iota {dimensions = array<i32: 1>} : vector<16x4xi32>
    %c12_i32 = arith.constant 12 : i32
    %221 = vector.broadcast %c12_i32 : i32 to vector<16x4xi32>
    %222 = arith.addi %220, %221 : vector<16x4xi32>
    %223 = arith.cmpi eq, %219, %222 : vector<16x4xi32>
    %224 = arith.extui %223 : vector<16x4xi1> to vector<16x4xi32>
    %225 = arith.sitofp %224 : vector<16x4xi32> to vector<16x4xf32>
    %cst_91 = arith.constant dense<0.000000e+00> : vector<32x4xf32>
    %226 = tpu.matmul %175, %225, %cst_91 {dimension_numbers = #tpu.dot_dimension_numbers<[1], [0], [0], [1], [0, 0, 1, 1], [], []>} : vector<32x16xf32>, vector<16x4xf32>, vector<32x4xf32> -> vector<32x4xf32>
    %227 = vector.extract_strided_slice %174 {offsets = [0, 0], sizes = [32, 508], strides = [1, 1]} : vector<32x512xf32> to vector<32x508xf32>
    %228 = tpu.concatenate %226, %227 in 1 : vector<32x4xf32>, vector<32x508xf32> -> vector<32x512xf32>
    %c3_92 = arith.constant 3 : index
    %c0_93 = arith.constant 0 : index
    %c0_94 = arith.constant 0 : index
    %229 = vector.load %arg11[%c3_92, %c0_93, %c0_94] : memref<5x64x32xf32, #tpu.memory_space<vmem>>, vector<1x64x32xf32>
    %230 = vector.shape_cast %229 : vector<1x64x32xf32> to vector<64x32xf32>
    %cst_95 = arith.constant dense<0.000000e+00> : vector<64x512xf32>
    %231 = tpu.matmul %230, %228, %cst_95 {dimension_numbers = #tpu.dot_dimension_numbers<[1], [0], [0], [1], [0, 0, 1, 1], [], []>} : vector<64x32xf32>, vector<32x512xf32>, vector<64x512xf32> -> vector<64x512xf32>
    %232 = arith.addf %218, %231 : vector<64x512xf32>
    %c4_96 = arith.constant 4 : index
    %c0_97 = arith.constant 0 : index
    %c0_98 = arith.constant 0 : index
    %233 = vector.load %arg11[%c4_96, %c0_97, %c0_98] : memref<5x64x32xf32, #tpu.memory_space<vmem>>, vector<1x64x32xf32>
    %234 = vector.shape_cast %233 : vector<1x64x32xf32> to vector<64x32xf32>
    %cst_99 = arith.constant dense<0.000000e+00> : vector<64x512xf32>
    %235 = tpu.matmul %234, %174, %cst_99 {dimension_numbers = #tpu.dot_dimension_numbers<[1], [0], [0], [1], [0, 0, 1, 1], [], []>} : vector<64x32xf32>, vector<32x512xf32>, vector<64x512xf32> -> vector<64x512xf32>
    %236 = arith.addf %232, %235 : vector<64x512xf32>
    %c0_100 = arith.constant 0 : index
    %c0_101 = arith.constant 0 : index
    %237 = vector.load %arg12[%c0_100, %c0_101] : memref<64x32xf32, #tpu.memory_space<vmem>>, vector<64x32xf32>
    %cst_102 = arith.constant dense<0.000000e+00> : vector<64x512xf32>
    %238 = tpu.matmul %237, %174, %cst_102 {dimension_numbers = #tpu.dot_dimension_numbers<[1], [0], [0], [1], [0, 0, 1, 1], [], []>} : vector<64x32xf32>, vector<32x512xf32>, vector<64x512xf32> -> vector<64x512xf32>
    %c0_103 = arith.constant 0 : index
    %c0_104 = arith.constant 0 : index
    %c0_105 = arith.constant 0 : index
    %239 = vector.load %arg13[%c0_103, %c0_104, %c0_105] : memref<1x64x1xf32, #tpu.memory_space<vmem>>, vector<1x64x1xf32>
    %240 = vector.shape_cast %239 : vector<1x64x1xf32> to vector<64x1xf32>
    %241 = vector.broadcast %240 : vector<64x1xf32> to vector<64x512xf32>
    %242 = arith.mulf %236, %241 : vector<64x512xf32>
    %c0_106 = arith.constant 0 : index
    %c0_107 = arith.constant 0 : index
    %c0_108 = arith.constant 0 : index
    %243 = vector.load %arg14[%c0_106, %c0_107, %c0_108] : memref<1x64x1xf32, #tpu.memory_space<vmem>>, vector<1x64x1xf32>
    %244 = vector.shape_cast %243 : vector<1x64x1xf32> to vector<64x1xf32>
    %245 = vector.broadcast %244 : vector<64x1xf32> to vector<64x512xf32>
    %246 = arith.addf %242, %245 : vector<64x512xf32>
    %c2_109 = arith.constant 2 : index
    %247 = memref.load %arg15[%c2_109] : memref<3xf32, #tpu.memory_space<smem>>
    %cst_110 = arith.constant 0.000000e+00 : f32
    %248 = vector.broadcast %cst_110 : f32 to vector<64x512xf32>
    %249 = arith.cmpf ogt, %246, %248 : vector<64x512xf32>
    %250 = vector.broadcast %247 : f32 to vector<64x512xf32>
    %251 = arith.mulf %250, %246 : vector<64x512xf32>
    %252 = arith.select %249, %246, %251 : vector<64x512xi1>, vector<64x512xf32>
    %253 = arith.addf %252, %238 : vector<64x512xf32>
    %c0_111 = arith.constant 0 : index
    %c0_112 = arith.constant 0 : index
    %254 = vector.load %arg16[%c0_111, %c0_112] : memref<64x1xf32, #tpu.memory_space<vmem>>, vector<64x1xf32>
    %255 = vector.broadcast %254 : vector<64x1xf32> to vector<64x512xf32>
    %256 = arith.mulf %255, %253 : vector<64x512xf32>
    %cst_113 = arith.constant dense<0.000000e+00> : vector<512xf32>
    %257 = vector.multi_reduction <add>, %256, %cst_113 [0] : vector<64x512xf32> to vector<512xf32>
    %258 = vector.shape_cast %257 : vector<512xf32> to vector<1x512xf32>
    %c0_114 = arith.constant 0 : index
    %c0_115 = arith.constant 0 : index
    %c0_116 = arith.constant 0 : index
    %259 = vector.load %arg17[%c0_114, %c0_115, %c0_116] : memref<1x1x512xf32, #tpu.memory_space<vmem>>, vector<1x1x512xf32>
    %260 = vector.shape_cast %259 : vector<1x1x512xf32> to vector<1x512xf32>
    %261 = vector.shape_cast %258 : vector<1x512xf32> to vector<1x1x512xf32>
    tpu.vector_store %arg17[%c0_114, %c0_115, %c0_116], %261 {strides = array<i32>} : memref<1x1x512xf32, #tpu.memory_space<vmem>>, vector<1x1x512xf32>,
    return
  }
  func.func @transform_0(%arg0: i32, %arg1: i32) -> (i32, i32, i32) {
    %c0_i32 = arith.constant 0 : i32
    %c0_i32_0 = arith.constant 0 : i32
    return %arg0, %c0_i32, %arg1 : i32, i32, i32
  }
  func.func @transform_1(%arg0: i32, %arg1: i32) -> (i32, i32, i32) {
    %c0_i32 = arith.constant 0 : i32
    %c0_i32_0 = arith.constant 0 : i32
    %c0_i32_1 = arith.constant 0 : i32
    %c0_i32_2 = arith.constant 0 : i32
    return %c0_i32, %c0_i32_0, %c0_i32_1 : i32, i32, i32
  }
  func.func @transform_2(%arg0: i32, %arg1: i32) -> (i32, i32) {
    %c0_i32 = arith.constant 0 : i32
    %c0_i32_0 = arith.constant 0 : i32
    %c0_i32_1 = arith.constant 0 : i32
    return %c0_i32, %c0_i32_0 : i32, i32
  }
  func.func @transform_3(%arg0: i32, %arg1: i32) -> (i32, i32, i32) {
    %c0_i32 = arith.constant 0 : i32
    %c0_i32_0 = arith.constant 0 : i32
    %c0_i32_1 = arith.constant 0 : i32
    return %arg0, %c0_i32, %c0_i32_0 : i32, i32, i32
  }
  func.func @transform_4(%arg0: i32, %arg1: i32) -> (i32, i32, i32) {
    %c0_i32 = arith.constant 0 : i32
    %c0_i32_0 = arith.constant 0 : i32
    %c0_i32_1 = arith.constant 0 : i32
    return %arg0, %c0_i32, %c0_i32_0 : i32, i32, i32
  }
  func.func @transform_5(%arg0: i32, %arg1: i32) -> (i32, i32, i32) {
    %c0_i32 = arith.constant 0 : i32
    %c0_i32_0 = arith.constant 0 : i32
    %c0_i32_1 = arith.constant 0 : i32
    %c0_i32_2 = arith.constant 0 : i32
    return %c0_i32, %c0_i32_0, %c0_i32_1 : i32, i32, i32
  }
  func.func @transform_6(%arg0: i32, %arg1: i32) -> (i32, i32) {
    %c0_i32 = arith.constant 0 : i32
    %c0_i32_0 = arith.constant 0 : i32
    %c0_i32_1 = arith.constant 0 : i32
    return %c0_i32, %c0_i32_0 : i32, i32
  }
  func.func @transform_7(%arg0: i32, %arg1: i32) -> (i32, i32, i32) {
    %c0_i32 = arith.constant 0 : i32
    %c0_i32_0 = arith.constant 0 : i32
    %c0_i32_1 = arith.constant 0 : i32
    return %arg0, %c0_i32, %c0_i32_0 : i32, i32, i32
  }
  func.func @transform_8(%arg0: i32, %arg1: i32) -> (i32, i32, i32) {
    %c0_i32 = arith.constant 0 : i32
    %c0_i32_0 = arith.constant 0 : i32
    %c0_i32_1 = arith.constant 0 : i32
    return %arg0, %c0_i32, %c0_i32_0 : i32, i32, i32
  }
  func.func @transform_9(%arg0: i32, %arg1: i32) -> (i32, i32, i32) {
    %c0_i32 = arith.constant 0 : i32
    %c0_i32_0 = arith.constant 0 : i32
    %c0_i32_1 = arith.constant 0 : i32
    %c0_i32_2 = arith.constant 0 : i32
    return %c0_i32, %c0_i32_0, %c0_i32_1 : i32, i32, i32
  }
  func.func @transform_10(%arg0: i32, %arg1: i32) -> (i32, i32) {
    %c0_i32 = arith.constant 0 : i32
    %c0_i32_0 = arith.constant 0 : i32
    %c0_i32_1 = arith.constant 0 : i32
    return %c0_i32, %c0_i32_0 : i32, i32
  }
  func.func @transform_11(%arg0: i32, %arg1: i32) -> (i32, i32, i32) {
    %c0_i32 = arith.constant 0 : i32
    %c0_i32_0 = arith.constant 0 : i32
    %c0_i32_1 = arith.constant 0 : i32
    return %arg0, %c0_i32, %c0_i32_0 : i32, i32, i32
  }
  func.func @transform_12(%arg0: i32, %arg1: i32) -> (i32, i32, i32) {
    %c0_i32 = arith.constant 0 : i32
    %c0_i32_0 = arith.constant 0 : i32
    %c0_i32_1 = arith.constant 0 : i32
    return %arg0, %c0_i32, %c0_i32_0 : i32, i32, i32
  }
  func.func @transform_13(%arg0: i32, %arg1: i32) -> i32 {
    %c0_i32 = arith.constant 0 : i32
    %c0_i32_0 = arith.constant 0 : i32
    return %c0_i32 : i32
  }
  func.func @transform_14(%arg0: i32, %arg1: i32) -> (i32, i32) {
    %c0_i32 = arith.constant 0 : i32
    %c0_i32_0 = arith.constant 0 : i32
    %c0_i32_1 = arith.constant 0 : i32
    return %c0_i32, %c0_i32_0 : i32, i32
  }
  func.func @transform_15(%arg0: i32, %arg1: i32) -> (i32, i32, i32) {
    %c0_i32 = arith.constant 0 : i32
    %c0_i32_0 = arith.constant 0 : i32
    return %arg0, %c0_i32, %arg1 : i32, i32, i32
  }
}

</mosaic_0001>

<bundles_post_ra>
// kernel: tpu_custom_call.1
= control target key start
LH: loop header
LB: loop body
LE: loop exit
PB: predicated region body
PF: predicated region fallthrough
CT: control target
= control target key end

     0   :  { %s10343_s0 = inlined_call_operand.vmem [shape: f32[2,1,512], index: 0, kind: input, shape index: {}]   ;;  %s10344_s1 = inlined_call_operand.vmem [shape: f32[5,32,1], index: 1, kind: input, shape index: {}]   ;;  %s10345_s2 = inlined_call_operand.vmem [shape: f32[32,1], index: 2, kind: input, shape index: {}]   ;;  %s10346_s3 = inlined_call_operand.vmem [shape: f32[2,32,1], index: 3, kind: input, shape index: {}]   ;;  %s10347_s4 = inlined_call_operand.vmem [shape: f32[2,32,1], index: 4, kind: input, shape index: {}]   ;;  %s10348_s5 = inlined_call_operand.vmem [shape: f32[5,32,32], index: 5, kind: input, shape index: {}]   ;;  %s10349_s6 = inlined_call_operand.vmem [shape: f32[32,32], index: 6, kind: input, shape index: {}]   ;;  %s10350_s7 = inlined_call_operand.vmem [shape: f32[2,32,1], index: 7, kind: input, shape index: {}]   ;;  %s10351_s8 = inlined_call_operand.vmem [shape: f32[2,32,1], index: 8, kind: input, shape index: {}]   ;;  %s10352_s9 = inlined_call_operand.vmem [shape: f32[5,64,32], index: 9, kind: input, shape index: {}]   ;;  %s10353_s10 = inlined_call_operand.vmem [shape: f32[64,32], index: 10, kind: input, shape index: {}]   ;;  %s10354_s11 = inlined_call_operand.vmem [shape: f32[2,64,1], index: 11, kind: input, shape index: {}]   ;;  %s10355_s12 = inlined_call_operand.vmem [shape: f32[2,64,1], index: 12, kind: input, shape index: {}]   ;;  %s10356_s13 = inlined_call_operand.vmem [shape: f32[3], index: 13, kind: input, shape index: {}]   ;;  %s10357_s14 = inlined_call_operand.vmem [shape: f32[64,1], index: 14, kind: input, shape index: {}]   ;;  %s10358_s15 = inlined_call_operand.hbm [shape: f32[2,1,512], index: 15, kind: output, shape index: {}]  }
   0x1   :  { %10475 = sst [smem:[#allocation57_spill]] %s10343_s0 }
   0x2   :  { %10476 = sst [smem:[#allocation58_spill]] %s10356_s13 }
   0x3   :  { %20 = vsyncpa [#allocation7], 0 }
   0x4   :  { %21 = vsyncpa [#allocation6], 0 }
   0x5   :  { %23 = vsyncpa [#allocation6 + $0x1], 0  ;;  %s7269_s18 = smov 0   ;;  %s7271_s19 = smov 0  }
   0x6   :  { %s7273_s20 = smov 0   ;;  %s7275_s21 = smov 0  }
   0x7   :  { %s7277_s22 = smov 0   ;;  %s7279_s23 = smov 0  }
   0x8 LB: > { %10477 = sst [smem:[#allocation11_spill]] %s7152_s18  ;;  %s6541_s24 = sadd.s32 4294967295, %s7172_s23   ;;  %s7172_s23 = sphi %s7279_s23, %s29_s23   ;;  %s7168_s22 = sphi %s7277_s22, %s10700_s22   ;;  %s7164_s21 = sphi %s7275_s21, %s10699_s21   ;;  %s7160_s20 = sphi %s7273_s20, %s10698_s20   ;;  %s7156_s19 = sphi %s7271_s19, %s10702_s19   ;;  %s7152_s18 = sphi %s7269_s18, %s10701_s18  }
   0x9   : > { %10478 = sst [smem:[#allocation12_spill]] %s7160_s20  ;;  %s6542_s25 = sadd.s32 4294967294, %s7172_s23  }
   0xa   : > { %10479 = sst [smem:[#allocation13_spill]] %s7168_s22  ;;  %s41_s26 = sadd.s32 1, %s7168_s22 }
   0xb   : > { %s402_s27 = sadd.s32 1, %s7160_s20  ;;  %p43_p0 = scmp.ge.s32.totalorder %s41_s26, 2 }
   0xc   : > { %p412_p1 = scmp.ne.s32.totalorder %s7160_s20, %s7156_s19  ;;  %p413_p2 = scmp.eq.s32.totalorder %s6541_s24, 1 }
   0xd   : > { %p418_p3 = scmp.ne.s32.totalorder %s7156_s19, %s7152_s18  ;;  %s10704_s26 = smov (%p43_p0, %s41_s26), 0 }
   0xe   : > { %10480 = sst [smem:[#allocation14_spill]] %s10704_s26  ;;  %p7309_p4 = por %p413_p2, %p412_p1 }
   0xf   : > { %p419_p5 = scmp.eq.s32.totalorder %s6542_s25, 1  ;;  %s397_s29 = ssub.s32 %s7168_s22, %s10704_s26 }
  0x10   : > { %p6543_p6 = scmp.ge.s32.totalorder %s7172_s23, 1  ;;  %p400_p7 = scmp.eq.s32.totalorder %s397_s29, 0 }
  0x11   : > { %p7316_p8 = por %p419_p5, %p418_p3  ;;  %p426_p9 = scmp.lt.s32.totalorder %s7172_s23, 3 }
  0x12   : > { %s7322_s16 = scalar_select %p400_p7, %s7160_s20, %s402_s27  }
  0x13   : > { %p7324_p10 = pnand %p6543_p6, %p426_p9  ;;  %p7328_p11 = scmp.eq.s32.totalorder %s6541_s24, 0 }
  0x14   : > { %10483 = sst [smem:[#allocation15_spill]] %s7322_s16 }
  0x15   : > { %s10486_s13 = sld [smem:[#allocation58_spill]]  ;;  %p6994_p12 = pneg %p7324_p10 }
  0x17   : > { %p6995_p13 = pnand %p7328_p11, %p6994_p12 }
  0x19   : > { %p7079_p1 = pneg %p6995_p13 }
  0x1b   : > { %s457_s29 = sshll.u32 %s10486_s13, 4  ;;  %s458_s29 = int_to_ptr.vmem [resolvable:$true] %s457_s29 }
  0x1c   : > { %s7077_s27 = scalar_lea.vmem %s458_s29, 16  ;;  %p7085_p5 = scmp.lt.s32.totalorder %s458_s29, %s458_s29 }
  0x1d   : > { %p7078_p0 = scmp.ne.s32.totalorder %s458_s29, %s7077_s27  ;;  %p7086_p6 = scmp.lt.s32.totalorder %s7077_s27, %s7077_s27 }
  0x1f   : > { %p7080_p2 = pnand %p7079_p1, %p7078_p0  ;;  %p7087_p7 = por %p7086_p6, %p7085_p5 }
  0x21   : > { %p7081_p3 = pneg %p7080_p2 }
  0x23   : > { %p7088_p9 = pnand %p7087_p7, %p7081_p3 }
  0x25   : > { %7091 = shalt.err (!%p7088_p9)
}
  0x26   : > { %s7174_s24 = smov [#allocation5]   ;;  %533 = sbr.rel (%p7324_p10) target bundleno = 2062 (0x80e), region = 80 }
  0x27   : > { %6997 = dma.vmem_to_smem (!%p6995_p13), %s458_s29, 16, %s7174_s24, [#allocation7]  }
  0x2b   : > { %7143 = dma.done.wait (%p7328_p11), [#allocation7], 16  }
  0x2c   : > { %7145 = vsyncadd (%p7328_p11), [#allocation7], 4294967280 }
  0x2d   : > { %539 = sfence }
  0x2e   : > { %v794_v0 = vld [vmem:[%s10344_s1 + $0x18] sm:$0xff]  ;;  %v10371_v1 = vlaneseq  ;;  %p616_p12 = scmp.lt.s32.totalorder %s7164_s21, 1  ;;  %v7175_v2 = vmov 0   ;;  %v10374_v3 = vmov 0.0   ;;  %vm659_vm0 = vcmask 24576   ;;  %s10492_s0 = sld [smem:[#allocation57_spill]] }
  0x2f   : > { %7067 = vset.pattern.permute.xlu0 %v7175_v2  ;;  %6896 = vmatprep.subr.mxu0 %v10374_v3  ;;  %660 = vst.msk [vmem:[#allocation2] sm:$0x1] %vm659_vm0, %v10374_v3  ;;  %v6571_v6 = vld [vmem:[%s10344_s1 + $0x38] sm:$0xff]  ;;  %vm684_vm1 = vcmask 1043456   ;;  %vm7177_vm2 = vmmov 0   ;;  %v10489_v7 = vmov 0 }
  0x30   : > { %812 = vperm.xlu0 %7067, %v794_v0   ;;  %6901 = vmatprep.subr.mxu1 %v10374_v3  ;;  %v7352_v4 = vshrl.u32 %v10371_v1, 7  ;;  %v7355_v5 = vand.u32 127, %v10371_v1  ;;  %s7359_s18 = scalar_select %p616_p12, %s7164_s21, 1  ;;  %vm680_vm6 = vcmask 31744   ;;  %v793_v17 = vld [vmem:[%s10344_s1 + $0x10] sm:$0xff]  ;;  %vm661_vm8 = vcmask 64512  }
  0x31   : > { %6898 = vmatprep.mubr.msk.f32.mxu0 %vm7177_vm2, %v10374_v3  ;;  %6903 = vmatprep.mubr.msk.f32.mxu1 %vm7177_vm2, %v10374_v3  ;;  %662 = vst.msk [vmem:[#allocation3] sm:$0xff] %vm661_vm8, %v10374_v3  ;;  %663 = vst.msk [vmem:[#allocation3 + $0x8] sm:$0xff] %vm661_vm8, %v10374_v3  ;;  %s10361_s24 = smov 3   ;;  %v10372_v22 = vmov 1.0   ;;  %v6578_v23 = vld [vmem:[%s10344_s1 + $0x58] sm:$0xff]  ;;  %v6570_v26 = vld [vmem:[%s10344_s1 + $0x30] sm:$0xff] }
  0x32   : > { %10487 = vst [vmem:[#allocation16_spill] sm:$0xff] %v7352_v4  ;;  %10488 = vst [vmem:[#allocation17_spill] sm:$0xff] %v7355_v5  ;;  %vm7370_vm3 = vcmp.eq.s32.totalorder %v7352_v4, %v7355_v5  ;;  %v7375_v8 = vsub.s32 0, %v7352_v4  ;;  %v863_v9 = vadd.s32 1, %v7355_v5  ;;  %s6549_s27 = sshll.u32 %s7359_s18, 2  ;;  %v1030_v10 = vadd.s32 2, %v7355_v5  ;;  %7068 = vset.pattern.permute.xlu1 %v7175_v2 }
  0x33   : > { %v10490_v7 = vsel %vm7370_vm3, 4294967295, %v10489_v7  ;;  %v6562_v11 = vsel %vm7370_vm3, 1.0, %v10374_v3  ;;  %v1197_v12 = vadd.s32 3, %v7355_v5  ;;  %v765_v13 = vsub.s32 1, %v7352_v4  ;;  %664 = vst.msk [vmem:[#allocation3 + $0x10] sm:$0xff] %vm661_vm8, %v10374_v3  ;;  %665 = vst.msk [vmem:[#allocation3 + $0x18] sm:$0xff] %vm661_vm8, %v10374_v3 }
  0x34   : > { %10491 = vst [vmem:[#allocation18_spill] sm:$0xff] %v10490_v7  ;;  %s622_s25 = scalar_lea.vmem %s10492_s0, %s6549_s27  ;;  %979 = vperm.xlu0 %7067, %v6571_v6   ;;  %6897 = vmatpush3.msk.msra.mxu0 %vm684_vm1, %v6562_v11  ;;  %vm864_vm4 = vcmp.eq.s32.totalorder %v7352_v4, %v863_v9  ;;  %vm1031_vm5 = vcmp.eq.s32.totalorder %v7352_v4, %v1030_v10  ;;  %s10363_s27 = smov 4   ;;  %v6569_v29 = vld [vmem:[%s10344_s1 + $0x28] sm:$0xff]  ;;  %v6585_v31 = vld [vmem:[%s10344_s1 + $0x78] sm:$0xff]  ;;  %v6577_v32 = vld [vmem:[%s10344_s1 + $0x50] sm:$0xff]  ;;  %vm948_vm9 = vcmask 23552  }
  0x35   : > { %v7390_v14 = vld [vmem:[%s622_s25] sm:$0xf]  ;;  %v6565_v15 = vsel %vm864_vm4, 1.0, %v10374_v3  ;;  %6906 = vmatprep.subr.mxu0 %v10374_v3  ;;  %vm1198_vm7 = vcmp.eq.s32.totalorder %v7352_v4, %v1197_v12  ;;  %v6572_v18 = vsel %vm1031_vm5, 1.0, %v10374_v3  ;;  %v792_v30 = vld [vmem:[%s10344_s1 + $0x8] sm:$0xff]  ;;  %s10366_s26 = smov 2  }
  0x36   : > { %v7396_v16 = vrot.slane %v7390_v14, %v7375_v8  ;;  %6902 = vmatpush3.msk.msra.mxu1 %vm684_vm1, %v6565_v15  ;;  %v672_v19 = vld [vmem:[#allocation2] sm:$0x1]  ;;  %v6579_v20 = vsel %vm1198_vm7, 1.0, %v10374_v3  ;;  %v7412_v21 = vrot.slane %v7390_v14, %v765_v13  ;;  %v6576_v35 = vld [vmem:[%s10344_s1 + $0x48] sm:$0xff]  ;;  %v6584_v36 = vld [vmem:[%s10344_s1 + $0x70] sm:$0xff]  ;;  %vm1115_vm10 = vcmask 15360  }
  0x37   : > { %6911 = vmatprep.subr.mxu1 %v10374_v3  ;;  %6899 = vmatmul.mubr.msk.f32.vlgmr.msra.gmra.mxu0 %vm680_vm6, %v672_v19  ;;  %v6568_v33 = vld [vmem:[%s10344_s1 + $0x20] sm:$0xff]  ;;  %v6589_v38 = vld [vmem:[%s10344_s1 + $0x98] sm:$0xff]  ;;  %v6588_v39 = vld [vmem:[%s10344_s1 + $0x90] sm:$0xff]  ;;  %vm1282_vm11 = vcmask 7168   ;;  %s7183_s13 = smov 6   ;;  %s7184_s22 = smov 8  }
  0x38   : > { %775 = vrot.lane.b32.xlu1 %v7396_v16, %s10363_s27  ;;  %6904 = vmatmul.mubr.msk.f32.vlgmr.msra.gmra.mxu1 %vm680_vm6, %v672_v19  ;;  %v7445_v24 = vld [vmem:[#allocation3] sm:$0xff]  ;;  %v7447_v25 = vld [vmem:[#allocation3 + $0x8] sm:$0xff]  ;;  %v1428_v50 = vld [vmem:[%s10345_s2 + $0x18] sm:$0xff]  ;;  %s10515_s16 = smov 4   ;;  %s10518_s25 = smov 1   ;;  %vm1952_vm7 = vcmask 261120  }
  0x39   : > { %807 = vperm.xlu0 %7067, %v793_v17   ;;  %6907 = vmatpush3.msk.msra.mxu0 %vm684_vm1, %v6572_v18  ;;  %10493 = vst [vmem:[#allocation19_spill] sm:$0xff] %v7445_v24  ;;  %10494 = vst [vmem:[#allocation20_spill] sm:$0xff] %v7447_v25  ;;  %v791_v34 = vld [vmem:[%s10344_s1] sm:$0xff]  ;;  %v6583_v40 = vld [vmem:[%s10344_s1 + $0x68] sm:$0xff]  ;;  %s7185_s29 = smov 12  }
  0x3a   : > { %6908 = vmatprep.mubr.msk.f32.mxu0 %vm7177_vm2, %v10374_v3  ;;  %6912 = vmatpush3.msk.msra.mxu1 %vm684_vm1, %v6579_v20  ;;  %v7464_v27 = vld [vmem:[#allocation3 + $0x10] sm:$0xff]  ;;  %v7466_v28 = vld [vmem:[#allocation3 + $0x18] sm:$0xff]  ;;  %v6587_v41 = vld [vmem:[%s10344_s1 + $0x88] sm:$0xff] }
  0x3b   : > { %6913 = vmatprep.mubr.msk.f32.mxu1 %vm7177_vm2, %v10374_v3  ;;  %6909 = vmatmul.mubr.msk.f32.vlgmr.msra.gmra.mxu0 %vm680_vm6, %v672_v19  ;;  %10495 = vst [vmem:[#allocation21_spill] sm:$0xff] %v7464_v27  ;;  %10496 = vst [vmem:[#allocation22_spill] sm:$0xff] %v7466_v28  ;;  %v6575_v37 = vld [vmem:[%s10344_s1 + $0x40] sm:$0xff]  ;;  %v1427_v51 = vld [vmem:[%s10345_s2 + $0x10] sm:$0xff] }
  0x3c   : > { %777 = vrot.lane.b32.xlu1 %v7412_v21, %s10363_s27  ;;  %6914 = vmatmul.mubr.msk.f32.vlgmr.msra.gmra.mxu1 %vm680_vm6, %v672_v19  ;;  %v6582_v42 = vld [vmem:[%s10344_s1 + $0x60] sm:$0xff]  ;;  %v1426_v53 = vld [vmem:[%s10345_s2 + $0x8] sm:$0xff]  ;;  %s10516_s27 = smov 3  }
  0x3d   : > { %942 = vrot.lane.b32.xlu0 %v7412_v21, %s10361_s24  ;;  %6924 = vmatprep.subr.msk.mxu1 %vm1031_vm5, %v10372_v22  ;;  %v6586_v43 = vld [vmem:[%s10344_s1 + $0x80] sm:$0xff] }
  0x3e   : > { %6925 = vmatpush3.msk.msra.mxu1 %vm1031_vm5, %v10372_v22  ;;  %6916 = vmatprep.subr.msk.mxu0 %vm7370_vm3, %v10372_v22  ;;  %v1425_v55 = vld [vmem:[%s10345_s2] sm:$0xff]  ;;  %vm1914_vm5 = vcmask 48128  }
  0x3f   : > { %6926 = vmatprep.mubr.msk.f32.mxu1 %vm661_vm8, %v7445_v24  ;;  %6917 = vmatpush3.msk.msra.mxu0 %vm7370_vm3, %v10372_v22 }
  0x40   : > { %940 = vrot.lane.b32.xlu1 %v7396_v16, %s10361_s24  ;;  %6927 = vmatmul.mubr.msk.f32.vlgmr.msra.gmra.mxu1 %vm661_vm8, %v7447_v25  ;;  %s10517_s24 = smov 2  }
  0x41   : > { %1146 = vperm.xlu0 %7067, %v6578_v23   ;;  %6918 = vmatprep.mubr.msk.f32.mxu0 %vm661_vm8, %v7445_v24 }
  0x42   : > { %6929 = vmatprep.mubr.msk.f32.mxu1 %vm661_vm8, %v7464_v27  ;;  %6919 = vmatmul.mubr.msk.f32.vlgmr.msra.gmra.mxu0 %vm661_vm8, %v7447_v25 }
  0x43   : > { %6921 = vmatprep.mubr.msk.f32.mxu0 %vm661_vm8, %v7464_v27 }
  0x44   : > { %974 = vperm.xlu1 %7068, %v6570_v26   ;;  %6930 = vmatmul.mubr.msk.f32.gmra.mxu1 %vm661_vm8, %v7466_v28 }
  0x45   : > { %969 = vperm.xlu0 %7067, %v6569_v29   ;;  %2118 = vmatprep.mubr.f32.mxu1 %v10374_v3 }
  0x46   : > { %6922 = vmatmul.mubr.msk.f32.gmra.mxu0 %vm661_vm8, %v7466_v28 }
  0x47   : > { %2029 = vmatprep.mubr.f32.mxu0 %v10374_v3 }
  0x48   : > { %802 = vperm.xlu1 %7068, %v792_v30  }
  0x49   : > { %1109 = vrot.lane.b32.xlu0 %v7412_v21, %s10366_s26 }
  0x4c   : > { %1107 = vrot.lane.b32.xlu1 %v7396_v16, %s10366_s26  ;;  %s10368_s26 = smov 1  }
  0x4d   : > { %1313 = vperm.xlu0 %7067, %v6585_v31  }
  0x50   : > { %1141 = vperm.xlu1 %7068, %v6577_v32  }
  0x51   : > { %964 = vperm.xlu0 %7067, %v6568_v33  }
  0x54   : > { %797 = vperm.xlu1 %7068, %v791_v34  }
  0x55   : > { %1274 = vrot.lane.b32.xlu0 %v7396_v16, %s10368_s26 }
  0x58   : > { %1136 = vperm.xlu1 %7068, %v6576_v35  }
  0x59   : > { %1308 = vperm.xlu0 %7067, %v6584_v36  }
  0x5c   : > { %1276 = vrot.lane.b32.xlu1 %v7412_v21, %s10368_s26  ;;  %s7530_s26 = sshll.u32 %s7359_s18, 5 }
  0x5d   : > { %1131 = vperm.xlu0 %7067, %v6575_v37   ;;  %s628_s17 = scalar_lea.vmem %s10346_s3, %s7530_s26  ;;  %s633_s20 = scalar_lea.vmem %s10347_s4, %s7530_s26 }
  0x5e   : > { %v1468_v44 = vld [vmem:[%s628_s17 + $0x18] sm:$0xff]  ;;  %v1467_v46 = vld [vmem:[%s628_s17 + $0x10] sm:$0xff]  ;;  %v1466_v48 = vld [vmem:[%s628_s17 + $0x8] sm:$0xff]  ;;  %s643_s0 = scalar_lea.vmem %s10351_s8, %s7530_s26 }
  0x5f   : > { %v1508_v45 = vld [vmem:[%s633_s20 + $0x18] sm:$0xff]  ;;  %v1507_v47 = vld [vmem:[%s633_s20 + $0x10] sm:$0xff]  ;;  %v1465_v49 = vld [vmem:[%s628_s17] sm:$0xff]  ;;  %s7186_s17 = smov 16  }
  0x60   : > { %1386 = vperm.xlu1 %7068, %v6589_v38   ;;  %v1506_v52 = vld [vmem:[%s633_s20 + $0x8] sm:$0xff]  ;;  %v1505_v54 = vld [vmem:[%s633_s20] sm:$0xff]  ;;  %s1545_s20 = sld [smem:[#allocation5]] }
  0x61   : > { %1381 = vperm.xlu0 %7067, %v6588_v39  }
  0x64   : > { %1303 = vperm.xlu1 %7068, %v6583_v40  }
  0x65   : > { %1376 = vperm.xlu0 %7067, %v6587_v41  }
  0x68   : > { %1298 = vperm.xlu1 %7068, %v6582_v42  }
  0x69   : > { %1371 = vperm.xlu0 %7067, %v6586_v43  }
  0x6c   : > { %1486 = vperm.xlu1 %7068, %v1468_v44  }
  0x6d   : > { %1526 = vperm.xlu0 %7067, %v1508_v45  }
  0x70   : > { %1481 = vperm.xlu1 %7068, %v1467_v46  }
  0x71   : > { %1521 = vperm.xlu0 %7067, %v1507_v47  }
  0x74   : > { %1476 = vperm.xlu1 %7068, %v1466_v48  }
  0x75   : > { %1471 = vperm.xlu0 %7067, %v1465_v49  }
  0x78   : > { %1446 = vperm.xlu1 %7068, %v1428_v50  }
  0x79   : > { %1441 = vperm.xlu0 %7067, %v1427_v51  }
  0x7c   : > { %1516 = vperm.xlu1 %7068, %v1506_v52  }
  0x7d   : > { %1436 = vperm.xlu0 %7067, %v1426_v53  }
  0x80   : > { %1511 = vperm.xlu1 %7068, %v1505_v54  }
  0x84   : > { %1431 = vperm.xlu1 %7068, %v1425_v55  }
  0xaa   : > { %v7560_v57 = vpop.permute.xlu1 %775 }
  0xab   : > { %v7558_v56 = vpop.permute.xlu0 %812 }
  0xac   : > { %10497 = vst [vmem:[#allocation23_spill] sm:$0xff] %v7558_v56 }
  0xae   : > { %v7564_v59 = vpop.permute.xlu1 %777 }
  0xaf   : > { %v7562_v58 = vpop.permute.xlu0 %979  ;;  %v783_v19 = vsel %vm680_vm6, %v7560_v57, %v7564_v59 }
  0xb0   : > { %v822_v29 = vrot.slane %v783_v19, %v7375_v8 }
  0xb2   : > { %v7570_v62 = vpop.permute.xlu1 %940  ;;  %v844_v35 = vmul.f32 %v822_v29, %v7558_v56 }
  0xb4   : > { %v7566_v60 = vpop.permute.xlu0 %807 }
  0xb5   : > { %10498 = vst [vmem:[#allocation24_spill] sm:$0xff] %v7566_v60  ;;  %v840_v41 = vmul.f32 %v822_v29, %v7566_v60 }
  0xb8   : > { %v7568_v61 = vpop.permute.xlu0 %942 }
  0xb9   : > { %v949_v20 = vsel %vm948_vm9, %v7570_v62, %v7568_v61 }
  0xba   : > { %v989_v30 = vrot.slane %v949_v20, %v7375_v8 }
  0xbc   : > { %v7572_v63 = vpop.permute.xlu0 %1146  ;;  %v1011_v36 = vmul.f32 %v989_v30, %v7562_v58 }
  0xbe   : > { %v1027_v43 = vadd.f32 %v1011_v36, %v844_v35 }
  0xbf   : > { %v7574_v0 = vpop.permute.xlu1 %974 }
  0xc0   : > { %10499 = vst [vmem:[#allocation25_spill] sm:$0xff] %v7574_v0  ;;  %v7576_v2 = vpop.permute.xlu0 %969  ;;  %v1007_v42 = vmul.f32 %v989_v30, %v7574_v0 }
  0xc1   : > { %10500 = vst [vmem:[#allocation26_spill] sm:$0xff] %v7576_v2  ;;  %v1003_v35 = vmul.f32 %v989_v30, %v7576_v2 }
  0xc2   : > { %v1023_v49 = vadd.f32 %v1007_v42, %v840_v41 }
  0xc3   : > { %v7578_v6 = vpop.permute.xlu1 %802 }
  0xc4   : > { %v7580_v9 = vpop.permute.xlu0 %1109  ;;  %v836_v36 = vmul.f32 %v822_v29, %v7578_v6 }
  0xc5   : > { %10501 = vst [vmem:[#allocation27_spill] sm:$0xff] %v7580_v9 }
  0xc7   : > { %v7582_v10 = vpop.permute.xlu1 %1107 }
  0xc8   : > { %v7584_v11 = vpop.permute.xlu0 %1313  ;;  %v1116_v26 = vsel %vm1115_vm10, %v7582_v10, %v7580_v9 }
  0xc9   : > { %v1156_v33 = vrot.slane %v1116_v26, %v7375_v8 }
  0xcb   : > { %v7586_v12 = vpop.permute.xlu1 %1141  ;;  %v1178_v39 = vmul.f32 %v1156_v33, %v7572_v63 }
  0xcc   : > { %v7588_v13 = vpop.permute.xlu0 %964  ;;  %v1174_v46 = vmul.f32 %v1156_v33, %v7586_v12 }
  0xcd   : > { %10502 = vst [vmem:[#allocation28_spill] sm:$0xff] %v7588_v13  ;;  %v1194_v48 = vadd.f32 %v1178_v39, %v1027_v43  ;;  %v999_v1 = vmul.f32 %v989_v30, %v7588_v13 }
  0xce   : > { %v1190_v54 = vadd.f32 %v1174_v46, %v1023_v49  ;;  %v1019_v46 = vadd.f32 %v1003_v35, %v836_v36 }
  0xcf   : > { %v7590_v15 = vpop.permute.xlu1 %797 }
  0xd0   : > { %v7592_v17 = vpop.permute.xlu0 %1274 }
  0xd3   : > { %v7594_v18 = vpop.permute.xlu1 %1136 }
  0xd4   : > { %v7602_v23 = vpop.permute.xlu0 %1308  ;;  %v1170_v42 = vmul.f32 %v1156_v33, %v7594_v18 }
  0xd5   : > { %10503 = vst [vmem:[#allocation29_spill] sm:$0xff] %v7602_v23 }
  0xd7   : > { %v7609_v31 = vpop.permute.xlu1 %1276 }
  0xd8   : > { %10504 = vst [vmem:[#allocation30_spill] sm:$0xff] %v7609_v31  ;;  %v1283_v32 = vsel %vm1282_vm11, %v7592_v17, %v7609_v31  ;;  %v7615_v34 = vpop.permute.xlu0 %1131 }
  0xd9   : > { %v1323_v37 = vrot.slane %v1283_v32, %v7375_v8 }
  0xdb   : > { %v7620_v38 = vpop.permute.xlu1 %1386  ;;  %v1345_v44 = vmul.f32 %v1323_v37, %v7584_v11  ;;  %v1341_v50 = vmul.f32 %v1323_v37, %v7602_v23 }
  0xdc   : > { %v7623_v40 = vpop.permute.xlu0 %1381  ;;  %v1406_v51 = vmul.f32 %v7620_v38, %v7412_v21 }
  0xdd   : > { %v1361_v53 = vadd.f32 %v1345_v44, %v1194_v48  ;;  %v1402_v19 = vmul.f32 %v7623_v40, %v7412_v21  ;;  %v1357_v20 = vadd.f32 %v1341_v50, %v1190_v54  ;;  %v832_v50 = vmul.f32 %v822_v29, %v7590_v15 }
  0xde   : > { %v1186_v54 = vadd.f32 %v1170_v42, %v1019_v46 }
  0xdf   : > { %v7628_v45 = vpop.permute.xlu1 %1303  ;;  %v1422_v26 = vadd.f32 %v1406_v51, %v1361_v53  ;;  %v1418_v43 = vadd.f32 %v1402_v19, %v1357_v20  ;;  %v1166_v19 = vmul.f32 %v1156_v33, %v7615_v34  ;;  %v1015_v29 = vadd.f32 %v999_v1, %v832_v50 }
  0xe0   : > { %10505 = vst [vmem:[#allocation31_spill] sm:$0xff] %v7628_v45  ;;  %v7631_v47 = vpop.permute.xlu0 %1376  ;;  %v1337_v48 = vmul.f32 %v1323_v37, %v7628_v45 }
  0xe1   : > { %v1398_v36 = vmul.f32 %v7631_v47, %v7412_v21  ;;  %v1182_v46 = vadd.f32 %v1166_v19, %v1015_v29 }
  0xe2   : > { %v1353_v35 = vadd.f32 %v1337_v48, %v1186_v54 }
  0xe3   : > { %v7636_v52 = vpop.permute.xlu1 %1298 }
  0xe4   : > { %v7638_v55 = vpop.permute.xlu0 %1371  ;;  %v1414_v3 = vadd.f32 %v1398_v36, %v1353_v35 }
  0xe5   : > { %v1394_v1 = vmul.f32 %v7638_v55, %v7412_v21 }
  0xe7   : > { %v7642_v32 = vpop.permute.xlu1 %1486 }
  0xe8   : > { %v1502_v39 = vmul.f32 %v7642_v32, %v1422_v26  ;;  %v7647_v41 = vpop.permute.xlu0 %1526  ;;  %v7658_v26 = vstv %s1545_s20 }
  0xea   : > { %v1542_v51 = vadd.f32 %v7647_v41, %v1502_v39  ;;  %v1333_v39 = vmul.f32 %v1323_v37, %v7636_v52 }
  0xeb   : > { %v7650_v44 = vpop.permute.xlu1 %1481 }
  0xec   : > { %v1498_v49 = vmul.f32 %v7650_v44, %v1418_v43  ;;  %v7656_v53 = vpop.permute.xlu0 %1521  ;;  %v1576_v22 = vmul.f32 %v7658_v26, %v1542_v51  ;;  %vm1559_vm12 = vcmp.gt.f32.partialorder %v1542_v51, 0.0  ;;  %v1349_v54 = vadd.f32 %v1333_v39, %v1182_v46 }
  0xee   : > { %v1538_v43 = vadd.f32 %v7656_v53, %v1498_v49  ;;  %v1592_v37 = vsel %vm1559_vm12, %v1542_v51, %v1576_v22  ;;  %v1410_v39 = vadd.f32 %v1394_v1, %v1349_v54 }
  0xef   : > { %v7662_v20 = vpop.permute.xlu1 %1476 }
  0xf0   : > { %v7669_v42 = vpop.permute.xlu0 %1471  ;;  %v1572_v33 = vmul.f32 %v7658_v26, %v1538_v43  ;;  %vm1555_vm13 = vcmp.gt.f32.partialorder %v1538_v43, 0.0  ;;  %v1494_v50 = vmul.f32 %v7662_v20, %v1414_v3 }
  0xf2   : > { %v1588_v35 = vsel %vm1555_vm13, %v1538_v43, %v1572_v33 }
  0xf3   : > { %v7671_v30 = vpop.permute.xlu1 %1446 }
  0xf4   : > { %v1462_v48 = vmul.f32 %v7671_v30, %v7412_v21  ;;  %v7678_v49 = vpop.permute.xlu0 %1441 }
  0xf5   : > { %v1458_v19 = vmul.f32 %v7678_v49, %v7412_v21 }
  0xf6   : > { %v7681_v7 = vadd.f32 %v1592_v37, %v1462_v48 }
  0xf7   : > { %v7685_v29 = vpop.permute.xlu1 %1516  ;;  %v7690_v22 = vadd.f32 %v1588_v35, %v1458_v19  ;;  %v754_v51 = vpop.f32.mrf.mxu0  ;;  %v1490_v19 = vmul.f32 %v7669_v42, %v1410_v39 }
  0xf8   : > { %10506 = vst [vmem:[#allocation32_spill] sm:$0xff] %v7681_v7  ;;  %v1534_v36 = vadd.f32 %v7685_v29, %v1494_v50  ;;  %1908 = vrot.lane.b32.xlu1 %v7681_v7, %s7183_s13  ;;  %v936_v46 = vpop.f32.mrf.mxu1  ;;  %v790_v48 = vsel %vm680_vm6, %v754_v51, %v7560_v57  ;;  %v7697_v33 = vpop.permute.xlu0 %1436 }
  0xf9   : > { %10507 = vst [vmem:[#allocation33_spill] sm:$0xff] %v7690_v22  ;;  %v956_v43 = vsel %vm948_vm9, %v936_v46, %v7570_v62  ;;  %v818_v37 = vrot.slane %v790_v48, %v7375_v8  ;;  %v6900_v54 = vpop.f32.mrf.mxu0  ;;  %v1454_v35 = vmul.f32 %v7697_v33, %v7412_v21 }
  0xfa   : > { %vm1551_vm14 = vcmp.gt.f32.partialorder %v1534_v36, 0.0  ;;  %v1568_v3 = vmul.f32 %v7658_v26, %v1534_v36  ;;  %v985_v50 = vrot.slane %v956_v43, %v7375_v8  ;;  %v6905_v1 = vpop.f32.mrf.mxu1 }
  0xfb   : > { %v7704_v27 = vpop.permute.xlu1 %1511  ;;  %v831_v57 = vmul.f32 %v818_v37, %v7590_v15  ;;  %v835_v62 = vmul.f32 %v818_v37, %v7578_v6  ;;  %v839_v51 = vmul.f32 %v818_v37, %v7566_v60  ;;  %v843_v46 = vmul.f32 %v818_v37, %v7558_v56  ;;  %v1103_v48 = vpop.f32.mrf.mxu0 }
  0xfc   : > { %v1584_v28 = vsel %vm1551_vm14, %v1534_v36, %v1568_v3  ;;  %1900 = vrot.lane.b32.xlu1 %v7690_v22, %s7183_s13  ;;  %v1270_v43 = vpop.f32.mrf.mxu1  ;;  %v998_v39 = vmul.f32 %v985_v50, %v7588_v13  ;;  %v1002_v54 = vmul.f32 %v985_v50, %v7576_v2  ;;  %v1006_v36 = vmul.f32 %v985_v50, %v7574_v0 }
  0xfd   : > { %v1010_v3 = vmul.f32 %v985_v50, %v7562_v58  ;;  %v7716_v1 = vadd.f32 %v1584_v28, %v1454_v35  ;;  %v1530_v25 = vadd.f32 %v7704_v27, %v1490_v19  ;;  %v1123_v24 = vsel %vm1115_vm10, %v1103_v48, %v7582_v10  ;;  %v6910_v31 = vpop.f32.mrf.mxu0 }
  0xfe   : > { %v1290_v37 = vsel %vm1282_vm11, %v1270_v43, %v7592_v17  ;;  %v6915_v9 = vpop.f32.mrf.mxu1  ;;  %v1014_v56 = vadd.f32 %v998_v39, %v831_v57  ;;  %v1018_v2 = vadd.f32 %v1002_v54, %v835_v62  ;;  %v1022_v60 = vadd.f32 %v1006_v36, %v839_v51 }
  0xff   : > { %10508 = vst [vmem:[#allocation34_spill] sm:$0xff] %v7716_v1  ;;  %v7723_v13 = vpop.permute.xlu1 %1431  ;;  %v1152_v0 = vrot.slane %v1123_v24, %v7375_v8  ;;  %v1319_v28 = vrot.slane %v1290_v37, %v7375_v8  ;;  %v1026_v50 = vadd.f32 %v1010_v3, %v843_v46  ;;  %vm1547_vm15 = vcmp.gt.f32.partialorder %v1530_v25, 0.0 }
 0x100   : > { %10509 = vst [vmem:[#allocation35_spill] sm:$0xff] %v7723_v13  ;;  %1892 = vrot.lane.b32.xlu1 %v7716_v1, %s7183_s13  ;;  %v1564_v10 = vmul.f32 %v7658_v26, %v1530_v25  ;;  %v1450_v17 = vmul.f32 %v7723_v13, %v7412_v21  ;;  %v1405_v39 = vmul.f32 %v7620_v38, %v7396_v16 }
 0x101   : > { %v1165_v9 = vmul.f32 %v1152_v0, %v7615_v34  ;;  %v1169_v31 = vmul.f32 %v1152_v0, %v7594_v18  ;;  %v1173_v19 = vmul.f32 %v1152_v0, %v7586_v12  ;;  %v1177_v24 = vmul.f32 %v1152_v0, %v7572_v63 }
 0x102   : > { %v1332_v35 = vmul.f32 %v1319_v28, %v7636_v52  ;;  %v1336_v57 = vmul.f32 %v1319_v28, %v7628_v45  ;;  %v1340_v62 = vmul.f32 %v1319_v28, %v7602_v23  ;;  %v1344_v51 = vmul.f32 %v1319_v28, %v7584_v11 }
 0x103   : > { %v1181_v46 = vadd.f32 %v1165_v9, %v1014_v56  ;;  %v1185_v48 = vadd.f32 %v1169_v31, %v1018_v2  ;;  %v1189_v43 = vadd.f32 %v1173_v19, %v1022_v60  ;;  %v1193_v21 = vadd.f32 %v1177_v24, %v1026_v50 }
 0x104   : > { %v1401_v54 = vmul.f32 %v7623_v40, %v7396_v16  ;;  %v1397_v0 = vmul.f32 %v7631_v47, %v7396_v16  ;;  %v1580_v36 = vsel %vm1547_vm15, %v1530_v25, %v1564_v10  ;;  %v1393_v56 = vmul.f32 %v7638_v55, %v7396_v16 }
 0x105   : > { %v1348_v3 = vadd.f32 %v1332_v35, %v1181_v46  ;;  %v1352_v37 = vadd.f32 %v1336_v57, %v1185_v48  ;;  %v1356_v23 = vadd.f32 %v1340_v62, %v1189_v43  ;;  %v1360_v45 = vadd.f32 %v1344_v51, %v1193_v21 }
 0x106   : > { %v7747_v28 = vadd.f32 %v1580_v36, %v1450_v17  ;;  %v1461_v35 = vmul.f32 %v7671_v30, %v7396_v16  ;;  %v1457_v21 = vmul.f32 %v7678_v49, %v7396_v16  ;;  %v773_v36 = vsub.s32 3, %v7352_v4 }
 0x107   : > { %v1413_v60 = vadd.f32 %v1397_v0, %v1352_v37  ;;  %v1417_v2 = vadd.f32 %v1401_v54, %v1356_v23  ;;  %v1421_v50 = vadd.f32 %v1405_v39, %v1360_v45  ;;  %v1409_v9 = vadd.f32 %v1393_v56, %v1348_v3 }
 0x108   : > { %10510 = vst [vmem:[#allocation36_spill] sm:$0xff] %v7747_v28  ;;  %1884 = vrot.lane.b32.xlu1 %v7747_v28, %s7183_s13  ;;  %v1453_v3 = vmul.f32 %v7697_v33, %v7396_v16 }
 0x109   : > { %v1493_v31 = vmul.f32 %v7662_v20, %v1413_v60  ;;  %v1497_v25 = vmul.f32 %v7650_v44, %v1417_v2  ;;  %v1501_v10 = vmul.f32 %v7642_v32, %v1421_v50  ;;  %v1489_v23 = vmul.f32 %v7669_v42, %v1409_v9 }
 0x10a   : > { %v7791_v60 = vrot.slane %v7390_v14, %v773_v36  ;;  %v1449_v2 = vmul.f32 %v7723_v13, %v7396_v16  ;;  %v769_v16 = vsub.s32 2, %v7352_v4 }
 0x10b   : > { %v1537_v19 = vadd.f32 %v7656_v53, %v1497_v25  ;;  %v1541_v17 = vadd.f32 %v7647_v41, %v1501_v10  ;;  %v1533_v45 = vadd.f32 %v7685_v29, %v1493_v31  ;;  %v1529_v46 = vadd.f32 %v7704_v27, %v1489_v23 }
 0x10c   : > { %1755 = vrot.lane.b32.xlu1 %v7681_v7, %s7184_s22  ;;  %v7819_v9 = vrot.slane %v7390_v14, %v769_v16  ;;  %v6928_v14 = vpop.f32.mrf.mxu1 }
 0x10d   : > { %vm1558_vm0 = vcmp.gt.f32.partialorder %v1541_v17, 0.0  ;;  %v1575_v24 = vmul.f32 %v7658_v26, %v1541_v17  ;;  %vm1554_vm1 = vcmp.gt.f32.partialorder %v1537_v19, 0.0  ;;  %v1571_v57 = vmul.f32 %v7658_v26, %v1537_v19 }
 0x10e   : > { %v1567_v43 = vmul.f32 %v7658_v26, %v1533_v45  ;;  %vm1550_vm2 = vcmp.gt.f32.partialorder %v1533_v45, 0.0  ;;  %v1563_v54 = vmul.f32 %v7658_v26, %v1529_v46  ;;  %vm1546_vm4 = vcmp.gt.f32.partialorder %v1529_v46, 0.0 }
 0x10f   : > { %v1591_v62 = vsel %vm1558_vm0, %v1541_v17, %v1575_v24  ;;  %v1587_v48 = vsel %vm1554_vm1, %v1537_v19, %v1571_v57  ;;  %v1863_v19 = vpop.f32.mrf.mxu1 }
 0x110   : > { %1747 = vrot.lane.b32.xlu1 %v7690_v22, %s7184_s22  ;;  %v7768_v51 = vadd.f32 %v1591_v62, %v1461_v35  ;;  %v7778_v39 = vadd.f32 %v1587_v48, %v1457_v21  ;;  %v1583_v0 = vsel %vm1550_vm2, %v1533_v45, %v1567_v43  ;;  %v1579_v56 = vsel %vm1546_vm4, %v1529_v46, %v1563_v54  ;;  %v6920_v21 = vpop.f32.mrf.mxu0 }
 0x111   : > { %v7788_v37 = vadd.f32 %v1583_v0, %v1453_v3  ;;  %v7797_v50 = vadd.f32 %v1579_v56, %v1449_v2  ;;  %v6931_v23 = vpop.f32.mrf.mxu1 }
 0x112   : > { %10511 = vst [vmem:[#allocation37_spill] sm:$0xff] %v7768_v51  ;;  %1906 = vrot.lane.b32.xlu0 %v7768_v51, %s7183_s13  ;;  %10512 = vst [vmem:[#allocation38_spill] sm:$0xff] %v7778_v39  ;;  %v1694_v56 = vpop.f32.mrf.mxu0 }
 0x113   : > { %10513 = vst [vmem:[#allocation39_spill] sm:$0xff] %v7788_v37  ;;  %10514 = vst [vmem:[#allocation40_spill] sm:$0xff] %v7797_v50  ;;  %v1873_v62 = vpop.f32.mrf.mxu1 }
 0x114   : > { %1739 = vrot.lane.b32.xlu1 %v7716_v1, %s7184_s22 }
 0x116   : > { %1898 = vrot.lane.b32.xlu0 %v7778_v39, %s7183_s13 }
 0x118   : > { %1731 = vrot.lane.b32.xlu1 %v7747_v28, %s7184_s22 }
 0x11a   : > { %1890 = vrot.lane.b32.xlu0 %v7788_v37, %s7183_s13 }
 0x11c   : > { %781 = vrot.lane.b32.xlu1 %v7791_v60, %s10515_s16 }
 0x11e   : > { %1882 = vrot.lane.b32.xlu0 %v7797_v50, %s7183_s13 }
 0x120   : > { %946 = vrot.lane.b32.xlu1 %v7791_v60, %s10516_s27 }
 0x122   : > { %1753 = vrot.lane.b32.xlu0 %v7768_v51, %s7184_s22 }
 0x124   : > { %1113 = vrot.lane.b32.xlu1 %v7791_v60, %s10517_s24 }
 0x126   : > { %1745 = vrot.lane.b32.xlu0 %v7778_v39, %s7184_s22 }
 0x128   : > { %1280 = vrot.lane.b32.xlu1 %v7791_v60, %s10518_s25 }
 0x12a   : > { %1737 = vrot.lane.b32.xlu0 %v7788_v37, %s7184_s22 }
 0x12e   : > { %1729 = vrot.lane.b32.xlu0 %v7797_v50, %s7184_s22 }
 0x132   : > { %779 = vrot.lane.b32.xlu0 %v7819_v9, %s10515_s16 }
 0x136   : > { %944 = vrot.lane.b32.xlu0 %v7819_v9, %s10516_s27 }
 0x13a   : > { %1111 = vrot.lane.b32.xlu0 %v7819_v9, %s10517_s24 }
 0x13e   : > { %1278 = vrot.lane.b32.xlu0 %v7819_v9, %s10518_s25  ;;  %s638_s25 = scalar_lea.vmem %s10350_s7, %s7530_s26  ;;  %s612_s26 = sand.u32 1, %s7156_s19  }
 0x13f   : > { %s6548_s20 = sshll.u32 %s612_s26, 2 }
 0x16a   : > { %v7829_v31 = vpop.permute.xlu1 %1908 }
 0x16b   : > { %10519 = vst [vmem:[#allocation41_spill] sm:$0xff] %v7829_v31 }
 0x16e   : > { %v7831_v25 = vpop.permute.xlu1 %1900 }
 0x16f   : > { %10520 = vst [vmem:[#allocation42_spill] sm:$0xff] %v7831_v25 }
 0x172   : > { %v7833_v10 = vpop.permute.xlu1 %1892 }
 0x173   : > { %10521 = vst [vmem:[#allocation43_spill] sm:$0xff] %v7833_v10 }
 0x17a   : > { %v7835_v17 = vpop.permute.xlu1 %1884 }
 0x17b   : > { %10522 = vst [vmem:[#allocation44_spill] sm:$0xff] %v7835_v17 }
 0x17e   : > { %v7840_v57 = vpop.permute.xlu1 %1755 }
 0x17f   : > { %10523 = vst [vmem:[#allocation45_spill] sm:$0xff] %v7840_v57 }
 0x182   : > { %v7845_v54 = vpop.permute.xlu1 %1747 }
 0x183   : > { %10524 = vst [vmem:[#allocation46_spill] sm:$0xff] %v7845_v54 }
 0x184   : > { %v1907_v45 = vpop.permute.xlu0 %1906 }
 0x185   : > { %v1924_v24 = vsel %vm1914_vm5, %v1907_v45, %v7829_v31  ;;  %v1946_v35 = vsel %vm1914_vm5, %v6931_v23, %v1907_v45  ;;  %v7856_v45 = vld [vmem:[%s10348_s5 + $0x20] sm:$0xff] }
 0x186   : > { %1989 = vmatprep.subr.mxu0 %v1924_v24  ;;  %10525 = vst [vmem:[#allocation47_spill] sm:$0xff] %v7856_v45  ;;  %v7858_v24 = vpop.permute.xlu1 %1739 }
 0x187   : > { %1990 = vmatpush1.msra.mxu0 %v1946_v35  ;;  %10526 = vst [vmem:[#allocation48_spill] sm:$0xff] %v7858_v24  ;;  %v6923_v35 = vpop.f32.mrf.mxu0 }
 0x188   : > { %v1899_v46 = vpop.permute.xlu0 %1898 }
 0x189   : > { %v1921_v48 = vsel %vm1914_vm5, %v1899_v46, %v7831_v25  ;;  %v1945_v43 = vsel %vm1914_vm5, %v1873_v62, %v1899_v46  ;;  %v10527_v46 = vmov 0.0   ;;  %v7991_v25 = vld [vmem:[%s10348_s5 + $0x18] sm:$0xff] }
 0x18a   : > { %1991 = vmatprep.subr.mxu0 %v1921_v48  ;;  %v7869_v48 = vld [vmem:[%s10348_s5 + $0x28] sm:$0xff] }
 0x18b   : > { %1992 = vmatpush1.msra.mxu0 %v1945_v43  ;;  %10528 = vst [vmem:[#allocation49_spill] sm:$0xff] %v7869_v48  ;;  %v1704_v43 = vpop.f32.mrf.mxu0 }
 0x18c   : > { %v1891_v0 = vpop.permute.xlu0 %1890 }
 0x18d   : > { %v1918_v36 = vsel %vm1914_vm5, %v1891_v0, %v7833_v10  ;;  %v1944_v3 = vsel %vm1914_vm5, %v6928_v14, %v1891_v0  ;;  %v7871_v0 = vpop.permute.xlu1 %1731  ;;  %v10541_v10 = vld [vmem:[#allocation25_spill] sm:$0xff] }
 0x18e   : > { %1993 = vmatprep.subr.mxu0 %v1918_v36  ;;  %10529 = vst [vmem:[#allocation50_spill] sm:$0xff] %v7871_v0 }
 0x18f   : > { %1994 = vmatpush1.msra.mxu0 %v1944_v3 }
 0x190   : > { %v1883_v2 = vpop.permute.xlu0 %1882 }
 0x191   : > { %v1915_v16 = vsel %vm1914_vm5, %v1883_v2, %v7835_v17  ;;  %v1943_v23 = vsel %vm1914_vm5, %v1863_v19, %v1883_v2 }
 0x192   : > { %1995 = vmatprep.subr.mxu0 %v1915_v16  ;;  %v7882_v16 = vld [vmem:[%s10348_s5 + $0x30] sm:$0xff] }
 0x193   : > { %1996 = vmatpush1.msra.mxu0 %v1943_v23  ;;  %10530 = vst [vmem:[#allocation51_spill] sm:$0xff] %v7882_v16 }
 0x194   : > { %v1754_v14 = vpop.permute.xlu0 %1753  ;;  %6604 = vmatmul.mubr.msk.f32.vlgmr.msra.gmra.mxu0 %vm1952_vm7, %v7856_v45 }
 0x195   : > { %v1770_v62 = vsel %vm661_vm8, %v1754_v14, %v7840_v57  ;;  %2035 = vmatprep.mubr.f32.mxu0 %v10527_v46  ;;  %v1792_v19 = vsel %vm661_vm8, %v6923_v35, %v1754_v14  ;;  %v782_v35 = vpop.permute.xlu1 %781  ;;  %v10539_v57 = vld [vmem:[#allocation28_spill] sm:$0xff] }
 0x196   : > { %2179 = vmatprep.subr.mxu0 %v1770_v62 }
 0x197   : > { %2180 = vmatpush1.msra.mxu0 %v1792_v19  ;;  %v7893_v19 = vld [vmem:[%s10348_s5 + $0x38] sm:$0xff] }
 0x198   : > { %v1746_v36 = vpop.permute.xlu0 %1745  ;;  %6605 = vmatmul.mubr.msk.f32.gmra.mxu0 %vm1952_vm7, %v7869_v48  ;;  %10531 = vst [vmem:[#allocation52_spill] sm:$0xff] %v7893_v19  ;;  %v10537_v48 = vld [vmem:[#allocation24_spill] sm:$0xff] }
 0x199   : > { %v1767_v3 = vsel %vm661_vm8, %v1746_v36, %v7845_v54  ;;  %2041 = vmatprep.mubr.f32.mxu0 %v10527_v46  ;;  %v1791_v2 = vsel %vm661_vm8, %v1704_v43, %v1746_v36  ;;  %v7896_v43 = vadd.s32 4, %v7355_v5  ;;  %v10538_v54 = vld [vmem:[#allocation23_spill] sm:$0xff] }
 0x19a   : > { %2181 = vmatprep.subr.mxu0 %v1767_v3 }
 0x19b   : > { %2182 = vmatpush1.msra.mxu0 %v1791_v2  ;;  %10532 = vst [vmem:[#allocation53_spill] sm:$0xff] %v7896_v43  ;;  %vm2334_vm12 = vcmp.eq.s32.totalorder %v7352_v4, %v7896_v43  ;;  %v7943_v43 = vmul.f32 %v7623_v40, %v7819_v9 }
 0x19c   : > { %v1738_v23 = vpop.permute.xlu0 %1737  ;;  %6606 = vmatmul.mubr.msk.f32.gmra.mxu0 %vm1952_vm7, %v7882_v16 }
 0x19d   : > { %v1764_v14 = vsel %vm661_vm8, %v1738_v23, %v7858_v24  ;;  %2047 = vmatprep.mubr.f32.mxu0 %v10527_v46  ;;  %v1790_v62 = vsel %vm661_vm8, %v6920_v21, %v1738_v23  ;;  %v7907_v21 = vld [vmem:[%s10348_s5] sm:$0xff]  ;;  %v947_v23 = vpop.permute.xlu1 %946 }
 0x19e   : > { %2183 = vmatprep.subr.mxu0 %v1764_v14  ;;  %10533 = vst [vmem:[#allocation54_spill] sm:$0xff] %v7907_v21 }
 0x19f   : > { %2184 = vmatpush1.msra.mxu0 %v1790_v62  ;;  %v10534_v62 = vmov 1.0  }
 0x1a0   : > { %v1730_v36 = vpop.permute.xlu0 %1729  ;;  %6607 = vmatmul.mubr.msk.f32.gmra.mxu0 %vm1952_vm7, %v7893_v19  ;;  %v7939_v19 = vmul.f32 %v7620_v38, %v7791_v60 }
 0x1a1   : > { %v1761_v3 = vsel %vm661_vm8, %v1730_v36, %v7871_v0  ;;  %v1789_v2 = vsel %vm661_vm8, %v1694_v56, %v1730_v36  ;;  %2219 = vmatprep.mubr.f32.mxu0 %v10527_v46  ;;  %v7923_v36 = vld [vmem:[%s10348_s5 + $0x8] sm:$0xff]  ;;  %v7973_v0 = vmul.f32 %v7638_v55, %v7791_v60 }
 0x1a2   : > { %2185 = vmatprep.subr.mxu0 %v1761_v3  ;;  %10535 = vst [vmem:[#allocation55_spill] sm:$0xff] %v7923_v36 }
 0x1a3   : > { %2186 = vmatpush1.msra.mxu0 %v1789_v2  ;;  %v7932_v2 = vmul.f32 %v7620_v38, %v7819_v9  ;;  %v7961_v38 = vmul.f32 %v7631_v47, %v7791_v60 }
 0x1a4   : > { %v780_v14 = vpop.permute.xlu0 %779  ;;  %6612 = vmatmul.mubr.msk.f32.vlgmr.msra.gmra.mxu0 %vm1952_vm7, %v7907_v21  ;;  %6932 = vmatprep.subr.msk.mxu0 %vm2334_vm12, %v10534_v62  ;;  %v1114_v21 = vpop.permute.xlu1 %1113 }
 0x1a5   : > { %v784_v56 = vsel %vm680_vm6, %v7564_v59, %v780_v14  ;;  %2225 = vmatprep.mubr.f32.mxu0 %v10527_v46  ;;  %6933 = vmatpush3.msk.msra.mxu0 %vm2334_vm12, %v10534_v62  ;;  %v785_v3 = vsel %vm680_vm6, %v780_v14, %v782_v35  ;;  %v7947_v35 = vmul.f32 %v7623_v40, %v7791_v60 }
 0x1a6   : > { %v826_v59 = vrot.slane %v784_v56, %v7375_v8  ;;  %v7951_v14 = vmul.f32 %v7631_v47, %v7819_v9  ;;  %v7957_v56 = vld [vmem:[%s10348_s5 + $0x10] sm:$0xff]  ;;  %v830_v62 = vrot.slane %v785_v3, %v7375_v8 }
 0x1a7   : > { %10536 = vst [vmem:[#allocation56_spill] sm:$0xff] %v7957_v56 }
 0x1a8   : > { %v945_v5 = vpop.permute.xlu0 %944  ;;  %6613 = vmatmul.mubr.msk.f32.gmra.mxu0 %vm1952_vm7, %v7923_v36  ;;  %v7969_v36 = vmul.f32 %v7638_v55, %v7819_v9  ;;  %v833_v24 = vmul.f32 %v826_v59, %v7590_v15  ;;  %v837_v3 = vmul.f32 %v826_v59, %v7578_v6  ;;  %v10540_v55 = vld [vmem:[#allocation26_spill] sm:$0xff]  ;;  %v838_v31 = vmul.f32 %v830_v62, %v7578_v6  ;;  %v1281_v50 = vpop.permute.xlu1 %1280  ;;  %v10542_v6 = vld [vmem:[#allocation27_spill] sm:$0xff] }
 0x1a9   : > { %2231 = vmatprep.mubr.f32.mxu0 %v10527_v46  ;;  %v950_v40 = vsel %vm948_vm9, %v7568_v61, %v945_v5  ;;  %v951_v4 = vsel %vm948_vm9, %v945_v5, %v947_v23  ;;  %v841_v61 = vmul.f32 %v826_v59, %v10537_v48  ;;  %v845_v5 = vmul.f32 %v826_v59, %v10538_v54 }
 0x1aa   : > { %v993_v16 = vrot.slane %v950_v40, %v7375_v8  ;;  %v997_v47 = vrot.slane %v951_v4, %v7375_v8  ;;  %v834_v59 = vmul.f32 %v830_v62, %v7590_v15  ;;  %v842_v1 = vmul.f32 %v830_v62, %v10537_v48  ;;  %v10543_v48 = vld [vmem:[#allocation30_spill] sm:$0xff] }
 0x1ac   : > { %v1112_v23 = vpop.permute.xlu0 %1111  ;;  %6614 = vmatmul.mubr.msk.f32.gmra.mxu0 %vm1952_vm7, %v7957_v56  ;;  %v1000_v45 = vmul.f32 %v993_v16, %v10539_v57  ;;  %v1004_v17 = vmul.f32 %v993_v16, %v10540_v55  ;;  %v1008_v40 = vmul.f32 %v993_v16, %v10541_v10  ;;  %v1012_v4 = vmul.f32 %v993_v16, %v7562_v58 }
 0x1ad   : > { %2237 = vmatprep.mubr.f32.mxu0 %v10527_v46  ;;  %v1001_v56 = vmul.f32 %v997_v47, %v10539_v57  ;;  %v1005_v28 = vmul.f32 %v997_v47, %v10540_v55  ;;  %v846_v16 = vmul.f32 %v830_v62, %v10538_v54  ;;  %v1009_v37 = vmul.f32 %v997_v47, %v10541_v10  ;;  %v10544_v62 = vld [vmem:[#allocation19_spill] sm:$0xff] }
 0x1ae   : > { %v1013_v22 = vmul.f32 %v997_v47, %v7562_v58  ;;  %v1016_v39 = vadd.f32 %v1000_v45, %v833_v24  ;;  %v1020_v7 = vadd.f32 %v1004_v17, %v837_v3  ;;  %v1024_v51 = vadd.f32 %v1008_v40, %v841_v61 }
 0x1af   : > { %v1028_v13 = vadd.f32 %v1012_v4, %v845_v5  ;;  %v1117_v57 = vsel %vm1115_vm10, %v10542_v6, %v1112_v23  ;;  %v1118_v55 = vsel %vm1115_vm10, %v1112_v23, %v1114_v21  ;;  %v1017_v58 = vadd.f32 %v1001_v56, %v834_v59  ;;  %v10545_v56 = vld [vmem:[#allocation20_spill] sm:$0xff] }
 0x1b0   : > { %v1279_v15 = vpop.permute.xlu0 %1278  ;;  %6615 = vmatmul.mubr.msk.f32.gmra.mxu0 %vm1952_vm7, %v7991_v25  ;;  %v1021_v17 = vadd.f32 %v1005_v28, %v838_v31  ;;  %v1160_v45 = vrot.slane %v1117_v57, %v7375_v8  ;;  %v1164_v24 = vrot.slane %v1118_v55, %v7375_v8  ;;  %v1025_v47 = vadd.f32 %v1009_v37, %v842_v1 }
 0x1b1   : > { %v1284_v54 = vsel %vm1282_vm11, %v10543_v48, %v1279_v15  ;;  %v1285_v10 = vsel %vm1282_vm11, %v1279_v15, %v1281_v50  ;;  %6934 = vmatprep.mubr.msk.f32.mxu0 %vm661_vm8, %v10544_v62  ;;  %v1029_v3 = vadd.f32 %v1013_v22, %v846_v16 }
 0x1b2   : > { %v1327_v61 = vrot.slane %v1284_v54, %v7375_v8  ;;  %v1331_v21 = vrot.slane %v1285_v10, %v7375_v8  ;;  %v1167_v5 = vmul.f32 %v1160_v45, %v7615_v34  ;;  %v1171_v23 = vmul.f32 %v1160_v45, %v7594_v18  ;;  %v10546_v8 = vld [vmem:[#allocation21_spill] sm:$0xff] }
 0x1b3   : > { %v1175_v50 = vmul.f32 %v1160_v45, %v7586_v12  ;;  %v1179_v40 = vmul.f32 %v1160_v45, %v7572_v63  ;;  %v1168_v28 = vmul.f32 %v1164_v24, %v7615_v34  ;;  %v1172_v1 = vmul.f32 %v1164_v24, %v7594_v18  ;;  %v10547_v34 = vld [vmem:[#allocation31_spill] sm:$0xff]  ;;  %v10548_v18 = vld [vmem:[#allocation29_spill] sm:$0xff] }
 0x1b4   : > { %6935 = vmatmul.mubr.msk.f32.vlgmr.msra.gmra.mxu0 %vm661_vm8, %v10545_v56  ;;  %v1176_v22 = vmul.f32 %v1164_v24, %v7586_v12  ;;  %v1180_v37 = vmul.f32 %v1164_v24, %v7572_v63  ;;  %v1183_v31 = vadd.f32 %v1167_v5, %v1016_v39  ;;  %v1187_v4 = vadd.f32 %v1171_v23, %v1020_v7  ;;  %v10549_v63 = vld [vmem:[#allocation22_spill] sm:$0xff] }
 0x1b5   : > { %6937 = vmatprep.mubr.msk.f32.mxu0 %vm661_vm8, %v10546_v8  ;;  %v1191_v59 = vadd.f32 %v1175_v50, %v1024_v51  ;;  %v1195_v16 = vadd.f32 %v1179_v40, %v1028_v13  ;;  %v1184_v15 = vadd.f32 %v1168_v28, %v1017_v58  ;;  %v1188_v6 = vadd.f32 %v1172_v1, %v1021_v17 }
 0x1b6   : > { %v1192_v57 = vadd.f32 %v1176_v22, %v1025_v47  ;;  %v1196_v55 = vadd.f32 %v1180_v37, %v1029_v3  ;;  %v1334_v48 = vmul.f32 %v1327_v61, %v7636_v52  ;;  %v1338_v54 = vmul.f32 %v1327_v61, %v10547_v34 }
 0x1b7   : > { %v1342_v10 = vmul.f32 %v1327_v61, %v10548_v18  ;;  %v1346_v12 = vmul.f32 %v1327_v61, %v7584_v11  ;;  %v1335_v39 = vmul.f32 %v1331_v21, %v7636_v52  ;;  %v1339_v7 = vmul.f32 %v1331_v21, %v10547_v34 }
 0x1b8   : > { %6938 = vmatmul.mubr.msk.f32.gmra.mxu0 %vm661_vm8, %v10549_v63  ;;  %v1343_v13 = vmul.f32 %v1331_v21, %v10548_v18  ;;  %v1347_v51 = vmul.f32 %v1331_v21, %v7584_v11  ;;  %v1350_v62 = vadd.f32 %v1334_v48, %v1183_v31  ;;  %v1354_v58 = vadd.f32 %v1338_v54, %v1187_v4 }
 0x1b9   : > { %2656 = vmatprep.mubr.f32.mxu0 %v10527_v46  ;;  %v1358_v17 = vadd.f32 %v1342_v10, %v1191_v59  ;;  %v1362_v45 = vadd.f32 %v1346_v12, %v1195_v16  ;;  %v1351_v24 = vadd.f32 %v1335_v39, %v1184_v15  ;;  %v1355_v47 = vadd.f32 %v1339_v7, %v1188_v6 }
 0x1ba   : > { %v1359_v3 = vadd.f32 %v1343_v13, %v1192_v57  ;;  %v1363_v61 = vadd.f32 %v1347_v51, %v1196_v55  ;;  %v1411_v5 = vadd.f32 %v7969_v36, %v1350_v62  ;;  %v1415_v52 = vadd.f32 %v7951_v14, %v1354_v58  ;;  %v10550_v58 = vld [vmem:[#allocation35_spill] sm:$0xff] }
 0x1bb   : > { %v1419_v23 = vadd.f32 %v7943_v43, %v1358_v17  ;;  %v1423_v50 = vadd.f32 %v7932_v2, %v1362_v45  ;;  %v1412_v11 = vadd.f32 %v7973_v0, %v1351_v24  ;;  %v1416_v21 = vadd.f32 %v7961_v38, %v1355_v47  ;;  %v10553_v47 = vld [vmem:[#allocation38_spill] sm:$0xff] }
 0x1bc   : > { %v1420_v40 = vadd.f32 %v7947_v35, %v1359_v3  ;;  %v1424_v56 = vadd.f32 %v7939_v19, %v1363_v61  ;;  %v1495_v28 = vmul.f32 %v7662_v20, %v1415_v52  ;;  %v1463_v0 = vmul.f32 %v7671_v30, %v7819_v9  ;;  %v10554_v3 = vld [vmem:[#allocation33_spill] sm:$0xff]  ;;  %v10555_v61 = vld [vmem:[#allocation39_spill] sm:$0xff]  ;;  %v10557_v52 = vld [vmem:[#allocation40_spill] sm:$0xff] }
 0x1bd   : > { %v1499_v1 = vmul.f32 %v7650_v44, %v1419_v23  ;;  %v1503_v36 = vmul.f32 %v7642_v32, %v1423_v50  ;;  %v1496_v14 = vmul.f32 %v7662_v20, %v1416_v21  ;;  %v1491_v38 = vmul.f32 %v7669_v42, %v1411_v5  ;;  %v10556_v5 = vld [vmem:[#allocation34_spill] sm:$0xff]  ;;  %v10558_v23 = vld [vmem:[#allocation36_spill] sm:$0xff] }
 0x1be   : > { %v1500_v43 = vmul.f32 %v7650_v44, %v1420_v40  ;;  %v1504_v2 = vmul.f32 %v7642_v32, %v1424_v56  ;;  %v1535_v22 = vadd.f32 %v7685_v29, %v1495_v28  ;;  %v1492_v37 = vmul.f32 %v7669_v42, %v1412_v11  ;;  %v3469_v50 = vld [vmem:[%s638_s25 + $0x18] sm:$0xff]  ;;  %v3468_v11 = vld [vmem:[%s638_s25 + $0x10] sm:$0xff]  ;;  %v3467_v40 = vld [vmem:[%s638_s25 + $0x8] sm:$0xff] }
 0x1bf   : > { %v1539_v35 = vadd.f32 %v7656_v53, %v1499_v1  ;;  %v1543_v19 = vadd.f32 %v7647_v41, %v1503_v36  ;;  %v1536_v44 = vadd.f32 %v7685_v29, %v1496_v14  ;;  %v1464_v42 = vmul.f32 %v7671_v30, %v7791_v60  ;;  %v3509_v21 = vld [vmem:[%s643_s0 + $0x18] sm:$0xff]  ;;  %v3508_v56 = vld [vmem:[%s643_s0 + $0x10] sm:$0xff]  ;;  %v3466_v28 = vld [vmem:[%s638_s25] sm:$0xff]  ;;  %s6676_s25 = sld [smem:[#allocation5 + $0x1]] }
 0x1c0   : > { %v1540_v8 = vadd.f32 %v7656_v53, %v1500_v43  ;;  %v1544_v20 = vadd.f32 %v7647_v41, %v1504_v2  ;;  %v1459_v41 = vmul.f32 %v7678_v49, %v7819_v9  ;;  %v1531_v15 = vadd.f32 %v7704_v27, %v1491_v38  ;;  %v3507_v1 = vld [vmem:[%s643_s0 + $0x8] sm:$0xff]  ;;  %v3506_v36 = vld [vmem:[%s643_s0] sm:$0xff]  ;;  %v10559_v2 = vld [vmem:[#allocation41_spill] sm:$0xff]  ;;  %s7188_s0 = smov [#allocation8]  }
 0x1c1   : > { %vm1560_vm9 = vcmp.gt.f32.partialorder %v1543_v19, 0.0  ;;  %v1577_v32 = vmul.f32 %v7658_v26, %v1543_v19  ;;  %v1573_v31 = vmul.f32 %v7658_v26, %v1539_v35  ;;  %vm1556_vm13 = vcmp.gt.f32.partialorder %v1539_v35, 0.0 }
 0x1c2   : > { %vm1561_vm11 = vcmp.gt.f32.partialorder %v1544_v20, 0.0  ;;  %v1578_v4 = vmul.f32 %v7658_v26, %v1544_v20  ;;  %v1574_v59 = vmul.f32 %v7658_v26, %v1540_v8  ;;  %vm1557_vm14 = vcmp.gt.f32.partialorder %v1540_v8, 0.0 }
 0x1c3   : > { %v1593_v16 = vsel %vm1560_vm9, %v1543_v19, %v1577_v32  ;;  %v1589_v57 = vsel %vm1556_vm13, %v1539_v35, %v1573_v31  ;;  %v1569_v55 = vmul.f32 %v7658_v26, %v1535_v22  ;;  %v1532_v48 = vadd.f32 %v7704_v27, %v1492_v37  ;;  %v10561_v32 = vld [vmem:[#allocation43_spill] sm:$0xff] }
 0x1c4   : > { %v8070_v53 = vadd.f32 %v1593_v16, %v1463_v0  ;;  %v1594_v29 = vsel %vm1561_vm11, %v1544_v20, %v1578_v4  ;;  %v1590_v30 = vsel %vm1557_vm14, %v1540_v8, %v1574_v59  ;;  %vm1552_vm15 = vcmp.gt.f32.partialorder %v1535_v22, 0.0  ;;  %v10562_v16 = vld [vmem:[#allocation44_spill] sm:$0xff] }
 0x1c5   : > { %v8073_v6 = vadd.f32 %v1594_v29, %v1464_v42  ;;  %v1570_v34 = vmul.f32 %v7658_v26, %v1536_v44  ;;  %v1460_v54 = vmul.f32 %v7678_v49, %v7791_v60  ;;  %vm1553_vm0 = vcmp.gt.f32.partialorder %v1536_v44, 0.0 }
 0x1c6   : > { %1910 = vrot.lane.b32.xlu0 %v8070_v53, %s7183_s13  ;;  %v8084_v18 = vadd.f32 %v1589_v57, %v1459_v41  ;;  %v1585_v12 = vsel %vm1552_vm15, %v1535_v22, %v1569_v55  ;;  %v1565_v27 = vmul.f32 %v7658_v26, %v1531_v15  ;;  %v1455_v63 = vmul.f32 %v7697_v33, %v7819_v9  ;;  %v10560_v22 = vld [vmem:[#allocation42_spill] sm:$0xff]  ;;  %v10563_v55 = vld [vmem:[#allocation47_spill] sm:$0xff] }
 0x1c7   : > { %1912 = vrot.lane.b32.xlu1 %v8073_v6, %s7183_s13  ;;  %v8086_v10 = vadd.f32 %v1590_v30, %v1460_v54  ;;  %v1586_v39 = vsel %vm1553_vm0, %v1536_v44, %v1570_v34  ;;  %vm1548_vm1 = vcmp.gt.f32.partialorder %v1531_v15, 0.0  ;;  %v1566_v49 = vmul.f32 %v7658_v26, %v1532_v48 }
 0x1c8   : > { %v1456_v7 = vmul.f32 %v7697_v33, %v7791_v60  ;;  %vm1549_vm2 = vcmp.gt.f32.partialorder %v1532_v48, 0.0  ;;  %v8098_v13 = vadd.f32 %v1585_v12, %v1455_v63  ;;  %v1581_v62 = vsel %vm1548_vm1, %v1531_v15, %v1565_v27  ;;  %v10565_v27 = vld [vmem:[#allocation46_spill] sm:$0xff] }
 0x1c9   : > { %v1451_v17 = vmul.f32 %v10550_v58, %v7819_v9  ;;  %v1582_v45 = vsel %vm1549_vm2, %v1532_v48, %v1566_v49  ;;  %v1452_v26 = vmul.f32 %v10550_v58, %v7791_v60  ;;  %v10551_v60 = vld [vmem:[#allocation37_spill] sm:$0xff]  ;;  %v10552_v9 = vld [vmem:[#allocation32_spill] sm:$0xff] }
 0x1ca   : > { %1902 = vrot.lane.b32.xlu0 %v8084_v18, %s7183_s13  ;;  %v8100_v51 = vadd.f32 %v1586_v39, %v1456_v7  ;;  %v10564_v48 = vld [vmem:[#allocation45_spill] sm:$0xff]  ;;  %v10567_v58 = vld [vmem:[#allocation48_spill] sm:$0xff] }
 0x1cb   : > { %1904 = vrot.lane.b32.xlu1 %v8086_v10, %s7183_s13  ;;  %v8110_v33 = vadd.f32 %v1581_v62, %v1451_v17  ;;  %v8112_v24 = vadd.f32 %v1582_v45, %v1452_v26  ;;  %v10566_v39 = vld [vmem:[#allocation49_spill] sm:$0xff]  ;;  %v10568_v45 = vld [vmem:[#allocation51_spill] sm:$0xff] }
 0x1ce   : > { %1894 = vrot.lane.b32.xlu0 %v8098_v13, %s7183_s13 }
 0x1cf   : > { %1896 = vrot.lane.b32.xlu1 %v8100_v51, %s7183_s13 }
 0x1d2   : > { %1886 = vrot.lane.b32.xlu0 %v8110_v33, %s7183_s13 }
 0x1d3   : > { %1888 = vrot.lane.b32.xlu1 %v8112_v24, %s7183_s13  ;;  %s6843_s13 = sshll.u32 %s7164_s21, 6  ;;  %s7096_s21 = sshll.u32 %s7188_s0, 4  ;;  %s7097_s21 = int_to_ptr.vmem [resolvable:$false] %s7096_s21 }
 0x1d6   : > { %1757 = vrot.lane.b32.xlu0 %v8070_v53, %s7184_s22 }
 0x1d7   : > { %1759 = vrot.lane.b32.xlu1 %v8073_v6, %s7184_s22 }
 0x1da   : > { %1749 = vrot.lane.b32.xlu0 %v8084_v18, %s7184_s22 }
 0x1db   : > { %1751 = vrot.lane.b32.xlu1 %v8086_v10, %s7184_s22 }
 0x1de   : > { %1741 = vrot.lane.b32.xlu0 %v8098_v13, %s7184_s22 }
 0x1df   : > { %1743 = vrot.lane.b32.xlu1 %v8100_v51, %s7184_s22 }
 0x1e2   : > { %1733 = vrot.lane.b32.xlu0 %v8110_v33, %s7184_s22 }
 0x1e3   : > { %1735 = vrot.lane.b32.xlu1 %v8112_v24, %s7184_s22 }
 0x1e6   : > { %2446 = vrot.lane.b32.xlu0 %v10551_v60, %s10515_s16 }
 0x1e7   : > { %2448 = vrot.lane.b32.xlu1 %v10552_v9, %s10515_s16 }
 0x1ea   : > { %2438 = vrot.lane.b32.xlu0 %v10553_v47, %s10515_s16 }
 0x1eb   : > { %2440 = vrot.lane.b32.xlu1 %v10554_v3, %s10515_s16 }
 0x1ee   : > { %2430 = vrot.lane.b32.xlu0 %v10555_v61, %s10515_s16 }
 0x1ef   : > { %2432 = vrot.lane.b32.xlu1 %v10556_v5, %s10515_s16 }
 0x1f2   : > { %2422 = vrot.lane.b32.xlu0 %v10557_v52, %s10515_s16 }
 0x1f3   : > { %2424 = vrot.lane.b32.xlu1 %v10558_v23, %s10515_s16 }
 0x1f6   : > { %2450 = vrot.lane.b32.xlu0 %v8070_v53, %s10515_s16 }
 0x1f7   : > { %2452 = vrot.lane.b32.xlu1 %v8073_v6, %s10515_s16 }
 0x1fa   : > { %2442 = vrot.lane.b32.xlu0 %v8084_v18, %s10515_s16 }
 0x1fb   : > { %2444 = vrot.lane.b32.xlu1 %v8086_v10, %s10515_s16 }
 0x1fe   : > { %2434 = vrot.lane.b32.xlu0 %v8098_v13, %s10515_s16 }
 0x1ff   : > { %2436 = vrot.lane.b32.xlu1 %v8100_v51, %s10515_s16 }
 0x202   : > { %2426 = vrot.lane.b32.xlu0 %v8110_v33, %s10515_s16 }
 0x203   : > { %2428 = vrot.lane.b32.xlu1 %v8112_v24, %s10515_s16 }
 0x206   : > { %2810 = vrot.lane.b32.xlu0 %v10551_v60, %s10517_s24 }
 0x207   : > { %2812 = vrot.lane.b32.xlu1 %v10552_v9, %s10517_s24 }
 0x20a   : > { %2802 = vrot.lane.b32.xlu0 %v10553_v47, %s10517_s24 }
 0x20b   : > { %2804 = vrot.lane.b32.xlu1 %v10554_v3, %s10517_s24 }
 0x20e   : > { %2794 = vrot.lane.b32.xlu0 %v10555_v61, %s10517_s24 }
 0x20f   : > { %2796 = vrot.lane.b32.xlu1 %v10556_v5, %s10517_s24 }
 0x212   : > { %2786 = vrot.lane.b32.xlu0 %v10557_v52, %s10517_s24 }
 0x213   : > { %2788 = vrot.lane.b32.xlu1 %v10558_v23, %s10517_s24 }
 0x216   : > { %2814 = vrot.lane.b32.xlu0 %v8070_v53, %s10517_s24 }
 0x217   : > { %2816 = vrot.lane.b32.xlu1 %v8073_v6, %s10517_s24 }
 0x21a   : > { %2806 = vrot.lane.b32.xlu0 %v8084_v18, %s10517_s24 }
 0x21b   : > { %2808 = vrot.lane.b32.xlu1 %v8086_v10, %s10517_s24 }
 0x21e   : > { %2798 = vrot.lane.b32.xlu0 %v8098_v13, %s10517_s24 }
 0x21f   : > { %2800 = vrot.lane.b32.xlu1 %v8100_v51, %s10517_s24 }
 0x222   : > { %2790 = vrot.lane.b32.xlu0 %v8110_v33, %s10517_s24 }
 0x223   : > { %2792 = vrot.lane.b32.xlu1 %v8112_v24, %s10517_s24 }
 0x226   : > { %3487 = vperm.xlu0 %7067, %v3469_v50  }
 0x227   : > { %3482 = vperm.xlu1 %7068, %v3468_v11  }
 0x22a   : > { %3527 = vperm.xlu0 %7067, %v3509_v21  }
 0x22b   : > { %3477 = vperm.xlu1 %7068, %v3467_v40   ;;  %v10569_v40 = vld [vmem:[#allocation50_spill] sm:$0xff] }
 0x22e   : > { %3522 = vperm.xlu0 %7067, %v3508_v56  }
 0x22f   : > { %3472 = vperm.xlu1 %7068, %v3466_v28  }
 0x232   : > { %3517 = vperm.xlu0 %7067, %v3507_v1   ;;  %v10571_v1 = vld [vmem:[#allocation52_spill] sm:$0xff] }
 0x233   : > { %3512 = vperm.xlu1 %7068, %v3506_v36  }
 0x238   : > { %v1911_v14 = vpop.permute.xlu0 %1910 }
 0x239   : > { %v1913_v43 = vpop.permute.xlu1 %1912  ;;  %v1925_v0 = vsel %vm1914_vm5, %v10559_v2, %v1911_v14 }
 0x23a   : > { %v1926_v38 = vsel %vm1914_vm5, %v1911_v14, %v1913_v43 }
 0x23b   : > { %2078 = vmatprep.subr.mxu1 %v1926_v38  ;;  %v10572_v38 = vld [vmem:[#allocation54_spill] sm:$0xff] }
 0x23c   : > { %2079 = vmatpush1.msra.mxu1 %v1925_v0  ;;  %v1903_v35 = vpop.permute.xlu0 %1902 }
 0x23d   : > { %v1905_v19 = vpop.permute.xlu1 %1904  ;;  %v1922_v37 = vsel %vm1914_vm5, %v10560_v22, %v1903_v35 }
 0x23e   : > { %v1923_v8 = vsel %vm1914_vm5, %v1903_v35, %v1905_v19 }
 0x23f   : > { %2080 = vmatprep.subr.mxu1 %v1923_v8 }
 0x240   : > { %2081 = vmatpush1.msra.mxu1 %v1922_v37  ;;  %v1895_v20 = vpop.permute.xlu0 %1894 }
 0x241   : > { %v1897_v44 = vpop.permute.xlu1 %1896  ;;  %v1919_v31 = vsel %vm1914_vm5, %v10561_v32, %v1895_v20 }
 0x242   : > { %v1920_v4 = vsel %vm1914_vm5, %v1895_v20, %v1897_v44  ;;  %v10573_v20 = vld [vmem:[#allocation55_spill] sm:$0xff] }
 0x243   : > { %2082 = vmatprep.subr.mxu1 %v1920_v4 }
 0x244   : > { %2083 = vmatpush1.msra.mxu1 %v1919_v31  ;;  %v1887_v59 = vpop.permute.xlu0 %1886 }
 0x245   : > { %v1889_v42 = vpop.permute.xlu1 %1888  ;;  %v1916_v41 = vsel %vm1914_vm5, %v10562_v16, %v1887_v59 }
 0x246   : > { %v1917_v29 = vsel %vm1914_vm5, %v1887_v59, %v1889_v42  ;;  %v10574_v59 = vld [vmem:[#allocation56_spill] sm:$0xff]  ;;  %vm666_vm5 = vcmask 130048  }
 0x247   : > { %2084 = vmatprep.subr.mxu1 %v1917_v29  ;;  %667 = vst.msk [vmem:[#allocation4] sm:$0xff] %vm666_vm5, %v10527_v46  ;;  %668 = vst.msk [vmem:[#allocation4 + $0x8] sm:$0xff] %vm666_vm5, %v10527_v46 }
 0x248   : > { %2085 = vmatpush1.msra.mxu1 %v1916_v41  ;;  %v1758_v15 = vpop.permute.xlu0 %1757  ;;  %669 = vst.msk [vmem:[#allocation4 + $0x10] sm:$0xff] %vm666_vm5, %v10527_v46  ;;  %670 = vst.msk [vmem:[#allocation4 + $0x18] sm:$0xff] %vm666_vm5, %v10527_v46 }
 0x249   : > { %v1760_v57 = vpop.permute.xlu1 %1759  ;;  %6608 = vmatmul.mubr.msk.f32.vlgmr.msra.gmra.mxu1 %vm1952_vm7, %v10563_v55  ;;  %v1771_v30 = vsel %vm661_vm8, %v10564_v48, %v1758_v15 }
 0x24a   : > { %v1772_v34 = vsel %vm661_vm8, %v1758_v15, %v1760_v57  ;;  %2124 = vmatprep.mubr.f32.mxu1 %v10527_v46 }
 0x24b   : > { %2268 = vmatprep.subr.mxu1 %v1772_v34 }
 0x24c   : > { %2269 = vmatpush1.msra.mxu1 %v1771_v30  ;;  %v1750_v54 = vpop.permute.xlu0 %1749 }
 0x24d   : > { %v1752_v12 = vpop.permute.xlu1 %1751  ;;  %v1768_v63 = vsel %vm661_vm8, %v10565_v27, %v1750_v54  ;;  %6609 = vmatmul.mubr.msk.f32.gmra.mxu1 %vm1952_vm7, %v10566_v39 }
 0x24e   : > { %v1769_v49 = vsel %vm661_vm8, %v1750_v54, %v1752_v12  ;;  %2130 = vmatprep.mubr.f32.mxu1 %v10527_v46 }
 0x24f   : > { %2270 = vmatprep.subr.mxu1 %v1769_v49 }
 0x250   : > { %2271 = vmatpush1.msra.mxu1 %v1768_v63  ;;  %v1742_v7 = vpop.permute.xlu0 %1741 }
 0x251   : > { %v1744_v62 = vpop.permute.xlu1 %1743  ;;  %v1765_v17 = vsel %vm661_vm8, %v10567_v58, %v1742_v7  ;;  %6610 = vmatmul.mubr.msk.f32.gmra.mxu1 %vm1952_vm7, %v10568_v45 }
 0x252   : > { %v1766_v26 = vsel %vm661_vm8, %v1742_v7, %v1744_v62  ;;  %2136 = vmatprep.mubr.f32.mxu1 %v10527_v46 }
 0x253   : > { %2272 = vmatprep.subr.mxu1 %v1766_v26 }
 0x254   : > { %v2031_v50 = vpop.f32.mrf.mxu0  ;;  %2273 = vmatpush1.msra.mxu1 %v1765_v17  ;;  %v1734_v11 = vpop.permute.xlu0 %1733 }
 0x255   : > { %v1736_v21 = vpop.permute.xlu1 %1735  ;;  %v1762_v56 = vsel %vm661_vm8, %v10569_v40, %v1734_v11  ;;  %6611 = vmatmul.mubr.msk.f32.gmra.mxu1 %vm1952_vm7, %v10571_v1 }
 0x256   : > { %v8238_v28 = vpop.f32.mrf.mxu0  ;;  %v1763_v36 = vsel %vm661_vm8, %v1734_v11, %v1736_v21  ;;  %2308 = vmatprep.mubr.f32.mxu1 %v10527_v46 }
 0x257   : > { %10570 = vst [vmem:[#allocation24_spill] sm:$0xff] %v8238_v28  ;;  %2274 = vmatprep.subr.mxu1 %v1763_v36 }
 0x258   : > { %v2037_v14 = vpop.f32.mrf.mxu0  ;;  %2275 = vmatpush1.msra.mxu1 %v1762_v56  ;;  %v8244_v43 = vpop.permute.xlu0 %2446 }
 0x259   : > { %v2449_v2 = vpop.permute.xlu1 %2448  ;;  %6616 = vmatmul.mubr.msk.f32.vlgmr.msra.gmra.mxu1 %vm1952_vm7, %v10572_v38  ;;  %v6626_v38 = vld [vmem:[%s10348_s5 + $0x40] sm:$0xff] }
 0x25a   : > { %v8246_v0 = vpop.f32.mrf.mxu0  ;;  %v2463_v35 = vsel %vm680_vm6, %v8244_v43, %v2449_v2  ;;  %2314 = vmatprep.mubr.f32.mxu1 %v10527_v46 }
 0x25b   : > { %2527 = vmatprep.subr.mxu1 %v2463_v35 }
 0x25c   : > { %v2043_v19 = vpop.f32.mrf.mxu0  ;;  %v8253_v22 = vpop.permute.xlu0 %2438 }
 0x25d   : > { %v2441_v37 = vpop.permute.xlu1 %2440  ;;  %6617 = vmatmul.mubr.msk.f32.gmra.mxu1 %vm1952_vm7, %v10573_v20 }
 0x25e   : > { %v8255_v8 = vpop.f32.mrf.mxu0  ;;  %2320 = vmatprep.mubr.f32.mxu1 %v10527_v46 }
 0x260   : > { %v2049_v44 = vpop.f32.mrf.mxu0  ;;  %v8260_v32 = vpop.permute.xlu0 %2430 }
 0x261   : > { %v8262_v31 = vpop.permute.xlu1 %2432  ;;  %6618 = vmatmul.mubr.msk.f32.gmra.mxu1 %vm1952_vm7, %v10574_v59 }
 0x262   : > { %v8264_v4 = vpop.f32.mrf.mxu0  ;;  %2326 = vmatprep.mubr.f32.mxu1 %v10527_v46 }
 0x264   : > { %v2221_v42 = vpop.f32.mrf.mxu0  ;;  %v8269_v16 = vpop.permute.xlu0 %2422 }
 0x265   : > { %v8271_v41 = vadd.f32 %v2221_v42, %v2031_v50  ;;  %v8273_v29 = vpop.permute.xlu1 %2424  ;;  %6619 = vmatmul.mubr.msk.f32.gmra.mxu1 %vm1952_vm7, %v7991_v25  ;;  %v2460_v42 = vsel %vm680_vm6, %v8253_v22, %v2441_v37 }
 0x266   : > { %v8275_v15 = vpop.f32.mrf.mxu0  ;;  %2567 = vmatprep.mubr.f32.mxu1 %v10527_v46 }
 0x267   : > { %10575 = vst [vmem:[#allocation23_spill] sm:$0xff] %v8275_v15 }
 0x268   : > { %v2227_v57 = vpop.f32.mrf.mxu0  ;;  %v2451_v55 = vpop.permute.xlu0 %2450 }
 0x269   : > { %v8280_v48 = vadd.f32 %v2227_v57, %v2037_v14  ;;  %v2453_v30 = vpop.permute.xlu1 %2452  ;;  %v2464_v34 = vsel %vm680_vm6, %v2449_v2, %v2451_v55  ;;  %v10576_v57 = vld [vmem:[#allocation17_spill] sm:$0xff] }
 0x26a   : > { %v8283_v54 = vpop.f32.mrf.mxu0  ;;  %v2465_v12 = vsel %vm680_vm6, %v2451_v55, %v2453_v30  ;;  %v2697_v55 = vadd.s32 6, %v10576_v57 }
 0x26b   : > { %2616 = vmatprep.subr.mxu0 %v2465_v12 }
 0x26c   : > { %v2233_v27 = vpop.f32.mrf.mxu0  ;;  %2617 = vmatpush1.msra.mxu0 %v2464_v34  ;;  %v2443_v63 = vpop.permute.xlu0 %2442  ;;  %v6627_v34 = vld [vmem:[%s10348_s5 + $0x48] sm:$0xff] }
 0x26d   : > { %v8286_v39 = vadd.f32 %v2233_v27, %v2043_v19  ;;  %v2445_v25 = vpop.permute.xlu1 %2444  ;;  %v2461_v49 = vsel %vm680_vm6, %v2441_v37, %v2443_v63  ;;  %v2457_v37 = vsel %vm680_vm6, %v8260_v32, %v8262_v31 }
 0x26e   : > { %v8289_v7 = vpop.f32.mrf.mxu0  ;;  %v2462_v62 = vsel %vm680_vm6, %v2443_v63, %v2445_v25  ;;  %v10577_v25 = vld [vmem:[#allocation16_spill] sm:$0xff] }
 0x26f   : > { %2618 = vmatprep.subr.mxu0 %v2462_v62  ;;  %vm2698_vm4 = vcmp.eq.s32.totalorder %v10577_v25, %v2697_v55  ;;  %v10578_v62 = vmov 1.0  }
 0x270   : > { %v2239_v58 = vpop.f32.mrf.mxu0  ;;  %2619 = vmatpush1.msra.mxu0 %v2461_v49  ;;  %v2435_v17 = vpop.permute.xlu0 %2434 }
 0x271   : > { %v8292_v45 = vadd.f32 %v2239_v58, %v2049_v44  ;;  %v2437_v26 = vpop.permute.xlu1 %2436  ;;  %v2458_v50 = vsel %vm680_vm6, %v8262_v31, %v2435_v17 }
 0x272   : > { %v8296_v11 = vpop.f32.mrf.mxu0  ;;  %v2459_v21 = vsel %vm680_vm6, %v2435_v17, %v2437_v26 }
 0x273   : > { %2620 = vmatprep.subr.mxu0 %v2459_v21 }
 0x274   : > { %v6936_v40 = vpop.f32.mrf.mxu0  ;;  %2621 = vmatpush1.msra.mxu0 %v2458_v50  ;;  %v2427_v56 = vpop.permute.xlu0 %2426 }
 0x275   : > { %v2429_v1 = vpop.permute.xlu1 %2428  ;;  %v2455_v36 = vsel %vm680_vm6, %v8273_v29, %v2427_v56  ;;  %v2483_v12 = vsel %vm680_vm6, %v6936_v40, %v8260_v32  ;;  %v6628_v32 = vld [vmem:[%s10348_s5 + $0x50] sm:$0xff] }
 0x276   : > { %v2403_v14 = vpop.f32.mrf.mxu0  ;;  %v2456_v2 = vsel %vm680_vm6, %v2427_v56, %v2429_v1  ;;  %v7069_v1 = vld [vmem:[#allocation3] sm:$0xff] }
 0x277   : > { %2622 = vmatprep.subr.mxu0 %v2456_v2  ;;  %v2482_v31 = vsel %vm680_vm6, %v2403_v14, %v8269_v16  ;;  %v7070_v14 = vld [vmem:[#allocation3 + $0x8] sm:$0xff] }
 0x278   : > { %v6939_v35 = vpop.f32.mrf.mxu0  ;;  %2623 = vmatpush1.msra.mxu0 %v2455_v36  ;;  %v8305_v19 = vpop.permute.xlu0 %2810 }
 0x279   : > { %v2485_v20 = vsel %vm680_vm6, %v6939_v35, %v8244_v43  ;;  %6634 = vmatmul.mubr.msk.f32.vlgmr.msra.gmra.mxu0 %vm1952_vm7, %v6626_v38  ;;  %v2813_v44 = vpop.permute.xlu1 %2812 }
 0x27a   : > { %v2413_v59 = vpop.f32.mrf.mxu0  ;;  %2528 = vmatpush1.msra.mxu1 %v2485_v20  ;;  %v2827_v30 = vsel %vm1115_vm10, %v8305_v19, %v2813_v44  ;;  %2662 = vmatprep.mubr.f32.mxu0 %v10527_v46  ;;  %v7071_v20 = vld [vmem:[#allocation3 + $0x10] sm:$0xff] }
 0x27b   : > { %v2484_v43 = vsel %vm680_vm6, %v2413_v59, %v8253_v22  ;;  %2529 = vmatprep.subr.mxu1 %v2460_v42  ;;  %2891 = vmatprep.subr.mxu0 %v2827_v30  ;;  %v2454_v22 = vsel %vm680_vm6, %v8269_v16, %v8273_v29  ;;  %v6629_v16 = vld [vmem:[%s10348_s5 + $0x58] sm:$0xff] }
 0x27c   : > { %2530 = vmatpush1.msra.mxu1 %v2484_v43  ;;  %v8326_v27 = vpop.permute.xlu0 %2802  ;;  %v7072_v30 = vld [vmem:[#allocation3 + $0x18] sm:$0xff] }
 0x27d   : > { %2531 = vmatprep.subr.mxu1 %v2457_v37  ;;  %6635 = vmatmul.mubr.msk.f32.gmra.mxu0 %vm1952_vm7, %v6627_v34  ;;  %v8329_v63 = vpop.permute.xlu1 %2804  ;;  %v8382_v37 = vld [vmem:[%s10348_s5 + $0x60] sm:$0xff] }
 0x27e   : > { %2532 = vmatpush1.msra.mxu1 %v2483_v12  ;;  %2668 = vmatprep.mubr.f32.mxu0 %v10527_v46 }
 0x27f   : > { %2533 = vmatprep.subr.mxu1 %v2454_v22  ;;  %v8394_v22 = vld [vmem:[%s10348_s5 + $0x68] sm:$0xff] }
 0x280   : > { %2534 = vmatpush1.msra.mxu1 %v2482_v31  ;;  %v8341_v49 = vpop.permute.xlu0 %2794  ;;  %v8406_v31 = vld [vmem:[%s10348_s5 + $0x70] sm:$0xff] }
 0x281   : > { %6630 = vmatmul.mubr.msk.f32.vlgmr.msra.gmra.mxu1 %vm1952_vm7, %v6626_v38  ;;  %6940 = vmatprep.subr.msk.mxu1 %vm2698_vm4, %v10578_v62  ;;  %v8346_v29 = vpop.permute.xlu1 %2796 }
 0x282   : > { %6636 = vmatmul.mubr.msk.f32.gmra.mxu0 %vm1952_vm7, %v6628_v32  ;;  %2573 = vmatprep.mubr.f32.mxu1 %v10527_v46 }
 0x283   : > { %2674 = vmatprep.mubr.f32.mxu0 %v10527_v46  ;;  %6941 = vmatpush3.msk.msra.mxu1 %vm2698_vm4, %v10578_v62 }
 0x284   : > { %v8354_v58 = vpop.permute.xlu0 %2786 }
 0x285   : > { %6631 = vmatmul.mubr.msk.f32.gmra.mxu1 %vm1952_vm7, %v6627_v34  ;;  %v8358_v17 = vpop.permute.xlu1 %2788 }
 0x286   : > { %6637 = vmatmul.mubr.msk.f32.gmra.mxu0 %vm1952_vm7, %v6629_v16  ;;  %2579 = vmatprep.mubr.f32.mxu1 %v10527_v46 }
 0x287   : > { %2931 = vmatprep.mubr.f32.mxu0 %v10527_v46 }
 0x288   : > { %v2815_v26 = vpop.permute.xlu0 %2814 }
 0x289   : > { %6632 = vmatmul.mubr.msk.f32.gmra.mxu1 %vm1952_vm7, %v6628_v32  ;;  %v2817_v50 = vpop.permute.xlu1 %2816  ;;  %v2828_v2 = vsel %vm1115_vm10, %v2813_v44, %v2815_v26  ;;  %v8417_v32 = vld [vmem:[%s10348_s5 + $0x78] sm:$0xff] }
 0x28a   : > { %2585 = vmatprep.mubr.f32.mxu1 %v10527_v46  ;;  %v2829_v21 = vsel %vm1115_vm10, %v2815_v26, %v2817_v50  ;;  %v8493_v26 = vadd.s32 8, %v10577_v25 }
 0x28b   : > { %2980 = vmatprep.subr.mxu1 %v2829_v21  ;;  %v10580_v21 = vld [vmem:[#allocation53_spill] sm:$0xff] }
 0x28c   : > { %v2807_v40 = vpop.permute.xlu0 %2806  ;;  %vm3806_vm9 = vcmp.eq.s32.totalorder %v8493_v26, %v10580_v21 }
 0x28d   : > { %6633 = vmatmul.mubr.msk.f32.gmra.mxu1 %vm1952_vm7, %v6629_v16  ;;  %v2809_v56 = vpop.permute.xlu1 %2808  ;;  %v2825_v59 = vsel %vm1115_vm10, %v8329_v63, %v2807_v40  ;;  %v8425_v16 = vld [vmem:[%s10348_s5 + $0x80] sm:$0xff] }
 0x28e   : > { %6942 = vmatprep.mubr.msk.f32.mxu1 %vm661_vm8, %v7069_v1  ;;  %v2826_v35 = vsel %vm1115_vm10, %v2807_v40, %v2809_v56 }
 0x290   : > { %v2799_v36 = vpop.permute.xlu0 %2798 }
 0x291   : > { %6943 = vmatmul.mubr.msk.f32.vlgmr.msra.gmra.mxu1 %vm661_vm8, %v7070_v14  ;;  %v2801_v38 = vpop.permute.xlu1 %2800  ;;  %v2822_v44 = vsel %vm1115_vm10, %v8346_v29, %v2799_v36  ;;  %v8521_v14 = vld [vmem:[#allocation4 + $0x8] sm:$0xff] }
 0x292   : > { %2981 = vmatpush1.msra.mxu1 %v2828_v2  ;;  %6945 = vmatprep.mubr.msk.f32.mxu1 %vm661_vm8, %v7071_v20  ;;  %v2823_v42 = vsel %vm1115_vm10, %v2799_v36, %v2801_v38  ;;  %v8519_v36 = vld [vmem:[#allocation4] sm:$0xff]  ;;  %v8523_v2 = vld [vmem:[#allocation4 + $0x10] sm:$0xff] }
 0x293   : > { %2982 = vmatprep.subr.mxu1 %v2826_v35  ;;  %v8533_v35 = vld [vmem:[#allocation4 + $0x18] sm:$0xff] }
 0x294   : > { %2983 = vmatpush1.msra.mxu1 %v2825_v59  ;;  %v2791_v55 = vpop.permute.xlu0 %2790 }
 0x295   : > { %2984 = vmatprep.subr.mxu1 %v2823_v42  ;;  %6946 = vmatmul.mubr.msk.f32.gmra.mxu1 %vm661_vm8, %v7072_v30  ;;  %v2793_v34 = vpop.permute.xlu1 %2792  ;;  %v2819_v12 = vsel %vm1115_vm10, %v8358_v17, %v2791_v55 }
 0x296   : > { %2985 = vmatpush1.msra.mxu1 %v2822_v44  ;;  %3020 = vmatprep.mubr.f32.mxu1 %v10527_v46  ;;  %v2820_v43 = vsel %vm1115_vm10, %v2791_v55, %v2793_v34 }
 0x297   : > { %2986 = vmatprep.subr.mxu1 %v2820_v43 }
 0x298   : > { %2987 = vmatpush1.msra.mxu1 %v2819_v12 }
 0x299   : > { %3191 = vmatprep.subr.mxu1 %v8073_v6  ;;  %6652 = vmatmul.mubr.msk.f32.vlgmr.msra.gmra.mxu1 %vm1952_vm7, %v8382_v37 }
 0x29a   : > { %3192 = vmatpush1.msra.mxu1 %v8070_v53  ;;  %3026 = vmatprep.mubr.f32.mxu1 %v10527_v46 }
 0x29b   : > { %3193 = vmatprep.subr.mxu1 %v8086_v10 }
 0x29c   : > { %3194 = vmatpush1.msra.mxu1 %v8084_v18 }
 0x29d   : > { %3195 = vmatprep.subr.mxu1 %v8100_v51  ;;  %6653 = vmatmul.mubr.msk.f32.gmra.mxu1 %vm1952_vm7, %v8394_v22 }
 0x29e   : > { %3196 = vmatpush1.msra.mxu1 %v8098_v13  ;;  %3032 = vmatprep.mubr.f32.mxu1 %v10527_v46 }
 0x29f   : > { %3197 = vmatprep.subr.mxu1 %v8112_v24 }
 0x2a0   : > { %3198 = vmatpush1.msra.mxu1 %v8110_v33 }
 0x2a1   : > { %3401 = vmatprep.subr.mxu1 %v8073_v6  ;;  %6654 = vmatmul.mubr.msk.f32.gmra.mxu1 %vm1952_vm7, %v8406_v31  ;;  %v8434_v6 = vld [vmem:[%s10348_s5 + $0x88] sm:$0xff] }
 0x2a2   : > { %3038 = vmatprep.mubr.f32.mxu1 %v10527_v46 }
 0x2a5   : > { %6655 = vmatmul.mubr.msk.f32.gmra.mxu1 %vm1952_vm7, %v8417_v32 }
 0x2a6   : > { %3231 = vmatprep.mubr.f32.mxu1 %v10527_v46 }
 0x2a9   : > { %6664 = vmatmul.mubr.msk.f32.vlgmr.msra.gmra.mxu1 %vm1952_vm7, %v8425_v16 }
 0x2aa   : > { %3402 = vmatpush1.msra.mxu1 %v8070_v53  ;;  %3237 = vmatprep.mubr.f32.mxu1 %v10527_v46  ;;  %v8446_v53 = vld [vmem:[%s10348_s5 + $0x90] sm:$0xff] }
 0x2ab   : > { %3403 = vmatprep.subr.mxu1 %v8086_v10  ;;  %v8464_v10 = vld [vmem:[%s10349_s6] sm:$0xff] }
 0x2ac   : > { %3404 = vmatpush1.msra.mxu1 %v8084_v18  ;;  %v8456_v18 = vld [vmem:[%s10348_s5 + $0x98] sm:$0xff] }
 0x2ad   : > { %3405 = vmatprep.subr.mxu1 %v8100_v51  ;;  %6665 = vmatmul.mubr.msk.f32.gmra.mxu1 %vm1952_vm7, %v8434_v6  ;;  %v8480_v51 = vld [vmem:[%s10349_s6 + $0x10] sm:$0xff] }
 0x2ae   : > { %3406 = vmatpush1.msra.mxu1 %v8098_v13  ;;  %3243 = vmatprep.mubr.f32.mxu1 %v10527_v46  ;;  %v8472_v13 = vld [vmem:[%s10349_s6 + $0x8] sm:$0xff] }
 0x2af   : > { %3407 = vmatprep.subr.mxu1 %v8112_v24 }
 0x2b0   : > { %3408 = vmatpush1.msra.mxu1 %v8110_v33  ;;  %v8488_v33 = vld [vmem:[%s10349_s6 + $0x18] sm:$0xff] }
 0x2b1   : > { %6666 = vmatmul.mubr.msk.f32.gmra.mxu1 %vm1952_vm7, %v8446_v53  ;;  %6958 = vmatprep.subr.msk.mxu1 %vm3806_vm9, %v10578_v62 }
 0x2b2   : > { %3249 = vmatprep.mubr.f32.mxu1 %v10527_v46 }
 0x2b5   : > { %6667 = vmatmul.mubr.msk.f32.gmra.mxu1 %vm1952_vm7, %v8456_v18 }
 0x2b6   : > { %3441 = vmatprep.mubr.f32.mxu1 %v10527_v46 }
 0x2b9   : > { %6672 = vmatmul.mubr.msk.f32.vlgmr.msra.gmra.mxu1 %vm1952_vm7, %v8464_v10 }
 0x2ba   : > { %3447 = vmatprep.mubr.f32.mxu1 %v10527_v46  ;;  %6959 = vmatpush3.msk.msra.mxu1 %vm3806_vm9, %v10578_v62 }
 0x2bb   : > { %6960 = vmatprep.subr.msk.mxu1 %vm2334_vm12, %v10578_v62 }
 0x2bc   : > { %6961 = vmatpush3.msk.msra.mxu1 %vm2334_vm12, %v10578_v62 }
 0x2bd   : > { %6673 = vmatmul.mubr.msk.f32.gmra.mxu1 %vm1952_vm7, %v8472_v13 }
 0x2be   : > { %3453 = vmatprep.mubr.f32.mxu1 %v10527_v46 }
 0x2c1   : > { %6674 = vmatmul.mubr.msk.f32.gmra.mxu1 %vm1952_vm7, %v8480_v51 }
 0x2c2   : > { %3459 = vmatprep.mubr.f32.mxu1 %v10527_v46 }
 0x2c5   : > { %6675 = vmatmul.mubr.msk.f32.gmra.mxu1 %vm1952_vm7, %v8488_v33 }
 0x2c6   : > { %6962 = vmatprep.mubr.msk.f32.mxu1 %vm666_vm5, %v8519_v36 }
 0x2c9   : > { %6963 = vmatmul.mubr.msk.f32.vlgmr.msra.gmra.mxu1 %vm666_vm5, %v8521_v14 }
 0x2ca   : > { %6965 = vmatprep.mubr.msk.f32.mxu1 %vm666_vm5, %v8523_v2 }
 0x2cd   : > { %6966 = vmatmul.mubr.msk.f32.gmra.mxu1 %vm666_vm5, %v8533_v35 }
 0x2ce   : > { %4169 = vmatprep.mubr.f32.mxu1 %v10527_v46 }
 0x309   : > { %v2120_v24 = vpop.f32.mrf.mxu1 }
 0x30b   : > { %v8503_v50 = vpop.f32.mrf.mxu1 }
 0x30c   : > { %10579 = vst [vmem:[#allocation28_spill] sm:$0xff] %v8503_v50 }
 0x30d   : > { %v2126_v40 = vpop.f32.mrf.mxu1 }
 0x30f   : > { %v8513_v56 = vpop.f32.mrf.mxu1 }
 0x310   : > { %10581 = vst [vmem:[#allocation26_spill] sm:$0xff] %v8513_v56 }
 0x311   : > { %v2132_v1 = vpop.f32.mrf.mxu1 }
 0x313   : > { %v8527_v38 = vpop.f32.mrf.mxu1 }
 0x314   : > { %10582 = vst [vmem:[#allocation25_spill] sm:$0xff] %v8527_v38 }
 0x315   : > { %v2138_v20 = vpop.f32.mrf.mxu1 }
 0x317   : > { %v8535_v59 = vpop.f32.mrf.mxu1 }
 0x318   : > { %10583 = vst [vmem:[#allocation27_spill] sm:$0xff] %v8535_v59 }
 0x319   : > { %v2310_v42 = vpop.f32.mrf.mxu1 }
 0x31a   : > { %v2311_v55 = vadd.f32 %v2310_v42, %v2120_v24 }
 0x31b   : > { %v8540_v30 = vpop.f32.mrf.mxu1 }
 0x31c   : > { %10584 = vst [vmem:[#allocation30_spill] sm:$0xff] %v8540_v30 }
 0x31d   : > { %v2316_v44 = vpop.f32.mrf.mxu1 }
 0x31e   : > { %v2317_v34 = vadd.f32 %v2316_v44, %v2126_v40 }
 0x31f   : > { %v8542_v43 = vpop.f32.mrf.mxu1 }
 0x321   : > { %v2322_v12 = vpop.f32.mrf.mxu1 }
 0x322   : > { %v2323_v21 = vadd.f32 %v2322_v12, %v2132_v1 }
 0x323   : > { %v8544_v25 = vpop.f32.mrf.mxu1 }
 0x325   : > { %v2328_v50 = vpop.f32.mrf.mxu1 }
 0x326   : > { %v8546_v56 = vadd.f32 %v2328_v50, %v2138_v20 }
 0x327   : > { %v8552_v24 = vpop.f32.mrf.mxu1 }
 0x339   : > { %v2658_v38 = vpop.f32.mrf.mxu0 }
 0x33a   : > { %v8548_v59 = vadd.f32 %v2658_v38, %v2311_v55 }
 0x33b   : > { %v8550_v15 = vpop.f32.mrf.mxu0 }
 0x33c   : > { %10585 = vst [vmem:[#allocation19_spill] sm:$0xff] %v8548_v59  ;;  %10586 = vst [vmem:[#allocation20_spill] sm:$0xff] %v8550_v15 }
 0x33d   : > { %v2664_v28 = vpop.f32.mrf.mxu0 }
 0x33e   : > { %v8554_v42 = vadd.f32 %v2664_v28, %v2317_v34 }
 0x33f   : > { %v8556_v40 = vpop.f32.mrf.mxu0 }
 0x340   : > { %10587 = vst [vmem:[#allocation21_spill] sm:$0xff] %v8554_v42 }
 0x341   : > { %v2569_v44 = vpop.f32.mrf.mxu1 }
 0x342   : > { %v2670_v30 = vpop.f32.mrf.mxu0  ;;  %v8559_v1 = vadd.f32 %v2569_v44, %v8271_v41 }
 0x343   : > { %v8561_v12 = vadd.f32 %v2670_v30, %v2323_v21  ;;  %v8563_v50 = vpop.f32.mrf.mxu1 }
 0x345   : > { %v2575_v38 = vpop.f32.mrf.mxu1 }
 0x346   : > { %v8566_v20 = vadd.f32 %v2575_v38, %v8280_v48 }
 0x347   : > { %v8568_v55 = vpop.f32.mrf.mxu1 }
 0x349   : > { %v2581_v59 = vpop.f32.mrf.mxu1 }
 0x34a   : > { %v8571_v28 = vadd.f32 %v2581_v59, %v8286_v39  ;;  %v2824_v39 = vsel %vm1115_vm10, %v8326_v27, %v8329_v63 }
 0x34b   : > { %v8573_v34 = vpop.f32.mrf.mxu1 }
 0x34d   : > { %v2587_v15 = vpop.f32.mrf.mxu1 }
 0x34e   : > { %v8576_v41 = vadd.f32 %v2587_v15, %v8292_v45  ;;  %v2821_v15 = vsel %vm1115_vm10, %v8341_v49, %v8346_v29 }
 0x34f   : > { %v8578_v30 = vpop.f32.mrf.mxu1 }
 0x351   : > { %v6944_v21 = vpop.f32.mrf.mxu1 }
 0x352   : > { %v2847_v45 = vsel %vm1115_vm10, %v6944_v21, %v8341_v49 }
 0x353   : > { %v2767_v44 = vpop.f32.mrf.mxu1 }
 0x354   : > { %v2846_v63 = vsel %vm1115_vm10, %v2767_v44, %v8354_v58 }
 0x355   : > { %v6947_v42 = vpop.f32.mrf.mxu1 }
 0x356   : > { %v2849_v48 = vsel %vm1115_vm10, %v6947_v42, %v8305_v19  ;;  %v2818_v19 = vsel %vm1115_vm10, %v8354_v58, %v8358_v17 }
 0x357   : > { %v2777_v38 = vpop.f32.mrf.mxu1  ;;  %2892 = vmatpush1.msra.mxu0 %v2849_v48 }
 0x358   : > { %v2848_v59 = vsel %vm1115_vm10, %v2777_v38, %v8326_v27  ;;  %2893 = vmatprep.subr.mxu0 %v2824_v39  ;;  %vm3617_vm10 = vcmp.eq.s32.totalorder %v8493_v26, %v10576_v57  ;;  %v2242_v38 = vadd.f32 %v8296_v11, %v8264_v4  ;;  %v8705_v39 = vpop.permute.xlu1 %3482 }
 0x359   : > { %2894 = vmatpush1.msra.mxu0 %v2848_v59 }
 0x35a   : > { %2895 = vmatprep.subr.mxu0 %v2821_v15 }
 0x35b   : > { %2896 = vmatpush1.msra.mxu0 %v2847_v45 }
 0x35c   : > { %2897 = vmatprep.subr.mxu0 %v2818_v19 }
 0x35d   : > { %2898 = vmatpush1.msra.mxu0 %v2846_v63 }
 0x35e   : > { %6648 = vmatmul.mubr.msk.f32.vlgmr.msra.gmra.mxu0 %vm1952_vm7, %v8382_v37  ;;  %3102 = vmatprep.subr.mxu0 %v10552_v9 }
 0x35f   : > { %3103 = vmatpush1.msra.mxu0 %v10551_v60  ;;  %2937 = vmatprep.mubr.f32.mxu0 %v10527_v46 }
 0x360   : > { %3104 = vmatprep.subr.mxu0 %v10554_v3 }
 0x361   : > { %3105 = vmatpush1.msra.mxu0 %v10553_v47 }
 0x362   : > { %6649 = vmatmul.mubr.msk.f32.gmra.mxu0 %vm1952_vm7, %v8394_v22  ;;  %3106 = vmatprep.subr.mxu0 %v10556_v5 }
 0x363   : > { %3107 = vmatpush1.msra.mxu0 %v10555_v61  ;;  %2943 = vmatprep.mubr.f32.mxu0 %v10527_v46 }
 0x364   : > { %3108 = vmatprep.subr.mxu0 %v10558_v23 }
 0x365   : > { %3109 = vmatpush1.msra.mxu0 %v10557_v52 }
 0x366   : > { %6650 = vmatmul.mubr.msk.f32.gmra.mxu0 %vm1952_vm7, %v8406_v31  ;;  %3312 = vmatprep.subr.mxu0 %v10552_v9  ;;  %v8667_v9 = vpop.f32.mrf.mxu1 }
 0x367   : > { %2949 = vmatprep.mubr.f32.mxu0 %v10527_v46 }
 0x36a   : > { %6651 = vmatmul.mubr.msk.f32.gmra.mxu0 %vm1952_vm7, %v8417_v32 }
 0x36b   : > { %3142 = vmatprep.mubr.f32.mxu0 %v10527_v46 }
 0x36e   : > { %6660 = vmatmul.mubr.msk.f32.vlgmr.msra.gmra.mxu0 %vm1952_vm7, %v8425_v16 }
 0x36f   : > { %3313 = vmatpush1.msra.mxu0 %v10551_v60  ;;  %3148 = vmatprep.mubr.f32.mxu0 %v10527_v46 }
 0x370   : > { %3314 = vmatprep.subr.mxu0 %v10554_v3 }
 0x371   : > { %3315 = vmatpush1.msra.mxu0 %v10553_v47  ;;  %v8669_v47 = vpop.f32.mrf.mxu1 }
 0x372   : > { %3316 = vmatprep.subr.mxu0 %v10556_v5  ;;  %6661 = vmatmul.mubr.msk.f32.gmra.mxu0 %vm1952_vm7, %v8434_v6 }
 0x373   : > { %3317 = vmatpush1.msra.mxu0 %v10555_v61  ;;  %3154 = vmatprep.mubr.f32.mxu0 %v10527_v46  ;;  %v8671_v3 = vpop.f32.mrf.mxu1  ;;  %v8673_v61 = vpop.f32.mrf.mxu0 }
 0x374   : > { %3318 = vmatprep.subr.mxu0 %v10558_v23 }
 0x375   : > { %3319 = vmatpush1.msra.mxu0 %v10557_v52  ;;  %v8675_v5 = vpop.f32.mrf.mxu1  ;;  %v8677_v52 = vpop.f32.mrf.mxu0 }
 0x376   : > { %6662 = vmatmul.mubr.msk.f32.gmra.mxu0 %vm1952_vm7, %v8446_v53  ;;  %6948 = vmatprep.subr.msk.mxu0 %vm3617_vm10, %v10578_v62 }
 0x377   : > { %3160 = vmatprep.mubr.f32.mxu0 %v10527_v46  ;;  %v8679_v23 = vpop.f32.mrf.mxu1  ;;  %v8681_v27 = vpop.f32.mrf.mxu0 }
 0x379   : > { %v8683_v49 = vpop.f32.mrf.mxu1 }
 0x37a   : > { %6663 = vmatmul.mubr.msk.f32.gmra.mxu0 %vm1952_vm7, %v8456_v18 }
 0x37b   : > { %3352 = vmatprep.mubr.f32.mxu0 %v10527_v46  ;;  %v8685_v17 = vpop.f32.mrf.mxu1 }
 0x37d   : > { %v8687_v31 = vpop.f32.mrf.mxu1 }
 0x37e   : > { %6668 = vmatmul.mubr.msk.f32.vlgmr.msra.gmra.mxu0 %vm1952_vm7, %v8464_v10 }
 0x37f   : > { %3358 = vmatprep.mubr.f32.mxu0 %v10527_v46  ;;  %6949 = vmatpush3.msk.msra.mxu0 %vm3617_vm10, %v10578_v62  ;;  %v8689_v6 = vpop.f32.mrf.mxu1 }
 0x380   : > { %6950 = vmatprep.subr.msk.mxu0 %vm7370_vm3, %v10578_v62 }
 0x381   : > { %6951 = vmatpush3.msk.msra.mxu0 %vm7370_vm3, %v10578_v62  ;;  %v8691_v10 = vpop.f32.mrf.mxu1 }
 0x382   : > { %6669 = vmatmul.mubr.msk.f32.gmra.mxu0 %vm1952_vm7, %v8472_v13 }
 0x383   : > { %3364 = vmatprep.mubr.f32.mxu0 %v10527_v46 }
 0x386   : > { %6670 = vmatmul.mubr.msk.f32.gmra.mxu0 %vm1952_vm7, %v8480_v51 }
 0x387   : > { %3370 = vmatprep.mubr.f32.mxu0 %v10527_v46 }
 0x38a   : > { %6671 = vmatmul.mubr.msk.f32.gmra.mxu0 %vm1952_vm7, %v8488_v33  ;;  %v8693_v33 = vpop.permute.xlu0 %3487 }
 0x38b   : > { %6952 = vmatprep.mubr.msk.f32.mxu0 %vm666_vm5, %v8519_v36  ;;  %v8695_v36 = vpop.f32.mrf.mxu1 }
 0x38d   : > { %v8701_v44 = vpop.f32.mrf.mxu1 }
 0x38e   : > { %6953 = vmatmul.mubr.msk.f32.vlgmr.msra.gmra.mxu0 %vm666_vm5, %v8521_v14  ;;  %v8707_v59 = vpop.permute.xlu0 %3527 }
 0x38f   : > { %6955 = vmatprep.mubr.msk.f32.mxu0 %vm666_vm5, %v8523_v2  ;;  %v2236_v2 = vadd.f32 %v8289_v7, %v8255_v8  ;;  %v2694_v8 = vadd.f32 %v8578_v30, %v2242_v38  ;;  %v8713_v63 = vpop.f32.mrf.mxu1 }
 0x391   : > { %v2690_v42 = vadd.f32 %v8573_v34, %v2236_v2  ;;  %v8725_v38 = vpop.f32.mrf.mxu1 }
 0x392   : > { %6956 = vmatmul.mubr.msk.f32.gmra.mxu0 %vm666_vm5, %v8533_v35 }
 0x393   : > { %4056 = vmatprep.mubr.f32.mxu0 %v10527_v46 }
 0x41e   : > { %v2933_v29 = vpop.f32.mrf.mxu0 }
 0x420   : > { %v2935_v58 = vpop.f32.mrf.mxu0 }
 0x422   : > { %v2939_v37 = vpop.f32.mrf.mxu0 }
 0x423   : > { %v3049_v2 = vadd.f32 %v2939_v37, %v8566_v20 }
 0x424   : > { %v2941_v22 = vpop.f32.mrf.mxu0 }
 0x426   : > { %v2945_v32 = vpop.f32.mrf.mxu0 }
 0x427   : > { %v3053_v21 = vadd.f32 %v2945_v32, %v8571_v28  ;;  %v2230_v28 = vadd.f32 %v8283_v54, %v8246_v0  ;;  %v8723_v0 = vpop.permute.xlu0 %3522 }
 0x428   : > { %v2947_v16 = vpop.f32.mrf.mxu0 }
 0x429   : > { %v3054_v15 = vadd.f32 %v2947_v16, %v2690_v42  ;;  %v2686_v16 = vadd.f32 %v8568_v55, %v2230_v28 }
 0x42a   : > { %v2951_v53 = vpop.f32.mrf.mxu0 }
 0x42b   : > { %v3057_v7 = vadd.f32 %v2951_v53, %v8576_v41  ;;  %v10590_v41 = vld [vmem:[#allocation23_spill] sm:$0xff] }
 0x42c   : > { %v2953_v18 = vpop.f32.mrf.mxu0 }
 0x42d   : > { %v3058_v60 = vadd.f32 %v2953_v18, %v2694_v8 }
 0x42e   : > { %v3144_v13 = vpop.f32.mrf.mxu0 }
 0x430   : > { %v3146_v51 = vpop.f32.mrf.mxu0 }
 0x432   : > { %v3150_v14 = vpop.f32.mrf.mxu0 }
 0x433   : > { %v3260_v18 = vadd.f32 %v3150_v14, %v3049_v2  ;;  %v8739_v14 = vpop.f32.mrf.mxu1 }
 0x434   : > { %v3152_v35 = vpop.f32.mrf.mxu0 }
 0x436   : > { %v3156_v48 = vpop.f32.mrf.mxu0 }
 0x437   : > { %v3264_v45 = vadd.f32 %v3156_v48, %v3053_v21  ;;  %v10589_v21 = vld [vmem:[#allocation24_spill] sm:$0xff]  ;;  %v8721_v48 = vpop.permute.xlu1 %3477 }
 0x438   : > { %v3158_v19 = vpop.f32.mrf.mxu0  ;;  %v2224_v53 = vadd.f32 %v10590_v41, %v10589_v21 }
 0x439   : > { %v3265_v34 = vadd.f32 %v3158_v19, %v3054_v15  ;;  %v3498_v4 = vmul.f32 %v8705_v39, %v3264_v45  ;;  %v3050_v15 = vadd.f32 %v2941_v22, %v2686_v16  ;;  %v3045_v19 = vadd.f32 %v2933_v29, %v8559_v1 }
 0x43a   : > { %v3162_v11 = vpop.f32.mrf.mxu0  ;;  %v2682_v37 = vadd.f32 %v8563_v50, %v2224_v53 }
 0x43b   : > { %v3268_v32 = vadd.f32 %v3162_v11, %v3057_v7  ;;  %v3499_v30 = vmul.f32 %v8705_v39, %v3265_v34  ;;  %v3538_v45 = vadd.f32 %v8723_v0, %v3498_v4  ;;  %v3261_v8 = vadd.f32 %v3152_v35, %v3050_v15  ;;  %v8744_v29 = vpop.permute.xlu1 %3472 }
 0x43c   : > { %v3164_v42 = vpop.f32.mrf.mxu0  ;;  %v8737_v11 = vstv %s6676_s25  ;;  %v3046_v22 = vadd.f32 %v2935_v58, %v2682_v37  ;;  %v3256_v4 = vadd.f32 %v3144_v13, %v3045_v19  ;;  %v3253_v13 = vpop.f32.mrf.mxu1 }
 0x43d   : > { %v3269_v54 = vadd.f32 %v3164_v42, %v3058_v60  ;;  %v3502_v55 = vmul.f32 %v8693_v33, %v3268_v32  ;;  %v3539_v7 = vadd.f32 %v8723_v0, %v3499_v30  ;;  %v3494_v60 = vmul.f32 %v8721_v48, %v3260_v18  ;;  %v8749_v42 = vpop.permute.xlu0 %3517 }
 0x43e   : > { %v8729_v20 = vpop.f32.mrf.mxu0  ;;  %v3572_v1 = vmul.f32 %v8737_v11, %v3538_v45  ;;  %vm3555_vm3 = vcmp.gt.f32.partialorder %v3538_v45, 0.0  ;;  %v3257_v35 = vadd.f32 %v3146_v51, %v3046_v22  ;;  %v3495_v16 = vmul.f32 %v8721_v48, %v3261_v8 }
 0x43f   : > { %v3503_v34 = vmul.f32 %v8693_v33, %v3269_v54  ;;  %v3542_v32 = vadd.f32 %v8707_v59, %v3502_v55  ;;  %v3573_v58 = vmul.f32 %v8737_v11, %v3539_v7  ;;  %vm3556_vm12 = vcmp.gt.f32.partialorder %v3539_v7, 0.0 }
 0x440   : > { %v8735_v28 = vpop.f32.mrf.mxu0  ;;  %v3490_v21 = vmul.f32 %v8744_v29, %v3256_v4  ;;  %v3534_v41 = vadd.f32 %v8749_v42, %v3494_v60  ;;  %v3588_v54 = vsel %vm3555_vm3, %v3538_v45, %v3572_v1  ;;  %v3491_v18 = vmul.f32 %v8744_v29, %v3257_v35  ;;  %v8765_v45 = vpop.f32.mrf.mxu1 }
 0x441   : > { %v3543_v2 = vadd.f32 %v8707_v59, %v3503_v34  ;;  %v3576_v15 = vmul.f32 %v8737_v11, %v3542_v32  ;;  %vm3559_vm11 = vcmp.gt.f32.partialorder %v3542_v32, 0.0  ;;  %v3535_v55 = vadd.f32 %v8749_v42, %v3495_v16  ;;  %v8759_v34 = vpop.permute.xlu1 %3512 }
 0x442   : > { %v3360_v50 = vpop.f32.mrf.mxu0  ;;  %v3589_v19 = vsel %vm3556_vm12, %v3539_v7, %v3573_v58  ;;  %v3530_v4 = vadd.f32 %v8759_v34, %v3490_v21  ;;  %v3568_v60 = vmul.f32 %v8737_v11, %v3534_v41  ;;  %vm3551_vm14 = vcmp.gt.f32.partialorder %v3534_v41, 0.0  ;;  %v8779_v21 = vpop.f32.mrf.mxu1 }
 0x443   : > { %v3577_v8 = vmul.f32 %v8737_v11, %v3543_v2  ;;  %vm3560_vm13 = vcmp.gt.f32.partialorder %v3543_v2, 0.0  ;;  %v3592_v35 = vsel %vm3559_vm11, %v3542_v32, %v3576_v15  ;;  %v3531_v16 = vadd.f32 %v8759_v34, %v3491_v18 }
 0x444   : > { %v3362_v30 = vpop.f32.mrf.mxu0  ;;  %v3569_v58 = vmul.f32 %v8737_v11, %v3535_v55  ;;  %vm3552_vm15 = vcmp.gt.f32.partialorder %v3535_v55, 0.0  ;;  %v3564_v32 = vmul.f32 %v8737_v11, %v3530_v4  ;;  %v3584_v15 = vsel %vm3551_vm14, %v3534_v41, %v3568_v60 }
 0x445   : > { %vm3547_vm0 = vcmp.gt.f32.partialorder %v3530_v4, 0.0  ;;  %v3565_v18 = vmul.f32 %v8737_v11, %v3531_v16  ;;  %vm3548_vm1 = vcmp.gt.f32.partialorder %v3531_v16, 0.0  ;;  %v2695_v41 = vadd.f32 %v8677_v52, %v8546_v56  ;;  %v10600_v56 = vld [vmem:[#allocation25_spill] sm:$0xff] }
 0x446   : > { %v3366_v53 = vpop.f32.mrf.mxu0  ;;  %v3580_v60 = vsel %vm3547_vm0, %v3530_v4, %v3564_v32  ;;  %vm3926_vm14 = vcmask 97280  }
 0x447   : > { %v8754_v51 = vadd.f32 %v3588_v54, %v3366_v53  ;;  %v3593_v54 = vsel %vm3560_vm13, %v3543_v2, %v3577_v8  ;;  %v3585_v2 = vsel %vm3552_vm15, %v3535_v55, %v3569_v58  ;;  %v3059_v55 = vadd.f32 %v8685_v17, %v2695_v41 }
 0x448   : > { %v3368_v37 = vpop.f32.mrf.mxu0  ;;  %v8787_v8 = vadd.f32 %v3585_v2, %v3362_v30  ;;  %v3581_v58 = vsel %vm3548_vm1, %v3531_v16, %v3565_v18  ;;  %v3055_v17 = vadd.f32 %v8679_v23, %v8561_v12  ;;  %v10604_v2 = vld [vmem:[#allocation30_spill] sm:$0xff] }
 0x449   : > { %10591 = vst [vmem:[#allocation31_spill] sm:$0xff] %v8754_v51  ;;  %v8761_v22 = vadd.f32 %v3589_v19, %v3368_v37  ;;  %3910 = vrot.lane.b32.xlu0 %v8754_v51, %s7185_s29  ;;  %v8782_v19 = vadd.f32 %v3584_v15, %v3360_v50  ;;  %v8795_v50 = vpop.f32.mrf.mxu1 }
 0x44a   : > { %v3372_v1 = vpop.f32.mrf.mxu0  ;;  %10596 = vst [vmem:[#allocation32_spill] sm:$0xff] %v8787_v8  ;;  %v3266_v16 = vadd.f32 %v8713_v63, %v3055_v17 }
 0x44b   : > { %10592 = vst [vmem:[#allocation29_spill] sm:$0xff] %v8761_v22  ;;  %v8769_v7 = vadd.f32 %v3592_v35, %v3372_v1  ;;  %3912 = vrot.lane.b32.xlu1 %v8761_v22, %s7185_s29  ;;  %10595 = vst [vmem:[#allocation37_spill] sm:$0xff] %v8782_v19  ;;  %v10597_v1 = vld [vmem:[#allocation27_spill] sm:$0xff]  ;;  %v8813_v4 = vpop.f32.mrf.mxu1 }
 0x44c   : > { %v3374_v53 = vpop.f32.mrf.mxu0  ;;  %v2331_v35 = vadd.f32 %v8552_v24, %v10597_v1  ;;  %v2325_v24 = vadd.f32 %v8544_v25, %v10600_v56  ;;  %v10601_v25 = vld [vmem:[#allocation26_spill] sm:$0xff] }
 0x44d   : > { %10593 = vst [vmem:[#allocation22_spill] sm:$0xff] %v8769_v7  ;;  %v8775_v37 = vadd.f32 %v3593_v54, %v3374_v53  ;;  %3918 = vrot.lane.b32.xlu0 %v8769_v7, %s7185_s29  ;;  %v8798_v53 = vadd.f32 %v3580_v60, %v8729_v20  ;;  %v8805_v54 = vadd.f32 %v3581_v58, %v8735_v28  ;;  %v3455_v15 = vpop.f32.mrf.mxu1 }
 0x44e   : > { %v2696_v30 = vadd.f32 %v8681_v27, %v2331_v35  ;;  %v3270_v20 = vadd.f32 %v8739_v14, %v3059_v55  ;;  %v2692_v27 = vadd.f32 %v8673_v61, %v2325_v24  ;;  %v10602_v61 = vld [vmem:[#allocation21_spill] sm:$0xff]  ;;  %v3500_v35 = vmul.f32 %v8705_v39, %v3266_v16 }
 0x44f   : > { %10594 = vst [vmem:[#allocation35_spill] sm:$0xff] %v8775_v37  ;;  %3920 = vrot.lane.b32.xlu1 %v8775_v37, %s7185_s29  ;;  %10598 = vst [vmem:[#allocation38_spill] sm:$0xff] %v8798_v53  ;;  %v3051_v23 = vadd.f32 %v8671_v3, %v10602_v61  ;;  %v3457_v41 = vpop.f32.mrf.mxu1  ;;  %v10605_v3 = vld [vmem:[#allocation20_spill] sm:$0xff] }
 0x450   : > { %10599 = vst [vmem:[#allocation33_spill] sm:$0xff] %v8805_v54  ;;  %v3060_v52 = vadd.f32 %v8687_v31, %v2696_v30  ;;  %v2319_v31 = vadd.f32 %v8542_v43, %v10601_v25  ;;  %v3056_v14 = vadd.f32 %v8683_v49, %v2692_v27  ;;  %v3504_v32 = vmul.f32 %v8693_v33, %v3270_v20  ;;  %v10603_v43 = vld [vmem:[#allocation28_spill] sm:$0xff] }
 0x451   : > { %3902 = vrot.lane.b32.xlu0 %v8782_v19, %s7185_s29  ;;  %v2313_v49 = vadd.f32 %v10604_v2, %v10603_v43  ;;  %v3262_v1 = vadd.f32 %v8695_v36, %v3051_v23  ;;  %v3540_v24 = vadd.f32 %v8723_v0, %v3500_v35 }
 0x452   : > { %v3271_v28 = vadd.f32 %v3253_v13, %v3060_v52  ;;  %v2688_v12 = vadd.f32 %v8556_v40, %v2319_v31  ;;  %v3267_v13 = vadd.f32 %v8725_v38, %v3056_v14  ;;  %v3544_v40 = vadd.f32 %v8707_v59, %v3504_v32  ;;  %v3461_v52 = vpop.f32.mrf.mxu1 }
 0x453   : > { %3904 = vrot.lane.b32.xlu1 %v8787_v8, %s7185_s29  ;;  %v2684_v60 = vadd.f32 %v10605_v3, %v2313_v49  ;;  %v3496_v56 = vmul.f32 %v8721_v48, %v3262_v1  ;;  %v3574_v27 = vmul.f32 %v8737_v11, %v3540_v24  ;;  %vm3557_vm9 = vcmp.gt.f32.partialorder %v3540_v24, 0.0 }
 0x454   : > { %v3505_v18 = vmul.f32 %v8693_v33, %v3271_v28  ;;  %v3052_v63 = vadd.f32 %v8675_v5, %v2688_v12  ;;  %v10606_v33 = vld [vmem:[#allocation19_spill] sm:$0xff]  ;;  %v3501_v55 = vmul.f32 %v8705_v39, %v3267_v13  ;;  %vm3561_vm2 = vcmp.gt.f32.partialorder %v3544_v40, 0.0  ;;  %v3463_v28 = vpop.f32.mrf.mxu1 }
 0x455   : > { %3894 = vrot.lane.b32.xlu0 %v8798_v53, %s7185_s29  ;;  %v3047_v38 = vadd.f32 %v8667_v9, %v10606_v33  ;;  %v3048_v36 = vadd.f32 %v8669_v47, %v2684_v60  ;;  %v3578_v9 = vmul.f32 %v8737_v11, %v3544_v40  ;;  %v3536_v20 = vadd.f32 %v8749_v42, %v3496_v56 }
 0x456   : > { %v3263_v30 = vadd.f32 %v8701_v44, %v3052_v63  ;;  %v3545_v5 = vadd.f32 %v8707_v59, %v3505_v18  ;;  %v3541_v39 = vadd.f32 %v8723_v0, %v3501_v55  ;;  %v3590_v12 = vsel %vm3557_vm9, %v3540_v24, %v3574_v27 }
 0x457   : > { %3896 = vrot.lane.b32.xlu1 %v8805_v54, %s7185_s29  ;;  %v3258_v58 = vadd.f32 %v8689_v6, %v3047_v38  ;;  %v3259_v44 = vadd.f32 %v8691_v10, %v3048_v36  ;;  %v3594_v17 = vsel %vm3561_vm2, %v3544_v40, %v3578_v9  ;;  %v3570_v32 = vmul.f32 %v8737_v11, %v3536_v20  ;;  %v6954_v9 = vpop.f32.mrf.mxu0 }
 0x458   : > { %v3497_v47 = vmul.f32 %v8721_v48, %v3263_v30  ;;  %v3579_v59 = vmul.f32 %v8737_v11, %v3545_v5  ;;  %vm3562_vm4 = vcmp.gt.f32.partialorder %v3545_v5, 0.0  ;;  %v8868_v10 = vadd.f32 %v3594_v17, %v3461_v52 }
 0x459   : > { %3758 = vrot.lane.b32.xlu0 %v8769_v7, %s7186_s17  ;;  %v3492_v6 = vmul.f32 %v8744_v29, %v3258_v58  ;;  %v3493_v48 = vmul.f32 %v8744_v29, %v3259_v44  ;;  %v3575_v25 = vmul.f32 %v8737_v11, %v3541_v39  ;;  %vm3558_vm10 = vcmp.gt.f32.partialorder %v3541_v39, 0.0  ;;  %v3699_v17 = vpop.f32.mrf.mxu0 }
 0x45a   : > { %v3537_v0 = vadd.f32 %v8749_v42, %v3497_v47  ;;  %v3595_v31 = vsel %vm3562_vm4, %v3545_v5, %v3579_v59  ;;  %vm3553_vm3 = vcmp.gt.f32.partialorder %v3536_v20, 0.0  ;;  %v8881_v61 = vadd.f32 %v3590_v12, %v3455_v15 }
 0x45b   : > { %3752 = vrot.lane.b32.xlu1 %v8761_v22, %s7186_s17  ;;  %v8875_v14 = vadd.f32 %v3595_v31, %v3463_v28  ;;  %v3532_v16 = vadd.f32 %v8759_v34, %v3492_v6  ;;  %v3533_v29 = vadd.f32 %v8759_v34, %v3493_v48  ;;  %v3591_v23 = vsel %vm3558_vm10, %v3541_v39, %v3575_v25  ;;  %v9035_v6 = vld [vmem:[%s10352_s9 + $0x40] sm:$0xff]  ;;  %v9048_v25 = vld [vmem:[%s10352_s9 + $0x48] sm:$0xff] }
 0x45c   : > { %v3571_v42 = vmul.f32 %v8737_v11, %v3537_v0  ;;  %vm3554_vm12 = vcmp.gt.f32.partialorder %v3537_v0, 0.0  ;;  %v8887_v13 = vadd.f32 %v3591_v23, %v3457_v41  ;;  %v3586_v43 = vsel %vm3553_vm3, %v3536_v20, %v3570_v32  ;;  %v9062_v23 = vld [vmem:[%s10352_s9 + $0x50] sm:$0xff] }
 0x45d   : > { %3750 = vrot.lane.b32.xlu0 %v8754_v51, %s7186_s17  ;;  %v3566_v18 = vmul.f32 %v8737_v11, %v3532_v16  ;;  %vm3549_vm11 = vcmp.gt.f32.partialorder %v3532_v16, 0.0  ;;  %v8893_v15 = vadd.f32 %v3586_v43, %v8795_v50  ;;  %v3567_v34 = vmul.f32 %v8737_v11, %v3533_v29  ;;  %v6964_v11 = vpop.f32.mrf.mxu1 }
 0x45e   : > { %v3587_v2 = vsel %vm3554_vm12, %v3537_v0, %v3571_v42  ;;  %vm3550_vm13 = vcmp.gt.f32.partialorder %v3533_v29, 0.0 }
 0x45f   : > { %3760 = vrot.lane.b32.xlu1 %v8775_v37, %s7186_s17  ;;  %10607 = vst [vmem:[#allocation39_spill] sm:$0xff] %v8893_v15  ;;  %v8899_v49 = vadd.f32 %v3587_v2, %v8813_v4  ;;  %v3582_v63 = vsel %vm3549_vm11, %v3532_v16, %v3566_v18  ;;  %v3583_v50 = vsel %vm3550_vm13, %v3533_v29, %v3567_v34  ;;  %v6957_v16 = vpop.f32.mrf.mxu0 }
 0x460   : > { %v8904_v1 = vadd.f32 %v3582_v63, %v8765_v45  ;;  %v8909_v35 = vadd.f32 %v3583_v50, %v8779_v21  ;;  %v3875_v45 = vpop.f32.mrf.mxu1 }
 0x461   : > { %3742 = vrot.lane.b32.xlu0 %v8782_v19, %s7186_s17  ;;  %10608 = vst [vmem:[#allocation34_spill] sm:$0xff] %v8899_v49  ;;  %v3709_v43 = vpop.f32.mrf.mxu0 }
 0x462   : > { %10609 = vst [vmem:[#allocation40_spill] sm:$0xff] %v8904_v1  ;;  %10610 = vst [vmem:[#allocation36_spill] sm:$0xff] %v8909_v35  ;;  %v6967_v40 = vpop.f32.mrf.mxu1 }
 0x463   : > { %3744 = vrot.lane.b32.xlu1 %v8787_v8, %s7186_s17 }
 0x464   : > { %v3885_v60 = vpop.f32.mrf.mxu1 }
 0x465   : > { %3734 = vrot.lane.b32.xlu0 %v8798_v53, %s7186_s17 }
 0x467   : > { %3736 = vrot.lane.b32.xlu1 %v8805_v54, %s7186_s17 }
 0x469   : > { %3922 = vrot.lane.b32.xlu0 %v8868_v10, %s7185_s29 }
 0x46b   : > { %3924 = vrot.lane.b32.xlu1 %v8875_v14, %s7185_s29 }
 0x46d   : > { %3914 = vrot.lane.b32.xlu0 %v8881_v61, %s7185_s29 }
 0x46f   : > { %3916 = vrot.lane.b32.xlu1 %v8887_v13, %s7185_s29 }
 0x471   : > { %3906 = vrot.lane.b32.xlu0 %v8893_v15, %s7185_s29 }
 0x473   : > { %3908 = vrot.lane.b32.xlu1 %v8899_v49, %s7185_s29 }
 0x475   : > { %3898 = vrot.lane.b32.xlu0 %v8904_v1, %s7185_s29 }
 0x477   : > { %3900 = vrot.lane.b32.xlu1 %v8909_v35, %s7185_s29  ;;  %s6382_s29 = scalar_lea.hbm %s10358_s15, %s6843_s13 }
 0x479   : > { %3762 = vrot.lane.b32.xlu0 %v8868_v10, %s7186_s17 }
 0x47b   : > { %3764 = vrot.lane.b32.xlu1 %v8875_v14, %s7186_s17 }
 0x47d   : > { %3754 = vrot.lane.b32.xlu0 %v8881_v61, %s7186_s17 }
 0x47f   : > { %3756 = vrot.lane.b32.xlu1 %v8887_v13, %s7186_s17 }
 0x481   : > { %3746 = vrot.lane.b32.xlu0 %v8893_v15, %s7186_s17 }
 0x483   : > { %3748 = vrot.lane.b32.xlu1 %v8899_v49, %s7186_s17 }
 0x485   : > { %3738 = vrot.lane.b32.xlu0 %v8904_v1, %s7186_s17 }
 0x487   : > { %3740 = vrot.lane.b32.xlu1 %v8909_v35, %s7186_s17  ;;  %s6368_s17 = scalar_lea.sflag [#allocation6], %s612_s26 }
 0x489   : > { %4584 = vrot.lane.b32.xlu0 %v8769_v7, %s7184_s22 }
 0x48b   : > { %4578 = vrot.lane.b32.xlu1 %v8761_v22, %s7184_s22 }
 0x48d   : > { %4576 = vrot.lane.b32.xlu0 %v8754_v51, %s7184_s22 }
 0x48f   : > { %4586 = vrot.lane.b32.xlu1 %v8775_v37, %s7184_s22 }
 0x491   : > { %4568 = vrot.lane.b32.xlu0 %v8782_v19, %s7184_s22 }
 0x493   : > { %4570 = vrot.lane.b32.xlu1 %v8787_v8, %s7184_s22 }
 0x495   : > { %4560 = vrot.lane.b32.xlu0 %v8798_v53, %s7184_s22 }
 0x497   : > { %4562 = vrot.lane.b32.xlu1 %v8805_v54, %s7184_s22 }
 0x499   : > { %4588 = vrot.lane.b32.xlu0 %v8868_v10, %s7184_s22 }
 0x49b   : > { %4590 = vrot.lane.b32.xlu1 %v8875_v14, %s7184_s22 }
 0x49d   : > { %4580 = vrot.lane.b32.xlu0 %v8881_v61, %s7184_s22 }
 0x49f   : > { %4582 = vrot.lane.b32.xlu1 %v8887_v13, %s7184_s22 }
 0x4a1   : > { %4572 = vrot.lane.b32.xlu0 %v8893_v15, %s7184_s22 }
 0x4a3   : > { %4574 = vrot.lane.b32.xlu1 %v8899_v49, %s7184_s22 }
 0x4a5   : > { %4564 = vrot.lane.b32.xlu0 %v8904_v1, %s7184_s22 }
 0x4a7   : > { %4566 = vrot.lane.b32.xlu1 %v8909_v35, %s7184_s22  ;;  %s6841_s22 = sshll.u32 %s7359_s18, 6 }
 0x4a8   : > { %s9004_s24 = scalar_lea.vmem %s10354_s11, %s6841_s22  ;;  %s9027_s27 = scalar_lea.vmem %s10355_s12, %s6841_s22 }
 0x4a9   : > { %5031 = vrot.lane.b32.xlu0 %v8769_v7, %s10515_s16  ;;  %v5911_v56 = vld [vmem:[%s9004_s24] sm:$0xff]  ;;  %v5912_v44 = vld [vmem:[%s9004_s24 + $0x8] sm:$0xff]  ;;  %v5913_v59 = vld [vmem:[%s9004_s24 + $0x10] sm:$0xff] }
 0x4aa   : > { %v5991_v28 = vld [vmem:[%s9027_s27] sm:$0xff]  ;;  %v5992_v0 = vld [vmem:[%s9027_s27 + $0x8] sm:$0xff]  ;;  %v5914_v32 = vld [vmem:[%s9004_s24 + $0x18] sm:$0xff] }
 0x4ab   : > { %5037 = vrot.lane.b32.xlu1 %v8875_v14, %s10515_s16  ;;  %v5993_v42 = vld [vmem:[%s9027_s27 + $0x10] sm:$0xff]  ;;  %v5915_v2 = vld [vmem:[%s9004_s24 + $0x20] sm:$0xff] }
 0x4ad   : > { %5035 = vrot.lane.b32.xlu0 %v8868_v10, %s10515_s16 }
 0x4af   : > { %5025 = vrot.lane.b32.xlu1 %v8761_v22, %s10515_s16 }
 0x4b1   : > { %5023 = vrot.lane.b32.xlu0 %v8754_v51, %s10515_s16 }
 0x4b3   : > { %5029 = vrot.lane.b32.xlu1 %v8887_v13, %s10515_s16 }
 0x4b5   : > { %5027 = vrot.lane.b32.xlu0 %v8881_v61, %s10515_s16 }
 0x4b7   : > { %5017 = vrot.lane.b32.xlu1 %v8787_v8, %s10515_s16 }
 0x4b9   : > { %5015 = vrot.lane.b32.xlu0 %v8782_v19, %s10515_s16 }
 0x4bb   : > { %v3911_v21 = vpop.permute.xlu0 %3910  ;;  %5021 = vrot.lane.b32.xlu1 %v8899_v49, %s10515_s16 }
 0x4bc   : > { %v3957_v5 = vsel %vm3926_vm14, %v3885_v60, %v3911_v21  ;;  %v9083_v60 = vld [vmem:[%s10352_s9 + $0x58] sm:$0xff] }
 0x4bd   : > { %5019 = vrot.lane.b32.xlu0 %v8893_v15, %s10515_s16  ;;  %v8985_v4 = vpop.permute.xlu1 %3912 }
 0x4be   : > { %v3933_v55 = vsel %vm3926_vm14, %v3911_v21, %v8985_v4  ;;  %v5994_v21 = vld [vmem:[%s9027_s27 + $0x18] sm:$0xff] }
 0x4bf   : > { %v3919_v41 = vpop.permute.xlu0 %3918  ;;  %5033 = vrot.lane.b32.xlu1 %v8775_v37, %s10515_s16 }
 0x4c0   : > { %v3958_v38 = vsel %vm3926_vm14, %v6967_v40, %v3919_v41  ;;  %v9078_v40 = vadd.s32 8, %v10576_v57 }
 0x4c1   : > { %5007 = vrot.lane.b32.xlu0 %v8798_v53, %s10515_s16  ;;  %v8992_v3 = vpop.permute.xlu1 %3920 }
 0x4c2   : > { %v3936_v33 = vsel %vm3926_vm14, %v3919_v41, %v8992_v3  ;;  %vm4470_vm15 = vcmp.eq.s32.totalorder %v8493_v26, %v9078_v40  ;;  %v9204_v40 = vld [vmem:[%s10352_s9 + $0x10] sm:$0xff] }
 0x4c3   : > { %v3903_v30 = vpop.permute.xlu0 %3902  ;;  %5009 = vrot.lane.b32.xlu1 %v8805_v54, %s10515_s16  ;;  %4016 = vmatprep.subr.mxu0 %v3936_v33 }
 0x4c4   : > { %4017 = vmatpush1.msra.mxu0 %v3958_v38  ;;  %v3956_v24 = vsel %vm3926_vm14, %v6964_v11, %v3903_v30  ;;  %v5916_v38 = vld [vmem:[%s9004_s24 + $0x28] sm:$0xff] }
 0x4c5   : > { %5011 = vrot.lane.b32.xlu0 %v8904_v1, %s10515_s16  ;;  %4018 = vmatprep.subr.mxu0 %v3933_v55  ;;  %v9011_v36 = vpop.permute.xlu1 %3904 }
 0x4c6   : > { %4019 = vmatpush1.msra.mxu0 %v3957_v5  ;;  %v3930_v58 = vsel %vm3926_vm14, %v3903_v30, %v9011_v36  ;;  %v5995_v5 = vld [vmem:[%s9027_s27 + $0x20] sm:$0xff] }
 0x4c7   : > { %5013 = vrot.lane.b32.xlu1 %v8909_v35, %s10515_s16  ;;  %v3895_v52 = vpop.permute.xlu0 %3894  ;;  %4020 = vmatprep.subr.mxu0 %v3930_v58  ;;  %s614_s16 = scalar_lea.vmem [#allocation8], %s6548_s20 }
 0x4c8   : > { %4021 = vmatpush1.msra.mxu0 %v3956_v24  ;;  %v3955_v20 = vsel %vm3926_vm14, %v3875_v45, %v3895_v52  ;;  %v9100_v24 = vld [vmem:[%s10352_s9 + $0x60] sm:$0xff]  ;;  %s6384_s25 = sshll.u32 %s614_s16, 4  ;;  %s6385_s25 = int_to_ptr.vmem [resolvable:$true] %s6384_s25 }
 0x4c9   : > { %5921 = vperm.xlu0 %7067, %v5911_v56   ;;  %v9020_v47 = vpop.permute.xlu1 %3896  ;;  %s7092_s22 = scalar_lea.vmem %s6385_s25, 64  ;;  %p7099_p0 = scmp.lt.s32.totalorder %s6385_s25, %s7097_s21 }
 0x4ca   : > { %v3927_v39 = vsel %vm3926_vm14, %v3895_v52, %v9020_v47  ;;  %v6201_v52 = vld [vmem:[%s10357_s14] sm:$0xff]  ;;  %p7093_p10 = scmp.ne.s32.totalorder %s6385_s25, %s7092_s22 }
 0x4cb   : > { %5926 = vperm.xlu1 %7068, %v5912_v44   ;;  %v3759_v27 = vpop.permute.xlu0 %3758  ;;  %4022 = vmatprep.subr.mxu0 %v3927_v39  ;;  %v6202_v39 = vld [vmem:[%s10357_s14 + $0x8] sm:$0xff] }
 0x4cc   : > { %4023 = vmatpush1.msra.mxu0 %v3955_v20  ;;  %v3797_v18 = vsel %vm666_vm5, %v6957_v16, %v3759_v27  ;;  %p7094_p11 = pnand %p7093_p10, %p7309_p4 }
 0x4cd   : > { %5931 = vperm.xlu0 %7067, %v5913_v59   ;;  %6699 = vmatmul.mubr.msk.f32.vlgmr.msra.gmra.mxu0 %vm1952_vm7, %v9035_v6  ;;  %v9041_v48 = vpop.permute.xlu1 %3752 }
 0x4ce   : > { %4062 = vmatprep.mubr.f32.mxu0 %v10527_v46  ;;  %p7095_p13 = pneg %p7094_p11 }
 0x4cf   : > { %6001 = vperm.xlu1 %7068, %v5991_v28   ;;  %v3751_v31 = vpop.permute.xlu0 %3750 }
 0x4d0   : > { %v3772_v63 = vsel %vm666_vm5, %v3751_v31, %v9041_v48  ;;  %v3796_v11 = vsel %vm666_vm5, %v3709_v43, %v3751_v31 }
 0x4d1   : > { %6006 = vperm.xlu0 %7067, %v5992_v0   ;;  %6700 = vmatmul.mubr.msk.f32.gmra.mxu0 %vm1952_vm7, %v9048_v25  ;;  %v9053_v12 = vpop.permute.xlu1 %3760  ;;  %v5996_v0 = vld [vmem:[%s9027_s27 + $0x28] sm:$0xff] }
 0x4d2   : > { %v3775_v29 = vsel %vm666_vm5, %v3759_v27, %v9053_v12  ;;  %4068 = vmatprep.mubr.f32.mxu0 %v10527_v46  ;;  %v9121_v27 = vld [vmem:[%s10352_s9 + $0x68] sm:$0xff] }
 0x4d3   : > { %5936 = vperm.xlu1 %7068, %v5914_v32   ;;  %v3743_v34 = vpop.permute.xlu0 %3742  ;;  %4266 = vmatprep.subr.mxu0 %v3775_v29  ;;  %v9134_v32 = vld [vmem:[%s10352_s9 + $0x70] sm:$0xff] }
 0x4d4   : > { %4267 = vmatpush1.msra.mxu0 %v3797_v18  ;;  %v3795_v33 = vsel %vm666_vm5, %v6954_v9, %v3743_v34  ;;  %v6203_v29 = vld [vmem:[%s10357_s14 + $0x10] sm:$0xff]  ;;  %v5918_v18 = vld [vmem:[%s9004_s24 + $0x38] sm:$0xff] }
 0x4d5   : > { %6011 = vperm.xlu0 %7067, %v5993_v42   ;;  %6701 = vmatmul.mubr.msk.f32.gmra.mxu0 %vm1952_vm7, %v9062_v23  ;;  %v9070_v50 = vpop.permute.xlu1 %3744 }
 0x4d6   : > { %4268 = vmatprep.subr.mxu0 %v3772_v63  ;;  %v3769_v45 = vsel %vm666_vm5, %v3743_v34, %v9070_v50  ;;  %4074 = vmatprep.mubr.f32.mxu0 %v10527_v46  ;;  %v5997_v63 = vld [vmem:[%s9027_s27 + $0x30] sm:$0xff] }
 0x4d7   : > { %4269 = vmatpush1.msra.mxu0 %v3796_v11  ;;  %5941 = vperm.xlu1 %7068, %v5915_v2   ;;  %v3735_v41 = vpop.permute.xlu0 %3734  ;;  %v9149_v2 = vld [vmem:[%s10352_s9 + $0x78] sm:$0xff] }
 0x4d8   : > { %4270 = vmatprep.subr.mxu0 %v3769_v45  ;;  %v3794_v58 = vsel %vm666_vm5, %v3699_v17, %v3735_v41  ;;  %v5917_v17 = vld [vmem:[%s9004_s24 + $0x30] sm:$0xff]  ;;  %v6204_v45 = vld [vmem:[%s10357_s14 + $0x18] sm:$0xff] }
 0x4d9   : > { %4271 = vmatpush1.msra.mxu0 %v3795_v33  ;;  %6016 = vperm.xlu0 %7067, %v5994_v21   ;;  %v9087_v30 = vpop.permute.xlu1 %3736  ;;  %v9164_v33 = vld [vmem:[%s10352_s9] sm:$0xff] }
 0x4da   : > { %6702 = vmatmul.mubr.msk.f32.gmra.mxu0 %vm1952_vm7, %v9083_v60  ;;  %v3766_v55 = vsel %vm666_vm5, %v3735_v41, %v9087_v30 }
 0x4db   : > { %5946 = vperm.xlu1 %7068, %v5916_v38   ;;  %v3923_v56 = vpop.permute.xlu0 %3922  ;;  %4272 = vmatprep.subr.mxu0 %v3766_v55  ;;  %v5998_v38 = vld [vmem:[%s9027_s27 + $0x38] sm:$0xff]  ;;  %s9998_s27 = sld [smem:[#allocation5 + $0x2]] }
 0x4dc   : > { %4080 = vmatprep.mubr.f32.mxu0 %v10527_v46  ;;  %4273 = vmatpush1.msra.mxu0 %v3794_v58  ;;  %v3937_v59 = vsel %vm3926_vm14, %v8992_v3, %v3923_v56 }
 0x4dd   : > { %6021 = vperm.xlu0 %7067, %v5995_v5   ;;  %v3925_v9 = vpop.permute.xlu1 %3924  ;;  %6968 = vmatprep.subr.msk.mxu0 %vm4470_vm15, %v10578_v62  ;;  %v6205_v5 = vld [vmem:[%s10357_s14 + $0x20] sm:$0xff] }
 0x4de   : > { %6703 = vmatmul.mubr.msk.f32.gmra.mxu0 %vm1952_vm7, %v9100_v24  ;;  %v3938_v44 = vsel %vm3926_vm14, %v3923_v56, %v3925_v9 }
 0x4df   : > { %6211 = vperm.xlu1 %7068, %v6201_v52   ;;  %v3915_v20 = vpop.permute.xlu0 %3914  ;;  %4129 = vmatprep.subr.mxu1 %v3938_v44  ;;  %v6206_v52 = vld [vmem:[%s10357_s14 + $0x28] sm:$0xff]  ;;  %v6207_v44 = vld [vmem:[%s10357_s14 + $0x30] sm:$0xff] }
 0x4e0   : > { %4086 = vmatprep.mubr.f32.mxu0 %v10527_v46  ;;  %4130 = vmatpush1.msra.mxu1 %v3937_v59  ;;  %v3934_v31 = vsel %vm3926_vm14, %v8985_v4, %v3915_v20 }
 0x4e1   : > { %6216 = vperm.xlu0 %7067, %v6202_v39   ;;  %v3917_v28 = vpop.permute.xlu1 %3916 }
 0x4e2   : > { %6704 = vmatmul.mubr.msk.f32.gmra.mxu0 %vm1952_vm7, %v9121_v27  ;;  %v3935_v3 = vsel %vm3926_vm14, %v3915_v20, %v3917_v28  ;;  %v6208_v20 = vld [vmem:[%s10357_s14 + $0x38] sm:$0xff] }
 0x4e3   : > { %5951 = vperm.xlu1 %7068, %v5917_v17   ;;  %v3907_v16 = vpop.permute.xlu0 %3906  ;;  %4131 = vmatprep.subr.mxu1 %v3935_v3 }
 0x4e4   : > { %4092 = vmatprep.mubr.f32.mxu0 %v10527_v46  ;;  %4132 = vmatpush1.msra.mxu1 %v3934_v31  ;;  %v3931_v43 = vsel %vm3926_vm14, %v9011_v36, %v3907_v16 }
 0x4e5   : > { %6026 = vperm.xlu0 %7067, %v5996_v0   ;;  %v3909_v42 = vpop.permute.xlu1 %3908  ;;  %v9221_v0 = vld [vmem:[%s10352_s9 + $0x18] sm:$0xff] }
 0x4e6   : > { %6705 = vmatmul.mubr.msk.f32.gmra.mxu0 %vm1952_vm7, %v9134_v32  ;;  %v3932_v4 = vsel %vm3926_vm14, %v3907_v16, %v3909_v42 }
 0x4e7   : > { %6221 = vperm.xlu1 %7068, %v6203_v29   ;;  %v3899_v34 = vpop.permute.xlu0 %3898  ;;  %4133 = vmatprep.subr.mxu1 %v3932_v4  ;;  %v9238_v29 = vld [vmem:[%s10352_s9 + $0x20] sm:$0xff] }
 0x4e8   : > { %4098 = vmatprep.mubr.f32.mxu0 %v10527_v46  ;;  %4134 = vmatpush1.msra.mxu1 %v3931_v43  ;;  %v3928_v21 = vsel %vm3926_vm14, %v9020_v47, %v3899_v34  ;;  %v9268_v43 = vld [vmem:[%s10352_s9 + $0x30] sm:$0xff] }
 0x4e9   : > { %5956 = vperm.xlu0 %7067, %v5918_v18   ;;  %v3901_v11 = vpop.permute.xlu1 %3900 }
 0x4ea   : > { %6706 = vmatmul.mubr.msk.f32.gmra.mxu0 %vm1952_vm7, %v9149_v2  ;;  %v3929_v36 = vsel %vm3926_vm14, %v3899_v34, %v3901_v11 }
 0x4eb   : > { %6031 = vperm.xlu1 %7068, %v5997_v63   ;;  %v3763_v41 = vpop.permute.xlu0 %3762  ;;  %4135 = vmatprep.subr.mxu1 %v3929_v36  ;;  %v9283_v63 = vld [vmem:[%s10352_s9 + $0x38] sm:$0xff]  ;;  %v9292_v36 = vld [vmem:[#allocation4] sm:$0xff] }
 0x4ec   : > { %4136 = vmatpush1.msra.mxu1 %v3928_v21  ;;  %4306 = vmatprep.mubr.f32.mxu0 %v10527_v46  ;;  %v3776_v58 = vsel %vm666_vm5, %v9053_v12, %v3763_v41  ;;  %v9297_v21 = vld [vmem:[#allocation4 + $0x8] sm:$0xff] }
 0x4ed   : > { %6226 = vperm.xlu0 %7067, %v6204_v45   ;;  %v3765_v55 = vpop.permute.xlu1 %3764  ;;  %6707 = vmatmul.mubr.msk.f32.vlgmr.msra.gmra.mxu1 %vm1952_vm7, %v9035_v6  ;;  %v9182_v6 = vld [vmem:[%s10352_s9 + $0x8] sm:$0xff] }
 0x4ee   : > { %6715 = vmatmul.mubr.msk.f32.vlgmr.msra.gmra.mxu0 %vm1952_vm7, %v9164_v33  ;;  %v3777_v47 = vsel %vm666_vm5, %v3763_v41, %v3765_v55  ;;  %4175 = vmatprep.mubr.f32.mxu1 %v10527_v46  ;;  %v9305_v55 = vld [vmem:[#allocation4 + $0x10] sm:$0xff] }
 0x4ef   : > { %6036 = vperm.xlu1 %7068, %v5998_v38   ;;  %v3755_v56 = vpop.permute.xlu0 %3754  ;;  %4379 = vmatprep.subr.mxu1 %v3777_v47 }
 0x4f0   : > { %4312 = vmatprep.mubr.f32.mxu0 %v10527_v46  ;;  %4380 = vmatpush1.msra.mxu1 %v3776_v58  ;;  %v3773_v39 = vsel %vm666_vm5, %v9041_v48, %v3755_v56 }
 0x4f1   : > { %6231 = vperm.xlu0 %7067, %v6205_v5   ;;  %v3757_v9 = vpop.permute.xlu1 %3756  ;;  %6969 = vmatpush3.msk.msra.mxu0 %vm4470_vm15, %v10578_v62  ;;  %v9310_v5 = vld [vmem:[#allocation4 + $0x18] sm:$0xff] }
 0x4f2   : > { %6716 = vmatmul.mubr.msk.f32.gmra.mxu0 %vm1952_vm7, %v9182_v6  ;;  %v3774_v12 = vsel %vm666_vm5, %v3755_v56, %v3757_v9  ;;  %6970 = vmatprep.subr.mxu0 %v10527_v46 }
 0x4f3   : > { %6236 = vperm.xlu1 %7068, %v6206_v52   ;;  %v3747_v59 = vpop.permute.xlu0 %3746  ;;  %4381 = vmatprep.subr.mxu1 %v3774_v12 }
 0x4f4   : > { %4318 = vmatprep.mubr.f32.mxu0 %v10527_v46  ;;  %4382 = vmatpush1.msra.mxu1 %v3773_v39  ;;  %v3770_v28 = vsel %vm666_vm5, %v9070_v50, %v3747_v59 }
 0x4f5   : > { %6241 = vperm.xlu0 %7067, %v6207_v44   ;;  %v3749_v17 = vpop.permute.xlu1 %3748  ;;  %6971 = vmatpush3.msra.mxu0 %v10527_v46 }
 0x4f6   : > { %6717 = vmatmul.mubr.msk.f32.gmra.mxu0 %vm1952_vm7, %v9204_v40  ;;  %v3771_v48 = vsel %vm666_vm5, %v3747_v59, %v3749_v17  ;;  %6708 = vmatmul.mubr.msk.f32.gmra.mxu1 %vm1952_vm7, %v9048_v25  ;;  %v9331_v59 = vld [vmem:[%s10352_s9 + $0x80] sm:$0xff]  ;;  %v9346_v17 = vld [vmem:[%s10352_s9 + $0x88] sm:$0xff] }
 0x4f7   : > { %6246 = vperm.xlu1 %7068, %v6208_v20   ;;  %v3739_v3 = vpop.permute.xlu0 %3738  ;;  %4383 = vmatprep.subr.mxu1 %v3771_v48  ;;  %v9359_v48 = vld [vmem:[%s10352_s9 + $0x90] sm:$0xff] }
 0x4f8   : > { %4324 = vmatprep.mubr.f32.mxu0 %v10527_v46  ;;  %4384 = vmatpush1.msra.mxu1 %v3770_v28  ;;  %v3767_v50 = vsel %vm666_vm5, %v9087_v30, %v3739_v3  ;;  %v9253_v30 = vld [vmem:[%s10352_s9 + $0x28] sm:$0xff] }
 0x4f9   : > { %v3741_v31 = vpop.permute.xlu1 %3740  ;;  %4181 = vmatprep.mubr.f32.mxu1 %v10527_v46 }
 0x4fa   : > { %6718 = vmatmul.mubr.msk.f32.gmra.mxu0 %vm1952_vm7, %v9221_v0  ;;  %v3768_v25 = vsel %vm666_vm5, %v3739_v3, %v3741_v31  ;;  %6709 = vmatmul.mubr.msk.f32.gmra.mxu1 %vm1952_vm7, %v9062_v23  ;;  %v9372_v3 = vld [vmem:[%s10352_s9 + $0x98] sm:$0xff]  ;;  %v9385_v31 = vld [vmem:[%s10352_s9 + $0xa0] sm:$0xff] }
 0x4fb   : > { %v9232_v16 = vpop.permute.xlu0 %4584  ;;  %4385 = vmatprep.subr.mxu1 %v3768_v25  ;;  %4330 = vmatprep.mubr.f32.mxu0 %v10527_v46 }
 0x4fc   : > { %4386 = vmatpush1.msra.mxu1 %v3767_v50  ;;  %4187 = vmatprep.mubr.f32.mxu1 %v10527_v46  ;;  %v9400_v50 = vld [vmem:[%s10352_s9 + $0xa8] sm:$0xff] }
 0x4fd   : > { %v9241_v42 = vpop.permute.xlu1 %4578 }
 0x4fe   : > { %6719 = vmatmul.mubr.msk.f32.gmra.mxu0 %vm1952_vm7, %v9238_v29  ;;  %6710 = vmatmul.mubr.msk.f32.gmra.mxu1 %vm1952_vm7, %v9083_v60 }
 0x4ff   : > { %v9247_v23 = vpop.permute.xlu0 %4576  ;;  %4336 = vmatprep.mubr.f32.mxu0 %v10527_v46  ;;  %4193 = vmatprep.mubr.f32.mxu1 %v10527_v46 }
 0x501   : > { %v4587_v4 = vpop.permute.xlu1 %4586 }
 0x502   : > { %6720 = vmatmul.mubr.msk.f32.gmra.mxu0 %vm1952_vm7, %v9253_v30  ;;  %v4601_v18 = vsel %vm661_vm8, %v9232_v16, %v4587_v4  ;;  %6711 = vmatmul.mubr.msk.f32.gmra.mxu1 %vm1952_vm7, %v9100_v24 }
 0x503   : > { %v9262_v60 = vpop.permute.xlu0 %4568  ;;  %4681 = vmatprep.subr.mxu1 %v4601_v18  ;;  %4342 = vmatprep.mubr.f32.mxu0 %v10527_v46  ;;  %v9416_v18 = vld [vmem:[%s10352_s9 + $0xb0] sm:$0xff] }
 0x504   : > { %4199 = vmatprep.mubr.f32.mxu1 %v10527_v46 }
 0x505   : > { %v9271_v34 = vpop.permute.xlu1 %4570 }
 0x506   : > { %6721 = vmatmul.mubr.msk.f32.gmra.mxu0 %vm1952_vm7, %v9268_v43  ;;  %6712 = vmatmul.mubr.msk.f32.gmra.mxu1 %vm1952_vm7, %v9121_v27 }
 0x507   : > { %v9277_v24 = vpop.permute.xlu0 %4560  ;;  %4348 = vmatprep.mubr.f32.mxu0 %v10527_v46  ;;  %4205 = vmatprep.mubr.f32.mxu1 %v10527_v46 }
 0x509   : > { %v9286_v11 = vpop.permute.xlu1 %4562 }
 0x50a   : > { %6722 = vmatmul.mubr.msk.f32.gmra.mxu0 %vm1952_vm7, %v9283_v63  ;;  %6713 = vmatmul.mubr.msk.f32.gmra.mxu1 %vm1952_vm7, %v9134_v32 }
 0x50b   : > { %v4589_v27 = vpop.permute.xlu0 %4588  ;;  %6972 = vmatprep.mubr.msk.f32.mxu0 %vm666_vm5, %v9292_v36  ;;  %4211 = vmatprep.mubr.f32.mxu1 %v10527_v46 }
 0x50c   : > { %v4602_v32 = vsel %vm661_vm8, %v4587_v4, %v4589_v27 }
 0x50d   : > { %v4591_v45 = vpop.permute.xlu1 %4590 }
 0x50e   : > { %6973 = vmatmul.mubr.msk.f32.vlgmr.msra.gmra.mxu0 %vm666_vm5, %v9297_v21  ;;  %v4603_v41 = vsel %vm661_vm8, %v4589_v27, %v4591_v45  ;;  %6714 = vmatmul.mubr.msk.f32.gmra.mxu1 %vm1952_vm7, %v9149_v2 }
 0x50f   : > { %v4581_v38 = vpop.permute.xlu0 %4580  ;;  %4794 = vmatprep.subr.mxu0 %v4603_v41  ;;  %6975 = vmatprep.mubr.msk.f32.mxu0 %vm666_vm5, %v9305_v55 }
 0x510   : > { %4795 = vmatpush1.msra.mxu0 %v4602_v32  ;;  %4419 = vmatprep.mubr.f32.mxu1 %v10527_v46  ;;  %v4599_v58 = vsel %vm661_vm8, %v9241_v42, %v4581_v38 }
 0x511   : > { %v4583_v47 = vpop.permute.xlu1 %4582 }
 0x512   : > { %6976 = vmatmul.mubr.msk.f32.gmra.mxu0 %vm666_vm5, %v9310_v5  ;;  %v4600_v2 = vsel %vm661_vm8, %v4581_v38, %v4583_v47  ;;  %6723 = vmatmul.mubr.msk.f32.vlgmr.msra.gmra.mxu1 %vm1952_vm7, %v9164_v33 }
 0x513   : > { %v4573_v56 = vpop.permute.xlu0 %4572  ;;  %4796 = vmatprep.subr.mxu0 %v4600_v2  ;;  %4834 = vmatprep.mubr.f32.mxu0 %v10527_v46 }
 0x514   : > { %4797 = vmatpush1.msra.mxu0 %v4599_v58  ;;  %4425 = vmatprep.mubr.f32.mxu1 %v10527_v46  ;;  %v4596_v12 = vsel %vm661_vm8, %v9271_v34, %v4573_v56 }
 0x515   : > { %v4575_v52 = vpop.permute.xlu1 %4574 }
 0x516   : > { %v4597_v9 = vsel %vm661_vm8, %v4573_v56, %v4575_v52  ;;  %6724 = vmatmul.mubr.msk.f32.gmra.mxu1 %vm1952_vm7, %v9182_v6 }
 0x517   : > { %4798 = vmatprep.subr.mxu0 %v4597_v9  ;;  %4431 = vmatprep.mubr.f32.mxu1 %v10527_v46  ;;  %v4565_v33 = vpop.permute.xlu0 %4564 }
 0x518   : > { %4799 = vmatpush1.msra.mxu0 %v4596_v12  ;;  %v4593_v6 = vsel %vm661_vm8, %v9286_v11, %v4565_v33 }
 0x519   : > { %v4567_v44 = vpop.permute.xlu1 %4566 }
 0x51a   : > { %v4594_v39 = vsel %vm661_vm8, %v4565_v33, %v4567_v44  ;;  %6725 = vmatmul.mubr.msk.f32.gmra.mxu1 %vm1952_vm7, %v9204_v40 }
 0x51b   : > { %4800 = vmatprep.subr.mxu0 %v4594_v39  ;;  %4437 = vmatprep.mubr.f32.mxu1 %v10527_v46 }
 0x51c   : > { %4801 = vmatpush1.msra.mxu0 %v4593_v6 }
 0x51d   : > { %v9338_v20 = vpop.permute.xlu1 %5037  ;;  %6753 = vmatmul.mubr.msk.f32.vlgmr.msra.gmra.mxu0 %vm1952_vm7, %v9331_v59 }
 0x51e   : > { %4840 = vmatprep.mubr.f32.mxu0 %v10527_v46  ;;  %6726 = vmatmul.mubr.msk.f32.gmra.mxu1 %vm1952_vm7, %v9221_v0 }
 0x51f   : > { %4443 = vmatprep.mubr.f32.mxu1 %v10527_v46 }
 0x521   : > { %v9351_v40 = vpop.permute.xlu1 %5025  ;;  %6754 = vmatmul.mubr.msk.f32.gmra.mxu0 %vm1952_vm7, %v9346_v17 }
 0x522   : > { %4846 = vmatprep.mubr.f32.mxu0 %v10527_v46  ;;  %6727 = vmatmul.mubr.msk.f32.gmra.mxu1 %vm1952_vm7, %v9238_v29  ;;  %v9403_v29 = vpop.permute.xlu0 %5031 }
 0x523   : > { %4449 = vmatprep.mubr.f32.mxu1 %v10527_v46  ;;  %10611 = vst [vmem:[#allocation41_spill] sm:$0xff] %v9403_v29 }
 0x525   : > { %v9364_v28 = vpop.permute.xlu1 %5029  ;;  %6755 = vmatmul.mubr.msk.f32.gmra.mxu0 %vm1952_vm7, %v9359_v48 }
 0x526   : > { %4852 = vmatprep.mubr.f32.mxu0 %v10527_v46  ;;  %6728 = vmatmul.mubr.msk.f32.gmra.mxu1 %vm1952_vm7, %v9253_v30 }
 0x527   : > { %4455 = vmatprep.mubr.f32.mxu1 %v10527_v46 }
 0x529   : > { %v9377_v0 = vpop.permute.xlu1 %5017  ;;  %6756 = vmatmul.mubr.msk.f32.gmra.mxu0 %vm1952_vm7, %v9372_v3 }
 0x52a   : > { %4858 = vmatprep.mubr.f32.mxu0 %v10527_v46  ;;  %6729 = vmatmul.mubr.msk.f32.gmra.mxu1 %vm1952_vm7, %v9268_v43  ;;  %v9424_v43 = vld [vmem:[%s10352_s9 + $0xb8] sm:$0xff] }
 0x52b   : > { %4461 = vmatprep.mubr.f32.mxu1 %v10527_v46 }
 0x52d   : > { %v9390_v25 = vpop.permute.xlu1 %5021  ;;  %6757 = vmatmul.mubr.msk.f32.gmra.mxu0 %vm1952_vm7, %v9385_v31 }
 0x52e   : > { %4864 = vmatprep.mubr.f32.mxu0 %v10527_v46  ;;  %6730 = vmatmul.mubr.msk.f32.gmra.mxu1 %vm1952_vm7, %v9283_v63 }
 0x52f   : > { %4721 = vmatprep.mubr.f32.mxu1 %v10527_v46 }
 0x531   : > { %v9405_v30 = vpop.permute.xlu1 %5033  ;;  %6758 = vmatmul.mubr.msk.f32.gmra.mxu0 %vm1952_vm7, %v9400_v50 }
 0x532   : > { %v5048_v4 = vsel %vm680_vm6, %v9403_v29, %v9405_v30  ;;  %4870 = vmatprep.mubr.f32.mxu0 %v10527_v46 }
 0x533   : > { %5128 = vmatprep.subr.mxu0 %v5048_v4 }
 0x535   : > { %6759 = vmatmul.mubr.msk.f32.gmra.mxu0 %vm1952_vm7, %v9416_v18 }
 0x536   : > { %4876 = vmatprep.mubr.f32.mxu0 %v10527_v46 }
 0x539   : > { %6760 = vmatmul.mubr.msk.f32.gmra.mxu0 %vm1952_vm7, %v9424_v43 }
 0x53a   : > { %5168 = vmatprep.mubr.f32.mxu0 %v10527_v46 }
 0x58d   : > { %v4058_v63 = vpop.f32.mrf.mxu0 }
 0x58f   : > { %v4060_v27 = vpop.f32.mrf.mxu0 }
 0x591   : > { %v4064_v45 = vpop.f32.mrf.mxu0 }
 0x593   : > { %v4066_v41 = vpop.f32.mrf.mxu0 }
 0x595   : > { %v4070_v32 = vpop.f32.mrf.mxu0 }
 0x597   : > { %v4072_v38 = vpop.f32.mrf.mxu0 }
 0x59a   : > { %v4076_v47 = vpop.f32.mrf.mxu0 }
 0x59c   : > { %v4078_v2 = vpop.f32.mrf.mxu0 }
 0x59e   : > { %v4082_v58 = vpop.f32.mrf.mxu0 }
 0x5a0   : > { %v4084_v56 = vpop.f32.mrf.mxu0 }
 0x5a2   : > { %v4088_v52 = vpop.f32.mrf.mxu0 }
 0x5a4   : > { %v4090_v9 = vpop.f32.mrf.mxu0 }
 0x5a6   : > { %v4094_v12 = vpop.f32.mrf.mxu0 }
 0x5a8   : > { %v4096_v33 = vpop.f32.mrf.mxu0 }
 0x5aa   : > { %v4100_v44 = vpop.f32.mrf.mxu0 }
 0x5ac   : > { %v4102_v39 = vpop.f32.mrf.mxu0 }
 0x5ad   : > { %v4171_v29 = vpop.f32.mrf.mxu1 }
 0x5ae   : > { %v4308_v6 = vpop.f32.mrf.mxu0 }
 0x5af   : > { %v9429_v4 = vadd.f32 %v4308_v6, %v4058_v63  ;;  %v4173_v15 = vpop.f32.mrf.mxu1 }
 0x5b0   : > { %v4310_v53 = vpop.f32.mrf.mxu0 }
 0x5b1   : > { %v9431_v54 = vadd.f32 %v4310_v53, %v4060_v27 }
 0x5b2   : > { %v4314_v19 = vpop.f32.mrf.mxu0 }
 0x5b3   : > { %v9433_v8 = vadd.f32 %v4314_v19, %v4064_v45 }
 0x5b4   : > { %v4316_v51 = vpop.f32.mrf.mxu0 }
 0x5b5   : > { %v9435_v22 = vadd.f32 %v4316_v51, %v4066_v41 }
 0x5b6   : > { %v4320_v7 = vpop.f32.mrf.mxu0  ;;  %v4177_v6 = vpop.f32.mrf.mxu1 }
 0x5b7   : > { %v9437_v37 = vadd.f32 %v4320_v7, %v4070_v32 }
 0x5b8   : > { %v4322_v1 = vpop.f32.mrf.mxu0  ;;  %v9445_v19 = vpop.f32.mrf.mxu1 }
 0x5b9   : > { %v9439_v35 = vadd.f32 %v4322_v1, %v4072_v38 }
 0x5ba   : > { %v4326_v49 = vpop.f32.mrf.mxu0  ;;  %v9449_v41 = vpop.f32.mrf.mxu1 }
 0x5bb   : > { %10612 = vst [vmem:[#allocation42_spill] sm:$0xff] %v9439_v35  ;;  %v9441_v63 = vadd.f32 %v4326_v49, %v4076_v47 }
 0x5bc   : > { %v4328_v53 = vpop.f32.mrf.mxu0  ;;  %v9453_v1 = vpop.f32.mrf.mxu1 }
 0x5bd   : > { %v9443_v27 = vadd.f32 %v4328_v53, %v4078_v2 }
 0x5be   : > { %v4332_v45 = vpop.f32.mrf.mxu0  ;;  %v9457_v49 = vpop.f32.mrf.mxu1 }
 0x5bf   : > { %10613 = vst [vmem:[#allocation43_spill] sm:$0xff] %v9443_v27  ;;  %v9447_v51 = vadd.f32 %v4332_v45, %v4082_v58 }
 0x5c0   : > { %v4334_v7 = vpop.f32.mrf.mxu0  ;;  %v9461_v53 = vpop.f32.mrf.mxu1 }
 0x5c1   : > { %10614 = vst [vmem:[#allocation44_spill] sm:$0xff] %v9447_v51  ;;  %v9451_v32 = vadd.f32 %v4334_v7, %v4084_v56 }
 0x5c2   : > { %v4338_v38 = vpop.f32.mrf.mxu0  ;;  %v9465_v45 = vpop.f32.mrf.mxu1 }
 0x5c3   : > { %10615 = vst [vmem:[#allocation47_spill] sm:$0xff] %v9451_v32  ;;  %v9455_v35 = vadd.f32 %v4338_v38, %v4088_v52 }
 0x5c4   : > { %v4340_v47 = vpop.f32.mrf.mxu0  ;;  %v9469_v7 = vpop.f32.mrf.mxu1 }
 0x5c5   : > { %10616 = vst [vmem:[#allocation45_spill] sm:$0xff] %v9455_v35  ;;  %v9459_v2 = vadd.f32 %v4340_v47, %v4090_v9 }
 0x5c6   : > { %v4344_v27 = vpop.f32.mrf.mxu0  ;;  %v9473_v38 = vpop.f32.mrf.mxu1 }
 0x5c7   : > { %10617 = vst [vmem:[#allocation46_spill] sm:$0xff] %v9459_v2  ;;  %v9463_v58 = vadd.f32 %v4344_v27, %v4094_v12 }
 0x5c8   : > { %v4346_v51 = vpop.f32.mrf.mxu0  ;;  %v9477_v47 = vpop.f32.mrf.mxu1 }
 0x5c9   : > { %10618 = vst [vmem:[#allocation49_spill] sm:$0xff] %v9463_v58  ;;  %v9467_v56 = vadd.f32 %v4346_v51, %v4096_v33 }
 0x5ca   : > { %v4350_v32 = vpop.f32.mrf.mxu0  ;;  %v9479_v12 = vpop.f32.mrf.mxu1 }
 0x5cb   : > { %10619 = vst [vmem:[#allocation48_spill] sm:$0xff] %v9467_v56  ;;  %v9471_v52 = vadd.f32 %v4350_v32, %v4100_v44 }
 0x5cc   : > { %v4352_v35 = vpop.f32.mrf.mxu0  ;;  %v9481_v58 = vpop.f32.mrf.mxu1 }
 0x5cd   : > { %v9475_v9 = vadd.f32 %v4352_v35, %v4102_v39  ;;  %v4598_v35 = vsel %vm661_vm8, %v9247_v23, %v9241_v42  ;;  %v4915_v39 = vadd.s32 12, %v10576_v57  ;;  %v4592_v57 = vsel %vm661_vm8, %v9277_v24, %v9286_v11 }
 0x5ce   : > { %v6974_v2 = vpop.f32.mrf.mxu0  ;;  %v9485_v56 = vpop.f32.mrf.mxu1 }
 0x5cf   : > { %10620 = vst [vmem:[#allocation51_spill] sm:$0xff] %v9475_v9  ;;  %vm4917_vm0 = vcmp.eq.s32.totalorder %v8493_v26, %v4915_v39 }
 0x5d0   : > { %v4541_v27 = vpop.f32.mrf.mxu0  ;;  %v9493_v9 = vpop.f32.mrf.mxu1 }
 0x5d2   : > { %v6977_v33 = vpop.f32.mrf.mxu0 }
 0x5d3   : > { %v4623_v51 = vsel %vm661_vm8, %v6977_v33, %v9232_v16  ;;  %v4595_v16 = vsel %vm661_vm8, %v9262_v60, %v9271_v34  ;;  %v4621_v33 = vsel %vm661_vm8, %v6974_v2, %v9262_v60 }
 0x5d4   : > { %v4551_v44 = vpop.f32.mrf.mxu0  ;;  %4682 = vmatpush1.msra.mxu1 %v4623_v51  ;;  %v4421_v51 = vpop.f32.mrf.mxu1 }
 0x5d5   : > { %v4622_v32 = vsel %vm661_vm8, %v4551_v44, %v9247_v23  ;;  %4683 = vmatprep.subr.mxu1 %v4598_v35  ;;  %v4422_v42 = vadd.f32 %v4421_v51, %v4171_v29  ;;  %v4620_v23 = vsel %vm661_vm8, %v4541_v27, %v9277_v24  ;;  %v9506_v35 = vpop.permute.xlu0 %5035 }
 0x5d6   : > { %4684 = vmatpush1.msra.mxu1 %v4622_v32  ;;  %v4423_v44 = vpop.f32.mrf.mxu1 }
 0x5d7   : > { %4685 = vmatprep.subr.mxu1 %v4595_v16  ;;  %v4424_v34 = vadd.f32 %v4423_v44, %v4173_v15  ;;  %v5050_v15 = vsel %vm680_vm6, %v9506_v35, %v9338_v20 }
 0x5d8   : > { %4686 = vmatpush1.msra.mxu1 %v4621_v33  ;;  %v4427_v60 = vpop.f32.mrf.mxu1 }
 0x5d9   : > { %4687 = vmatprep.subr.mxu1 %v4592_v57  ;;  %v4428_v26 = vadd.f32 %v4427_v60, %v4177_v6  ;;  %v9523_v2 = vpop.permute.xlu0 %5023 }
 0x5da   : > { %4688 = vmatpush1.msra.mxu1 %v4620_v23  ;;  %v4429_v11 = vpop.f32.mrf.mxu1 }
 0x5db   : > { %6745 = vmatmul.mubr.msk.f32.vlgmr.msra.gmra.mxu1 %vm1952_vm7, %v9331_v59  ;;  %6978 = vmatprep.subr.msk.mxu1 %vm4917_vm0, %v10578_v62  ;;  %v4430_v59 = vadd.f32 %v4429_v11, %v9445_v19 }
 0x5dc   : > { %6979 = vmatpush3.msk.msra.mxu1 %vm4917_vm0, %v10578_v62  ;;  %4727 = vmatprep.mubr.f32.mxu1 %v10527_v46  ;;  %v4433_v6 = vpop.f32.mrf.mxu1 }
 0x5dd   : > { %6980 = vmatprep.subr.mxu1 %v10527_v46  ;;  %v4836_v24 = vpop.f32.mrf.mxu0  ;;  %v4434_v39 = vadd.f32 %v4433_v6, %v9449_v41  ;;  %v5028_v41 = vpop.permute.xlu0 %5027 }
 0x5de   : > { %6981 = vmatpush3.msra.mxu1 %v10527_v46  ;;  %v9518_v29 = vadd.f32 %v4836_v24, %v4422_v42  ;;  %v4435_v20 = vpop.f32.mrf.mxu1 }
 0x5df   : > { %6746 = vmatmul.mubr.msk.f32.gmra.mxu1 %vm1952_vm7, %v9346_v17  ;;  %5241 = vmatprep.subr.mxu1 %v5050_v15  ;;  %v4838_v62 = vpop.f32.mrf.mxu0  ;;  %v4436_v19 = vadd.f32 %v4435_v20, %v9453_v1 }
 0x5e0   : > { %4733 = vmatprep.mubr.f32.mxu1 %v10527_v46  ;;  %v9526_v27 = vadd.f32 %v4838_v62, %v4424_v34  ;;  %v4439_v33 = vpop.f32.mrf.mxu1 }
 0x5e1   : > { %v4842_v32 = vpop.f32.mrf.mxu0  ;;  %v4440_v57 = vadd.f32 %v4439_v33, %v9457_v49 }
 0x5e2   : > { %v9529_v16 = vadd.f32 %v4842_v32, %v4428_v26  ;;  %v4441_v23 = vpop.f32.mrf.mxu1 }
 0x5e3   : > { %6747 = vmatmul.mubr.msk.f32.gmra.mxu1 %vm1952_vm7, %v9359_v48  ;;  %v4844_v17 = vpop.f32.mrf.mxu0  ;;  %v4442_v34 = vadd.f32 %v4441_v23, %v9461_v53 }
 0x5e4   : > { %4739 = vmatprep.mubr.f32.mxu1 %v10527_v46  ;;  %v9535_v51 = vadd.f32 %v4844_v17, %v4430_v59  ;;  %v4445_v48 = vpop.f32.mrf.mxu1 }
 0x5e5   : > { %v4848_v42 = vpop.f32.mrf.mxu0  ;;  %v4446_v26 = vadd.f32 %v4445_v48, %v9465_v45 }
 0x5e6   : > { %v9538_v44 = vadd.f32 %v4848_v42, %v4434_v39  ;;  %v4447_v49 = vpop.f32.mrf.mxu1 }
 0x5e7   : > { %6748 = vmatmul.mubr.msk.f32.gmra.mxu1 %vm1952_vm7, %v9372_v3  ;;  %v4850_v1 = vpop.f32.mrf.mxu0  ;;  %v4448_v15 = vadd.f32 %v4447_v49, %v9469_v7  ;;  %v9552_v3 = vpop.permute.xlu0 %5015 }
 0x5e8   : > { %4745 = vmatprep.mubr.f32.mxu1 %v10527_v46  ;;  %v9544_v60 = vadd.f32 %v4850_v1, %v4436_v19  ;;  %v4451_v59 = vpop.f32.mrf.mxu1 }
 0x5e9   : > { %v4854_v24 = vpop.f32.mrf.mxu0  ;;  %v4452_v6 = vadd.f32 %v4451_v59, %v9473_v38 }
 0x5ea   : > { %v9547_v11 = vadd.f32 %v4854_v24, %v4440_v57  ;;  %v4453_v39 = vpop.f32.mrf.mxu1 }
 0x5eb   : > { %6749 = vmatmul.mubr.msk.f32.gmra.mxu1 %vm1952_vm7, %v9385_v31  ;;  %v4856_v53 = vpop.f32.mrf.mxu0  ;;  %v4454_v20 = vadd.f32 %v4453_v39, %v9477_v47  ;;  %v5020_v38 = vpop.permute.xlu0 %5019  ;;  %v10624_v39 = vld [vmem:[#allocation40_spill] sm:$0xff] }
 0x5ec   : > { %4751 = vmatprep.mubr.f32.mxu1 %v10527_v46  ;;  %v9555_v62 = vadd.f32 %v4856_v53, %v4442_v34  ;;  %v4457_v7 = vpop.f32.mrf.mxu1 }
 0x5ed   : > { %v4860_v45 = vpop.f32.mrf.mxu0  ;;  %v4458_v17 = vadd.f32 %v4457_v7, %v9479_v12  ;;  %v9671_v7 = vld [vmem:[%s10352_s9 + $0xf0] sm:$0xff] }
 0x5ee   : > { %v9558_v32 = vadd.f32 %v4860_v45, %v4446_v26  ;;  %v4459_v57 = vpop.f32.mrf.mxu1  ;;  %v9578_v26 = vpop.permute.xlu1 %5009  ;;  %v10623_v45 = vld [vmem:[#allocation36_spill] sm:$0xff] }
 0x5ef   : > { %6750 = vmatmul.mubr.msk.f32.gmra.mxu1 %vm1952_vm7, %v9400_v50  ;;  %v4862_v31 = vpop.f32.mrf.mxu0  ;;  %v4460_v23 = vadd.f32 %v4459_v57, %v9481_v58  ;;  %v9582_v24 = vpop.permute.xlu0 %5007  ;;  %v9696_v57 = vld [vmem:[%s10352_s9 + $0x108] sm:$0xff] }
 0x5f0   : > { %4757 = vmatprep.mubr.f32.mxu1 %v10527_v46  ;;  %v9564_v19 = vadd.f32 %v4862_v31, %v4448_v15  ;;  %v4463_v50 = vpop.f32.mrf.mxu1  ;;  %v9655_v31 = vld [vmem:[%s10352_s9 + $0xe0] sm:$0xff] }
 0x5f1   : > { %v4866_v33 = vpop.f32.mrf.mxu0  ;;  %v4464_v1 = vadd.f32 %v4463_v50, %v9485_v56  ;;  %v5049_v56 = vsel %vm680_vm6, %v9405_v30, %v9506_v35  ;;  %v5044_v30 = vsel %vm680_vm6, %v5020_v38, %v9390_v25  ;;  %v10621_v35 = vld [vmem:[#allocation34_spill] sm:$0xff] }
 0x5f2   : > { %v9567_v42 = vadd.f32 %v4866_v33, %v4452_v6  ;;  %v5014_v53 = vpop.permute.xlu1 %5013  ;;  %v9636_v6 = vld [vmem:[%s10352_s9 + $0xd0] sm:$0xff]  ;;  %v9687_v33 = vld [vmem:[%s10352_s9 + $0x100] sm:$0xff] }
 0x5f3   : > { %6751 = vmatmul.mubr.msk.f32.gmra.mxu1 %vm1952_vm7, %v9416_v18  ;;  %v4868_v47 = vpop.f32.mrf.mxu0  ;;  %v5012_v59 = vpop.permute.xlu0 %5011  ;;  %v9758_v50 = vld [vmem:[%s10353_s10] sm:$0xff] }
 0x5f4   : > { %4763 = vmatprep.mubr.f32.mxu1 %v10527_v46  ;;  %v9573_v34 = vadd.f32 %v4868_v47, %v4454_v20  ;;  %v5040_v25 = vsel %vm680_vm6, %v9578_v26, %v5012_v59  ;;  %v9647_v20 = vld [vmem:[%s10352_s9 + $0xd8] sm:$0xff] }
 0x5f5   : > { %v4872_v48 = vpop.f32.mrf.mxu0  ;;  %v9750_v47 = vld [vmem:[%s10352_s9 + $0x138] sm:$0xff] }
 0x5f6   : > { %v9576_v12 = vadd.f32 %v4872_v48, %v4458_v17  ;;  %v9679_v17 = vld [vmem:[%s10352_s9 + $0xf8] sm:$0xff]  ;;  %v9774_v48 = vld [vmem:[%s10353_s10 + $0x10] sm:$0xff] }
 0x5f7   : > { %6752 = vmatmul.mubr.msk.f32.gmra.mxu1 %vm1952_vm7, %v9424_v43  ;;  %v4874_v58 = vpop.f32.mrf.mxu0  ;;  %v5047_v43 = vsel %vm680_vm6, %v5028_v41, %v9364_v28  ;;  %v9612_v28 = vld [vmem:[%s10352_s9 + $0xc0] sm:$0xff] }
 0x5f8   : > { %6982 = vmatprep.mubr.msk.f32.mxu1 %vm666_vm5, %v9292_v36  ;;  %v9586_v18 = vadd.f32 %v4874_v58, %v4460_v23  ;;  %v5046_v36 = vsel %vm680_vm6, %v9351_v40, %v5028_v41  ;;  %v10622_v41 = vld [vmem:[#allocation39_spill] sm:$0xff]  ;;  %v9742_v23 = vld [vmem:[%s10352_s9 + $0x130] sm:$0xff]  ;;  %v9782_v58 = vld [vmem:[%s10353_s10 + $0x18] sm:$0xff] }
 0x5f9   : > { %v4878_v49 = vpop.f32.mrf.mxu0  ;;  %10625 = vst [vmem:[#allocation50_spill] sm:$0xff] %v9782_v58 }
 0x5fa   : > { %v9588_v15 = vadd.f32 %v4878_v49, %v4464_v1  ;;  %v9766_v1 = vld [vmem:[%s10353_s10 + $0x8] sm:$0xff]  ;;  %v9790_v49 = vld [vmem:[%s10353_s10 + $0x20] sm:$0xff] }
 0x5fb   : > { %6983 = vmatmul.mubr.msk.f32.vlgmr.msra.gmra.mxu1 %vm666_vm5, %v9297_v21  ;;  %v5043_v21 = vsel %vm680_vm6, %v9377_v0, %v5020_v38  ;;  %v9734_v38 = vld [vmem:[%s10352_s9 + $0x128] sm:$0xff]  ;;  %10626 = vst [vmem:[#allocation52_spill] sm:$0xff] %v9790_v49 }
 0x5fc   : > { %5242 = vmatpush1.msra.mxu1 %v5049_v56  ;;  %6985 = vmatprep.mubr.msk.f32.mxu1 %vm666_vm5, %v9305_v55  ;;  %v5041_v55 = vsel %vm680_vm6, %v5012_v59, %v5014_v53  ;;  %v9798_v56 = vld [vmem:[%s10353_s10 + $0x28] sm:$0xff]  ;;  %v9818_v53 = vpop.f32.mrf.mxu1 }
 0x5fd   : > { %5243 = vmatprep.subr.mxu1 %v5047_v43  ;;  %10627 = vst [vmem:[#allocation54_spill] sm:$0xff] %v9798_v56  ;;  %v9806_v43 = vld [vmem:[%s10353_s10 + $0x30] sm:$0xff] }
 0x5fe   : > { %5244 = vmatpush1.msra.mxu1 %v5046_v36  ;;  %10628 = vst [vmem:[#allocation55_spill] sm:$0xff] %v9806_v43  ;;  %v9814_v36 = vld [vmem:[%s10353_s10 + $0x38] sm:$0xff] }
 0x5ff   : > { %5245 = vmatprep.subr.mxu1 %v5044_v30  ;;  %6986 = vmatmul.mubr.msk.f32.gmra.mxu1 %vm666_vm5, %v9310_v5  ;;  %v9624_v5 = vld [vmem:[%s10352_s9 + $0xc8] sm:$0xff]  ;;  %10629 = vst [vmem:[#allocation56_spill] sm:$0xff] %v9814_v36 }
 0x600   : > { %5246 = vmatpush1.msra.mxu1 %v5043_v21  ;;  %5281 = vmatprep.mubr.f32.mxu1 %v10527_v46 }
 0x601   : > { %5247 = vmatprep.subr.mxu1 %v5041_v55 }
 0x602   : > { %5248 = vmatpush1.msra.mxu1 %v5040_v25 }
 0x603   : > { %5532 = vmatprep.subr.mxu1 %v8875_v14  ;;  %6783 = vmatmul.mubr.msk.f32.vlgmr.msra.gmra.mxu1 %vm1952_vm7, %v9612_v28 }
 0x604   : > { %5533 = vmatpush1.msra.mxu1 %v8868_v10  ;;  %5287 = vmatprep.mubr.f32.mxu1 %v10527_v46 }
 0x605   : > { %5534 = vmatprep.subr.mxu1 %v8887_v13 }
 0x606   : > { %5535 = vmatpush1.msra.mxu1 %v8881_v61 }
 0x607   : > { %5536 = vmatprep.subr.mxu1 %v10621_v35  ;;  %6784 = vmatmul.mubr.msk.f32.gmra.mxu1 %vm1952_vm7, %v9624_v5 }
 0x608   : > { %5537 = vmatpush1.msra.mxu1 %v10622_v41  ;;  %5293 = vmatprep.mubr.f32.mxu1 %v10527_v46 }
 0x609   : > { %5538 = vmatprep.subr.mxu1 %v10623_v45 }
 0x60a   : > { %5539 = vmatpush1.msra.mxu1 %v10624_v39 }
 0x60b   : > { %5822 = vmatprep.subr.mxu1 %v8875_v14  ;;  %6785 = vmatmul.mubr.msk.f32.gmra.mxu1 %vm1952_vm7, %v9636_v6  ;;  %v9663_v14 = vld [vmem:[%s10352_s9 + $0xe8] sm:$0xff] }
 0x60c   : > { %5299 = vmatprep.mubr.f32.mxu1 %v10527_v46 }
 0x60f   : > { %6786 = vmatmul.mubr.msk.f32.gmra.mxu1 %vm1952_vm7, %v9647_v20 }
 0x610   : > { %5305 = vmatprep.mubr.f32.mxu1 %v10527_v46 }
 0x613   : > { %6787 = vmatmul.mubr.msk.f32.gmra.mxu1 %vm1952_vm7, %v9655_v31 }
 0x614   : > { %5311 = vmatprep.mubr.f32.mxu1 %v10527_v46 }
 0x617   : > { %6788 = vmatmul.mubr.msk.f32.gmra.mxu1 %vm1952_vm7, %v9663_v14 }
 0x618   : > { %5317 = vmatprep.mubr.f32.mxu1 %v10527_v46 }
 0x61b   : > { %6789 = vmatmul.mubr.msk.f32.gmra.mxu1 %vm1952_vm7, %v9671_v7 }
 0x61c   : > { %5323 = vmatprep.mubr.f32.mxu1 %v10527_v46 }
 0x61f   : > { %6790 = vmatmul.mubr.msk.f32.gmra.mxu1 %vm1952_vm7, %v9679_v17 }
 0x620   : > { %5572 = vmatprep.mubr.f32.mxu1 %v10527_v46 }
 0x623   : > { %6807 = vmatmul.mubr.msk.f32.vlgmr.msra.gmra.mxu1 %vm1952_vm7, %v9687_v33 }
 0x624   : > { %5823 = vmatpush1.msra.mxu1 %v8868_v10  ;;  %5578 = vmatprep.mubr.f32.mxu1 %v10527_v46  ;;  %v9708_v10 = vld [vmem:[%s10352_s9 + $0x110] sm:$0xff] }
 0x625   : > { %5824 = vmatprep.subr.mxu1 %v8887_v13  ;;  %v9726_v13 = vld [vmem:[%s10352_s9 + $0x120] sm:$0xff] }
 0x626   : > { %5825 = vmatpush1.msra.mxu1 %v8881_v61  ;;  %v9718_v61 = vld [vmem:[%s10352_s9 + $0x118] sm:$0xff] }
 0x627   : > { %5826 = vmatprep.subr.mxu1 %v10621_v35  ;;  %6808 = vmatmul.mubr.msk.f32.gmra.mxu1 %vm1952_vm7, %v9696_v57 }
 0x628   : > { %5827 = vmatpush1.msra.mxu1 %v10622_v41  ;;  %5584 = vmatprep.mubr.f32.mxu1 %v10527_v46 }
 0x629   : > { %5828 = vmatprep.subr.mxu1 %v10623_v45 }
 0x62a   : > { %5829 = vmatpush1.msra.mxu1 %v10624_v39 }
 0x62b   : > { %6809 = vmatmul.mubr.msk.f32.gmra.mxu1 %vm1952_vm7, %v9708_v10 }
 0x62c   : > { %5590 = vmatprep.mubr.f32.mxu1 %v10527_v46 }
 0x62f   : > { %6810 = vmatmul.mubr.msk.f32.gmra.mxu1 %vm1952_vm7, %v9718_v61 }
 0x630   : > { %5596 = vmatprep.mubr.f32.mxu1 %v10527_v46 }
 0x633   : > { %6811 = vmatmul.mubr.msk.f32.gmra.mxu1 %vm1952_vm7, %v9726_v13 }
 0x634   : > { %5602 = vmatprep.mubr.f32.mxu1 %v10527_v46 }
 0x637   : > { %6812 = vmatmul.mubr.msk.f32.gmra.mxu1 %vm1952_vm7, %v9734_v38 }
 0x638   : > { %5608 = vmatprep.mubr.f32.mxu1 %v10527_v46 }
 0x63b   : > { %6813 = vmatmul.mubr.msk.f32.gmra.mxu1 %vm1952_vm7, %v9742_v23 }
 0x63c   : > { %5614 = vmatprep.mubr.f32.mxu1 %v10527_v46 }
 0x63f   : > { %6814 = vmatmul.mubr.msk.f32.gmra.mxu1 %vm1952_vm7, %v9750_v47 }
 0x640   : > { %5862 = vmatprep.mubr.f32.mxu1 %v10527_v46 }
 0x643   : > { %6823 = vmatmul.mubr.msk.f32.vlgmr.msra.gmra.mxu1 %vm1952_vm7, %v9758_v50 }
 0x644   : > { %5868 = vmatprep.mubr.f32.mxu1 %v10527_v46 }
 0x647   : > { %6824 = vmatmul.mubr.msk.f32.gmra.mxu1 %vm1952_vm7, %v9766_v1 }
 0x648   : > { %5874 = vmatprep.mubr.f32.mxu1 %v10527_v46 }
 0x64b   : > { %6825 = vmatmul.mubr.msk.f32.gmra.mxu1 %vm1952_vm7, %v9774_v48 }
 0x64c   : > { %5880 = vmatprep.mubr.f32.mxu1 %v10527_v46 }
 0x64f   : > { %6826 = vmatmul.mubr.msk.f32.gmra.mxu1 %vm1952_vm7, %v9782_v58 }
 0x650   : > { %5886 = vmatprep.mubr.f32.mxu1 %v10527_v46 }
 0x653   : > { %6827 = vmatmul.mubr.msk.f32.gmra.mxu1 %vm1952_vm7, %v9790_v49 }
 0x654   : > { %5892 = vmatprep.mubr.f32.mxu1 %v10527_v46 }
 0x657   : > { %6828 = vmatmul.mubr.msk.f32.gmra.mxu1 %vm1952_vm7, %v9798_v56  ;;  %v10635_v56 = vld [vmem:[#allocation42_spill] sm:$0xff] }
 0x658   : > { %5898 = vmatprep.mubr.f32.mxu1 %v10527_v46 }
 0x65b   : > { %6829 = vmatmul.mubr.msk.f32.gmra.mxu1 %vm1952_vm7, %v9806_v43 }
 0x65c   : > { %5904 = vmatprep.mubr.f32.mxu1 %v10527_v46 }
 0x65f   : > { %6830 = vmatmul.mubr.msk.f32.gmra.mxu1 %vm1952_vm7, %v9814_v36 }
 0x69b   : > { %v4723_v59 = vpop.f32.mrf.mxu1 }
 0x69c   : > { %v9821_v30 = vadd.f32 %v4723_v59, %v9429_v4 }
 0x69d   : > { %v4725_v21 = vpop.f32.mrf.mxu1 }
 0x69e   : > { %10630 = vst [vmem:[#allocation17_spill] sm:$0xff] %v9821_v30  ;;  %v9824_v55 = vadd.f32 %v4725_v21, %v9431_v54 }
 0x69f   : > { %v4729_v25 = vpop.f32.mrf.mxu1 }
 0x6a0   : > { %10631 = vst [vmem:[#allocation53_spill] sm:$0xff] %v9824_v55  ;;  %v9827_v35 = vadd.f32 %v4729_v25, %v9433_v8  ;;  %v10638_v55 = vld [vmem:[#allocation43_spill] sm:$0xff] }
 0x6a1   : > { %v4731_v41 = vpop.f32.mrf.mxu1 }
 0x6a2   : > { %10632 = vst [vmem:[#allocation18_spill] sm:$0xff] %v9827_v35  ;;  %v9830_v45 = vadd.f32 %v4731_v41, %v9435_v22  ;;  %v10640_v35 = vld [vmem:[#allocation44_spill] sm:$0xff] }
 0x6a3   : > { %v4735_v39 = vpop.f32.mrf.mxu1 }
 0x6a4   : > { %10633 = vst [vmem:[#allocation24_spill] sm:$0xff] %v9830_v45  ;;  %v9833_v36 = vadd.f32 %v4735_v39, %v9437_v37  ;;  %v10642_v45 = vld [vmem:[#allocation47_spill] sm:$0xff] }
 0x6a5   : > { %v4737_v43 = vpop.f32.mrf.mxu1 }
 0x6a6   : > { %10634 = vst [vmem:[#allocation23_spill] sm:$0xff] %v9833_v36  ;;  %v9836_v4 = vadd.f32 %v4737_v43, %v10635_v56  ;;  %v10644_v36 = vld [vmem:[#allocation45_spill] sm:$0xff] }
 0x6a7   : > { %v4741_v59 = vpop.f32.mrf.mxu1 }
 0x6a8   : > { %10636 = vst [vmem:[#allocation27_spill] sm:$0xff] %v9836_v4  ;;  %v9839_v54 = vadd.f32 %v4741_v59, %v9441_v63  ;;  %v10646_v4 = vld [vmem:[#allocation46_spill] sm:$0xff] }
 0x6a9   : > { %v4743_v21 = vpop.f32.mrf.mxu1 }
 0x6aa   : > { %10637 = vst [vmem:[#allocation25_spill] sm:$0xff] %v9839_v54  ;;  %v9842_v8 = vadd.f32 %v4743_v21, %v10638_v55  ;;  %v10648_v54 = vld [vmem:[#allocation49_spill] sm:$0xff] }
 0x6ab   : > { %v4747_v25 = vpop.f32.mrf.mxu1 }
 0x6ac   : > { %10639 = vst [vmem:[#allocation26_spill] sm:$0xff] %v9842_v8  ;;  %v9845_v22 = vadd.f32 %v4747_v25, %v10640_v35  ;;  %v10650_v8 = vld [vmem:[#allocation48_spill] sm:$0xff] }
 0x6ad   : > { %v4749_v41 = vpop.f32.mrf.mxu1 }
 0x6ae   : > { %10641 = vst [vmem:[#allocation21_spill] sm:$0xff] %v9845_v22  ;;  %v9848_v37 = vadd.f32 %v4749_v41, %v10642_v45 }
 0x6af   : > { %v4753_v39 = vpop.f32.mrf.mxu1 }
 0x6b0   : > { %10643 = vst [vmem:[#allocation28_spill] sm:$0xff] %v9848_v37  ;;  %v9851_v56 = vadd.f32 %v4753_v39, %v10644_v36  ;;  %v10653_v37 = vld [vmem:[#allocation51_spill] sm:$0xff] }
 0x6b1   : > { %v4755_v43 = vpop.f32.mrf.mxu1 }
 0x6b2   : > { %10645 = vst [vmem:[#allocation30_spill] sm:$0xff] %v9851_v56  ;;  %v9854_v63 = vadd.f32 %v4755_v43, %v10646_v4  ;;  %v10655_v43 = vld [vmem:[#allocation41_spill] sm:$0xff] }
 0x6b3   : > { %v4759_v59 = vpop.f32.mrf.mxu1 }
 0x6b4   : > { %10647 = vst [vmem:[#allocation20_spill] sm:$0xff] %v9854_v63  ;;  %v9857_v55 = vadd.f32 %v4759_v59, %v10648_v54 }
 0x6b5   : > { %v4761_v21 = vpop.f32.mrf.mxu1 }
 0x6b6   : > { %10649 = vst [vmem:[#allocation19_spill] sm:$0xff] %v9857_v55  ;;  %v9860_v35 = vadd.f32 %v4761_v21, %v10650_v8  ;;  %v5045_v8 = vsel %vm680_vm6, %v9523_v2, %v9351_v40  ;;  %v5039_v40 = vsel %vm680_vm6, %v9582_v24, %v9578_v26 }
 0x6b7   : > { %v4765_v25 = vpop.f32.mrf.mxu1 }
 0x6b8   : > { %10651 = vst [vmem:[#allocation34_spill] sm:$0xff] %v9860_v35  ;;  %v9863_v45 = vadd.f32 %v4765_v25, %v9471_v52 }
 0x6b9   : > { %v4767_v41 = vpop.f32.mrf.mxu1 }
 0x6ba   : > { %10652 = vst [vmem:[#allocation39_spill] sm:$0xff] %v9863_v45  ;;  %v9866_v36 = vadd.f32 %v4767_v41, %v10653_v37  ;;  %v5042_v37 = vsel %vm680_vm6, %v9552_v3, %v9377_v0 }
 0x6bb   : > { %v6984_v39 = vpop.f32.mrf.mxu1 }
 0x6bc   : > { %10654 = vst [vmem:[#allocation36_spill] sm:$0xff] %v9866_v36  ;;  %v5068_v21 = vsel %vm680_vm6, %v6984_v39, %v9552_v3 }
 0x6bd   : > { %v4988_v56 = vpop.f32.mrf.mxu1 }
 0x6bf   : > { %v6987_v4 = vpop.f32.mrf.mxu1 }
 0x6c0   : > { %v5070_v63 = vsel %vm680_vm6, %v6987_v4, %v10655_v43  ;;  %v10657_v4 = vld [vmem:[#allocation22_spill] sm:$0xff] }
 0x6c1   : > { %v4998_v54 = vpop.f32.mrf.mxu1  ;;  %5129 = vmatpush1.msra.mxu0 %v5070_v63 }
 0x6c2   : > { %v5069_v52 = vsel %vm680_vm6, %v4998_v54, %v9523_v2  ;;  %5130 = vmatprep.subr.mxu0 %v5045_v8  ;;  %v5067_v2 = vsel %vm680_vm6, %v4988_v56, %v9582_v24  ;;  %v10659_v56 = vld [vmem:[#allocation31_spill] sm:$0xff]  ;;  %v10661_v54 = vld [vmem:[#allocation37_spill] sm:$0xff] }
 0x6c3   : > { %5131 = vmatpush1.msra.mxu0 %v5069_v52  ;;  %v5283_v59 = vpop.f32.mrf.mxu1  ;;  %v10663_v52 = vld [vmem:[#allocation38_spill] sm:$0xff] }
 0x6c4   : > { %v9881_v25 = vadd.f32 %v5283_v59, %v9518_v29  ;;  %5132 = vmatprep.subr.mxu0 %v5042_v37  ;;  %v10656_v29 = vld [vmem:[#allocation35_spill] sm:$0xff] }
 0x6c5   : > { %5133 = vmatpush1.msra.mxu0 %v5068_v21  ;;  %v5285_v63 = vpop.f32.mrf.mxu1 }
 0x6c6   : > { %v9889_v41 = vadd.f32 %v5285_v63, %v9526_v27  ;;  %5134 = vmatprep.subr.mxu0 %v5039_v40  ;;  %v10658_v27 = vld [vmem:[#allocation29_spill] sm:$0xff] }
 0x6c7   : > { %5135 = vmatpush1.msra.mxu0 %v5067_v2  ;;  %v5289_v0 = vpop.f32.mrf.mxu1 }
 0x6c8   : > { %v9892_v3 = vadd.f32 %v5289_v0, %v9529_v16  ;;  %6775 = vmatmul.mubr.msk.f32.vlgmr.msra.gmra.mxu0 %vm1952_vm7, %v9612_v28  ;;  %5419 = vmatprep.subr.mxu0 %v10656_v29  ;;  %v10660_v28 = vld [vmem:[#allocation32_spill] sm:$0xff] }
 0x6c9   : > { %v5291_v39 = vpop.f32.mrf.mxu1  ;;  %5420 = vmatpush1.msra.mxu0 %v10657_v4  ;;  %5174 = vmatprep.mubr.f32.mxu0 %v10527_v46 }
 0x6ca   : > { %v9900_v26 = vadd.f32 %v5291_v39, %v9535_v51  ;;  %5421 = vmatprep.subr.mxu0 %v10658_v27  ;;  %v10662_v51 = vld [vmem:[#allocation33_spill] sm:$0xff] }
 0x6cb   : > { %v5295_v24 = vpop.f32.mrf.mxu1  ;;  %5422 = vmatpush1.msra.mxu0 %v10659_v56 }
 0x6cc   : > { %v9905_v16 = vadd.f32 %v5295_v24, %v9538_v44  ;;  %6776 = vmatmul.mubr.msk.f32.gmra.mxu0 %vm1952_vm7, %v9624_v5  ;;  %5423 = vmatprep.subr.mxu0 %v10660_v28 }
 0x6cd   : > { %v9910_v43 = vpop.f32.mrf.mxu1  ;;  %5424 = vmatpush1.msra.mxu0 %v10661_v54  ;;  %5180 = vmatprep.mubr.f32.mxu0 %v10527_v46 }
 0x6ce   : > { %5425 = vmatprep.subr.mxu0 %v10662_v51  ;;  %v5341_v22 = vadd.f32 %v9910_v43, %v9544_v60  ;;  %v4880_v60 = vpop.f32.mrf.mxu0 }
 0x6cf   : > { %v9915_v8 = vpop.f32.mrf.mxu1  ;;  %5426 = vmatpush1.msra.mxu0 %v10663_v52 }
 0x6d0   : > { %6777 = vmatmul.mubr.msk.f32.gmra.mxu0 %vm1952_vm7, %v9636_v6  ;;  %5709 = vmatprep.subr.mxu0 %v10656_v29  ;;  %v9935_v6 = vpop.permute.xlu0 %5921 }
 0x6d1   : > { %v9921_v44 = vpop.f32.mrf.mxu1  ;;  %5186 = vmatprep.mubr.f32.mxu0 %v10527_v46 }
 0x6d2   : > { %v5345_v43 = vadd.f32 %v9921_v44, %v9555_v62 }
 0x6d3   : > { %v9924_v5 = vpop.f32.mrf.mxu1 }
 0x6d4   : > { %6778 = vmatmul.mubr.msk.f32.gmra.mxu0 %vm1952_vm7, %v9647_v20  ;;  %v9944_v20 = vpop.permute.xlu1 %5926  ;;  %v9949_v2 = vpop.permute.xlu0 %5931 }
 0x6d5   : > { %v9928_v59 = vpop.f32.mrf.mxu1  ;;  %5192 = vmatprep.mubr.f32.mxu0 %v10527_v46 }
 0x6d7   : > { %v9931_v37 = vpop.f32.mrf.mxu1 }
 0x6d8   : > { %6779 = vmatmul.mubr.msk.f32.gmra.mxu0 %vm1952_vm7, %v9655_v31  ;;  %v9958_v29 = vpop.permute.xlu1 %6001  ;;  %v9962_v39 = vpop.permute.xlu0 %6006  ;;  %v5352_v62 = vadd.f32 %v9931_v37, %v9567_v42 }
 0x6d9   : > { %v9937_v21 = vpop.f32.mrf.mxu1  ;;  %5198 = vmatprep.mubr.f32.mxu0 %v10527_v46 }
 0x6db   : > { %v9940_v63 = vpop.f32.mrf.mxu1 }
 0x6dc   : > { %6780 = vmatmul.mubr.msk.f32.gmra.mxu0 %vm1952_vm7, %v9663_v14  ;;  %v9972_v35 = vpop.permute.xlu0 %6011 }
 0x6dd   : > { %v9946_v40 = vpop.f32.mrf.mxu1  ;;  %5204 = vmatprep.mubr.f32.mxu0 %v10527_v46 }
 0x6de   : > { %v10064_v37 = vadd.f32 %v9946_v40, %v9586_v18 }
 0x6df   : > { %v9951_v31 = vpop.f32.mrf.mxu1 }
 0x6e0   : > { %6781 = vmatmul.mubr.msk.f32.gmra.mxu0 %vm1952_vm7, %v9671_v7  ;;  %v9967_v7 = vpop.permute.xlu1 %5936 }
 0x6e1   : > { %v9955_v0 = vpop.f32.mrf.mxu1  ;;  %5210 = vmatprep.mubr.f32.mxu0 %v10527_v46 }
 0x6e3   : > { %v5574_v14 = vpop.f32.mrf.mxu1 }
 0x6e4   : > { %6782 = vmatmul.mubr.msk.f32.gmra.mxu0 %vm1952_vm7, %v9679_v17 }
 0x6e5   : > { %v5576_v24 = vpop.f32.mrf.mxu1  ;;  %5459 = vmatprep.mubr.f32.mxu0 %v10527_v46 }
 0x6e7   : > { %v5580_v36 = vpop.f32.mrf.mxu1 }
 0x6e8   : > { %6799 = vmatmul.mubr.msk.f32.vlgmr.msra.gmra.mxu0 %vm1952_vm7, %v9687_v33  ;;  %v5627_v30 = vadd.f32 %v5580_v36, %v9892_v3 }
 0x6e9   : > { %5710 = vmatpush1.msra.mxu0 %v10657_v4  ;;  %v5582_v45 = vpop.f32.mrf.mxu1  ;;  %5465 = vmatprep.mubr.f32.mxu0 %v10527_v46  ;;  %v9981_v4 = vpop.permute.xlu1 %5941 }
 0x6ea   : > { %5711 = vmatprep.subr.mxu0 %v10658_v27 }
 0x6eb   : > { %5712 = vmatpush1.msra.mxu0 %v10659_v56  ;;  %v5586_v17 = vpop.f32.mrf.mxu1  ;;  %v9986_v56 = vpop.permute.xlu0 %6016 }
 0x6ec   : > { %5713 = vmatprep.subr.mxu0 %v10660_v28  ;;  %6800 = vmatmul.mubr.msk.f32.gmra.mxu0 %vm1952_vm7, %v9696_v57 }
 0x6ed   : > { %5714 = vmatpush1.msra.mxu0 %v10661_v54  ;;  %v5588_v33 = vpop.f32.mrf.mxu1  ;;  %5471 = vmatprep.mubr.f32.mxu0 %v10527_v46  ;;  %v9991_v54 = vpop.permute.xlu1 %5946 }
 0x6ee   : > { %5715 = vmatprep.subr.mxu0 %v10662_v51  ;;  %v5623_v51 = vadd.f32 %v5574_v14, %v9881_v25  ;;  %v5631_v25 = vadd.f32 %v5586_v17, %v9905_v16 }
 0x6ef   : > { %5716 = vmatpush1.msra.mxu0 %v10663_v52  ;;  %v5592_v27 = vpop.f32.mrf.mxu1  ;;  %v5624_v52 = vadd.f32 %v5576_v24, %v9889_v41  ;;  %v4466_v41 = vadd.f32 %v9818_v53, %v9493_v9  ;;  %v5632_v24 = vadd.f32 %v5588_v33, %v5341_v22  ;;  %v5348_v33 = vadd.f32 %v9924_v5, %v9558_v32 }
 0x6f0   : > { %6801 = vmatmul.mubr.msk.f32.gmra.mxu0 %vm1952_vm7, %v9708_v10  ;;  %v10000_v10 = vpop.permute.xlu0 %6021  ;;  %v5961_v14 = vmul.f32 %v9935_v6, %v5623_v51  ;;  %v5969_v22 = vmul.f32 %v9949_v2, %v5631_v25  ;;  %v10044_v51 = vstv %s9998_s27  ;;  %v5353_v32 = vadd.f32 %v9937_v21, %v9573_v34  ;;  %s7098_s27 = scalar_lea.vmem %s7097_s21, 128 }
 0x6f1   : > { %v5594_v28 = vpop.f32.mrf.mxu1  ;;  %5477 = vmatprep.mubr.f32.mxu0 %v10527_v46  ;;  %v5962_v36 = vmul.f32 %v9935_v6, %v5624_v52  ;;  %v10020_v3 = vpop.permute.xlu1 %6211  ;;  %p7100_p1 = scmp.lt.s32.totalorder %s7098_s27, %s7092_s22 }
 0x6f2   : > { %v6049_v5 = vadd.f32 %v9972_v35, %v5969_v22 }
 0x6f3   : > { %v5598_v57 = vpop.f32.mrf.mxu1  ;;  %p7101_p2 = por %p7100_p1, %p7099_p0 }
 0x6f4   : > { %6802 = vmatmul.mubr.msk.f32.gmra.mxu0 %vm1952_vm7, %v9718_v61  ;;  %v5628_v61 = vadd.f32 %v5582_v45, %v9900_v26  ;;  %v5344_v45 = vadd.f32 %v9915_v8, %v9547_v11  ;;  %v10029_v16 = vpop.permute.xlu0 %6216  ;;  %v4914_v11 = vadd.f32 %v4880_v60, %v4466_v41  ;;  %v6041_v8 = vadd.f32 %v9958_v29, %v5961_v14 }
 0x6f5   : > { %v9994_v55 = vpop.f32.mrf.mxu1  ;;  %5483 = vmatprep.mubr.f32.mxu0 %v10527_v46  ;;  %v10060_v42 = vpop.permute.xlu1 %5951  ;;  %vm6082_vm2 = vcmp.gt.f32.partialorder %v6049_v5, 0.0  ;;  %p7102_p3 = pnand %p7101_p2, %p7095_p13 }
 0x6f6   : > { %v5966_v9 = vmul.f32 %v9944_v20, %v5628_v61  ;;  %v5635_v26 = vadd.f32 %v5592_v27, %v5344_v45  ;;  %v6042_v27 = vadd.f32 %v9958_v29, %v5962_v36  ;;  %v5636_v61 = vadd.f32 %v5594_v28, %v5345_v43 }
 0x6f7   : > { %v10006_v49 = vpop.f32.mrf.mxu1  ;;  %v10068_v28 = vadd.f32 %v9951_v31, %v9588_v15  ;;  %v6107_v21 = vmul.f32 %v10044_v51, %v6041_v8  ;;  %vm6074_vm6 = vcmp.gt.f32.partialorder %v6041_v8, 0.0 }
 0x6f8   : > { %6803 = vmatmul.mubr.msk.f32.gmra.mxu0 %vm1952_vm7, %v9726_v13  ;;  %v5965_v13 = vmul.f32 %v9944_v20, %v5627_v30  ;;  %v5970_v30 = vmul.f32 %v9949_v2, %v5632_v24  ;;  %v6046_v52 = vadd.f32 %v9962_v39, %v5966_v9  ;;  %v6108_v18 = vmul.f32 %v10044_v51, %v6042_v27  ;;  %v10079_v40 = vpop.permute.xlu0 %6026 }
 0x6f9   : > { %v10014_v58 = vpop.f32.mrf.mxu1  ;;  %5489 = vmatprep.mubr.f32.mxu0 %v10527_v46  ;;  %v5974_v15 = vmul.f32 %v9967_v7, %v5636_v61  ;;  %vm6075_vm8 = vcmp.gt.f32.partialorder %v6042_v27, 0.0  ;;  %v6139_v60 = vsel %vm6074_vm6, %v6041_v8, %v6107_v21 }
 0x6fa   : > { %v6045_v44 = vadd.f32 %v9962_v39, %v5965_v13  ;;  %v6050_v34 = vadd.f32 %v9972_v35, %v5970_v30  ;;  %v6112_v14 = vmul.f32 %v10044_v51, %v6046_v52  ;;  %vm6079_vm1 = vcmp.gt.f32.partialorder %v6046_v52, 0.0 }
 0x6fb   : > { %v10024_v53 = vpop.f32.mrf.mxu1  ;;  %v6140_v22 = vsel %vm6075_vm8, %v6042_v27, %v6108_v18 }
 0x6fc   : > { %6804 = vmatmul.mubr.msk.f32.gmra.mxu0 %vm1952_vm7, %v9734_v38  ;;  %v5349_v38 = vadd.f32 %v9928_v59, %v9564_v19  ;;  %v5356_v19 = vadd.f32 %v9940_v63, %v9576_v12  ;;  %v5973_v59 = vmul.f32 %v9967_v7, %v5635_v26  ;;  %v5639_v63 = vadd.f32 %v5598_v57, %v5348_v33  ;;  %v10101_v27 = vpop.permute.xlu0 %5956 }
 0x6fd   : > { %v10035_v17 = vpop.f32.mrf.mxu1  ;;  %5495 = vmatprep.mubr.f32.mxu0 %v10527_v46  ;;  %v6111_v41 = vmul.f32 %v10044_v51, %v6045_v44  ;;  %vm6078_vm5 = vcmp.gt.f32.partialorder %v6045_v44, 0.0  ;;  %v6116_v36 = vmul.f32 %v10044_v51, %v6050_v34  ;;  %vm6083_vm4 = vcmp.gt.f32.partialorder %v6050_v34, 0.0 }
 0x6fe   : > { %v6053_v24 = vadd.f32 %v9986_v56, %v5973_v59  ;;  %v5640_v57 = vadd.f32 %v9994_v55, %v5349_v38  ;;  %v5977_v13 = vmul.f32 %v9981_v4, %v5639_v63  ;;  %v6054_v26 = vadd.f32 %v9986_v56, %v5974_v15 }
 0x6ff   : > { %v10050_v25 = vpop.f32.mrf.mxu1  ;;  %v6143_v43 = vsel %vm6078_vm5, %v6045_v44, %v6111_v41  ;;  %v6144_v8 = vsel %vm6079_vm1, %v6046_v52, %v6112_v14  ;;  %v5644_v59 = vadd.f32 %v10014_v58, %v5353_v32  ;;  %v5647_v18 = vadd.f32 %v10024_v53, %v5356_v19 }
 0x700   : > { %6805 = vmatmul.mubr.msk.f32.gmra.mxu0 %vm1952_vm7, %v9742_v23  ;;  %v10076_v23 = vadd.f32 %v9955_v0, %v4914_v11  ;;  %v6115_v0 = vmul.f32 %v10044_v51, %v6049_v5  ;;  %v5643_v11 = vadd.f32 %v10006_v49, %v5352_v62  ;;  %vm6086_vm9 = vcmp.gt.f32.partialorder %v6053_v24, 0.0 }
 0x701   : > { %v10071_v12 = vpop.f32.mrf.mxu1  ;;  %5501 = vmatprep.mubr.f32.mxu0 %v10527_v46  ;;  %v5978_v61 = vmul.f32 %v9981_v4, %v5640_v57  ;;  %v6148_v49 = vsel %vm6083_vm4, %v6050_v34, %v6116_v36  ;;  %v6119_v62 = vmul.f32 %v10044_v51, %v6053_v24  ;;  %v6057_v44 = vadd.f32 %v10000_v10, %v5977_v13 }
 0x702   : > { %v6147_v38 = vsel %vm6082_vm2, %v6049_v5, %v6115_v0  ;;  %v5981_v63 = vmul.f32 %v9991_v54, %v5643_v11  ;;  %vm6087_vm10 = vcmp.gt.f32.partialorder %v6054_v26, 0.0  ;;  %v6120_v58 = vmul.f32 %v10044_v51, %v6054_v26 }
 0x703   : > { %v5864_v31 = vpop.f32.mrf.mxu1  ;;  %v6058_v0 = vadd.f32 %v10000_v10, %v5978_v61  ;;  %v5982_v57 = vmul.f32 %v9991_v54, %v5644_v59  ;;  %v5648_v53 = vadd.f32 %v10035_v17, %v10064_v37  ;;  %vm6090_vm3 = vcmp.gt.f32.partialorder %v6057_v44, 0.0 }
 0x704   : > { %6806 = vmatmul.mubr.msk.f32.gmra.mxu0 %vm1952_vm7, %v9750_v47  ;;  %v6171_v9 = vadd.f32 %v6139_v60, %v5864_v31  ;;  %v10093_v47 = vpop.permute.xlu1 %6221  ;;  %v6151_v60 = vsel %vm6086_vm9, %v6053_v24, %v6119_v62  ;;  %v5651_v11 = vadd.f32 %v10050_v25, %v10068_v28  ;;  %v6123_v37 = vmul.f32 %v10044_v51, %v6057_v44 }
 0x705   : > { %v5866_v45 = vpop.f32.mrf.mxu1  ;;  %5749 = vmatprep.mubr.f32.mxu0 %v10527_v46  ;;  %v6124_v28 = vmul.f32 %v10044_v51, %v6058_v0  ;;  %vm6091_vm12 = vcmp.gt.f32.partialorder %v6058_v0, 0.0 }
 0x706   : > { %v6172_v30 = vadd.f32 %v6140_v22, %v5866_v45  ;;  %v6251_v52 = vmul.f32 %v10020_v3, %v6171_v9  ;;  %v6061_v9 = vadd.f32 %v10079_v40, %v5981_v63  ;;  %v5985_v22 = vmul.f32 %v10060_v42, %v5647_v18  ;;  %v10664_v63 = vld [vmem:[#allocation50_spill] sm:$0xff] }
 0x707   : > { %v5870_v55 = vpop.f32.mrf.mxu1 }
 0x708   : > { %v6175_v33 = vadd.f32 %v6143_v43, %v5870_v55  ;;  %6815 = vmatmul.mubr.msk.f32.vlgmr.msra.gmra.mxu0 %vm1952_vm7, %v9758_v50  ;;  %v6252_v32 = vmul.f32 %v10020_v3, %v6172_v30  ;;  %v10118_v14 = vpop.permute.xlu1 %6031  ;;  %v6062_v30 = vadd.f32 %v10079_v40, %v5982_v57  ;;  %vm6094_vm11 = vcmp.gt.f32.partialorder %v6061_v9, 0.0 }
 0x709   : > { %v5872_v21 = vpop.f32.mrf.mxu1  ;;  %5755 = vmatprep.mubr.f32.mxu0 %v10527_v46 }
 0x70a   : > { %v6255_v50 = vmul.f32 %v10029_v16, %v6175_v33  ;;  %v6176_v5 = vadd.f32 %v6144_v8, %v5872_v21  ;;  %v6152_v8 = vsel %vm6087_vm10, %v6054_v26, %v6120_v58  ;;  %v5986_v33 = vmul.f32 %v10060_v42, %v5648_v53 }
 0x70b   : > { %v5876_v15 = vpop.f32.mrf.mxu1  ;;  %v6065_v26 = vadd.f32 %v10118_v14, %v5985_v22  ;;  %vm6095_vm13 = vcmp.gt.f32.partialorder %v6062_v30, 0.0 }
 0x70c   : > { %v6307_v34 = vadd.f32 %v6255_v50, %v6251_v52  ;;  %v6256_v31 = vmul.f32 %v10029_v16, %v6176_v5  ;;  %v6179_v41 = vadd.f32 %v6147_v38, %v5876_v15  ;;  %6816 = vmatmul.mubr.msk.f32.gmra.mxu0 %vm1952_vm7, %v9766_v1  ;;  %v10127_v1 = vpop.permute.xlu0 %6226  ;;  %v5652_v38 = vadd.f32 %v10071_v12, %v10076_v23 }
 0x70d   : > { %v5878_v19 = vpop.f32.mrf.mxu1  ;;  %5761 = vmatprep.mubr.f32.mxu0 %v10527_v46  ;;  %v6155_v52 = vsel %vm6090_vm3, %v6057_v44, %v6123_v37  ;;  %v6127_v12 = vmul.f32 %v10044_v51, %v6061_v9  ;;  %v6066_v15 = vadd.f32 %v10118_v14, %v5986_v33  ;;  %v6128_v44 = vmul.f32 %v10044_v51, %v6062_v30 }
 0x70e   : > { %v6320_v45 = vadd.f32 %v6256_v31, %v6252_v32  ;;  %v6259_v36 = vmul.f32 %v10093_v47, %v6179_v41  ;;  %v6180_v13 = vadd.f32 %v6148_v49, %v5878_v19  ;;  %v5989_v49 = vmul.f32 %v10101_v27, %v5651_v11 }
 0x70f   : > { %v5882_v17 = vpop.f32.mrf.mxu1  ;;  %v5990_v58 = vmul.f32 %v10101_v27, %v5652_v38  ;;  %vm6098_vm14 = vcmp.gt.f32.partialorder %v6065_v26, 0.0  ;;  %vm6099_vm15 = vcmp.gt.f32.partialorder %v6066_v15, 0.0 }
 0x710   : > { %v6308_v55 = vadd.f32 %v6307_v34, %v6259_v36  ;;  %v6260_v24 = vmul.f32 %v10093_v47, %v6180_v13  ;;  %v6183_v43 = vadd.f32 %v6151_v60, %v5882_v17  ;;  %6817 = vmatmul.mubr.msk.f32.gmra.mxu0 %vm1952_vm7, %v9774_v48  ;;  %v10145_v48 = vpop.permute.xlu1 %6036  ;;  %v10154_v18 = vpop.permute.xlu0 %6231  ;;  %v6156_v34 = vsel %vm6091_vm12, %v6058_v0, %v6124_v28  ;;  %v10665_v0 = vld [vmem:[#allocation52_spill] sm:$0xff] }
 0x711   : > { %v5884_v25 = vpop.f32.mrf.mxu1  ;;  %5767 = vmatprep.mubr.f32.mxu0 %v10527_v46  ;;  %v6069_v53 = vadd.f32 %v10145_v48, %v5989_v49  ;;  %v6159_v60 = vsel %vm6094_vm11, %v6061_v9, %v6127_v12  ;;  %v6070_v17 = vadd.f32 %v10145_v48, %v5990_v58  ;;  %v6132_v9 = vmul.f32 %v10044_v51, %v6066_v15 }
 0x712   : > { %v6321_v61 = vadd.f32 %v6320_v45, %v6260_v24  ;;  %v6263_v59 = vmul.f32 %v10127_v1, %v6183_v43  ;;  %v6184_v21 = vadd.f32 %v6152_v8, %v5884_v25  ;;  %v6131_v45 = vmul.f32 %v10044_v51, %v6065_v26 }
 0x713   : > { %v5888_v62 = vpop.f32.mrf.mxu1  ;;  %v6135_v25 = vmul.f32 %v10044_v51, %v6069_v53  ;;  %vm6102_vm0 = vcmp.gt.f32.partialorder %v6069_v53, 0.0  ;;  %vm6103_vm6 = vcmp.gt.f32.partialorder %v6070_v17, 0.0 }
 0x714   : > { %v6309_v23 = vadd.f32 %v6308_v55, %v6263_v59  ;;  %v6264_v50 = vmul.f32 %v10127_v1, %v6184_v21  ;;  %v6187_v5 = vadd.f32 %v6155_v52, %v5888_v62  ;;  %6818 = vmatmul.mubr.msk.f32.gmra.mxu0 %vm1952_vm7, %v10664_v63  ;;  %v10167_v11 = vpop.permute.xlu1 %6236  ;;  %v6160_v55 = vsel %vm6095_vm13, %v6062_v30, %v6128_v44  ;;  %v10666_v21 = vld [vmem:[#allocation54_spill] sm:$0xff]  ;;  %v10177_v30 = vpop.permute.xlu0 %6241 }
 0x715   : > { %v5890_v32 = vpop.f32.mrf.mxu1  ;;  %5773 = vmatprep.mubr.f32.mxu0 %v10527_v46  ;;  %v6163_v38 = vsel %vm6098_vm14, %v6065_v26, %v6131_v45  ;;  %10667 = vst [vmem:[#allocation40_spill] sm:$0xff] %v10177_v30  ;;  %v6164_v62 = vsel %vm6099_vm15, %v6066_v15, %v6132_v9  ;;  %v6136_v52 = vmul.f32 %v10044_v51, %v6070_v17  ;;  %v10670_v45 = vld [vmem:[#allocation56_spill] sm:$0xff] }
 0x716   : > { %v6322_v31 = vadd.f32 %v6321_v61, %v6264_v50  ;;  %v6267_v41 = vmul.f32 %v10154_v18, %v6187_v5  ;;  %v6188_v57 = vadd.f32 %v6156_v34, %v5890_v32  ;;  %v6167_v5 = vsel %vm6102_vm0, %v6069_v53, %v6135_v25  ;;  %v10668_v34 = vld [vmem:[#allocation55_spill] sm:$0xff] }
 0x717   : > { %v5894_v19 = vpop.f32.mrf.mxu1 }
 0x718   : > { %v6310_v36 = vadd.f32 %v6309_v23, %v6267_v41  ;;  %v6268_v13 = vmul.f32 %v10154_v18, %v6188_v57  ;;  %v6191_v22 = vadd.f32 %v6159_v60, %v5894_v19  ;;  %6819 = vmatmul.mubr.msk.f32.gmra.mxu0 %vm1952_vm7, %v10665_v0  ;;  %v10185_v44 = vpop.permute.xlu1 %6246 }
 0x719   : > { %v5896_v37 = vpop.f32.mrf.mxu1  ;;  %5779 = vmatprep.mubr.f32.mxu0 %v10527_v46  ;;  %10669 = vst [vmem:[#allocation42_spill] sm:$0xff] %v10185_v44 }
 0x71a   : > { %v6323_v24 = vadd.f32 %v6322_v31, %v6268_v13  ;;  %v6271_v43 = vmul.f32 %v10167_v11, %v6191_v22  ;;  %v6192_v8 = vadd.f32 %v6160_v55, %v5896_v37  ;;  %v6168_v31 = vsel %vm6103_vm6, %v6070_v17, %v6136_v52  ;;  %v10675_v52 = vld [vmem:[#allocation18_spill] sm:$0xff] }
 0x71b   : > { %v5900_v33 = vpop.f32.mrf.mxu1 }
 0x71c   : > { %v6311_v28 = vadd.f32 %v6310_v36, %v6271_v43  ;;  %v6272_v61 = vmul.f32 %v10167_v11, %v6192_v8  ;;  %v6195_v59 = vadd.f32 %v6163_v38, %v5900_v33  ;;  %6820 = vmatmul.mubr.msk.f32.gmra.mxu0 %vm1952_vm7, %v10666_v21  ;;  %v10674_v21 = vld [vmem:[#allocation53_spill] sm:$0xff] }
 0x71d   : > { %v5902_v49 = vpop.f32.mrf.mxu1  ;;  %5785 = vmatprep.mubr.f32.mxu0 %v10527_v46 }
 0x71e   : > { %v6324_v12 = vadd.f32 %v6323_v24, %v6272_v61  ;;  %v6275_v26 = vmul.f32 %v10177_v30, %v6195_v59  ;;  %v6196_v23 = vadd.f32 %v6164_v62, %v5902_v49 }
 0x71f   : > { %v5906_v50 = vpop.f32.mrf.mxu1 }
 0x720   : > { %v6312_v63 = vadd.f32 %v6311_v28, %v6275_v26  ;;  %v6276_v58 = vmul.f32 %v10177_v30, %v6196_v23  ;;  %v6199_v32 = vadd.f32 %v6167_v5, %v5906_v50  ;;  %6821 = vmatmul.mubr.msk.f32.gmra.mxu0 %vm1952_vm7, %v10668_v34  ;;  %v10673_v28 = vld [vmem:[#allocation17_spill] sm:$0xff]  ;;  %v10676_v23 = vld [vmem:[#allocation24_spill] sm:$0xff] }
 0x721   : > { %v5908_v15 = vpop.f32.mrf.mxu1  ;;  %5791 = vmatprep.mubr.f32.mxu0 %v10527_v46 }
 0x722   : > { %v6325_v41 = vadd.f32 %v6324_v12, %v6276_v58  ;;  %v6279_v57 = vmul.f32 %v10185_v44, %v6199_v32  ;;  %v6200_v19 = vadd.f32 %v6168_v31, %v5908_v15 }
 0x724   : > { %v6313_v60 = vadd.f32 %v6312_v63, %v6279_v57  ;;  %v6280_v53 = vmul.f32 %v10185_v44, %v6200_v19  ;;  %6822 = vmatmul.mubr.msk.f32.gmra.mxu0 %vm1952_vm7, %v10670_v45  ;;  %v10677_v63 = vld [vmem:[#allocation23_spill] sm:$0xff] }
 0x726   : > { %v6314_v36 = vrot.slane %v6313_v60, 4  ;;  %v6326_v13 = vadd.f32 %v6325_v41, %v6280_v53 }
 0x728   : > { %v6315_v22 = vadd.f32 %v6314_v36, %v6313_v60  ;;  %v6327_v0 = vrot.slane %v6326_v13, 4 }
 0x72a   : > { %v6316_v37 = vrot.slane %v6315_v22, 2  ;;  %v6328_v55 = vadd.f32 %v6327_v0, %v6326_v13 }
 0x72c   : > { %v6317_v9 = vadd.f32 %v6316_v37, %v6315_v22  ;;  %v6329_v17 = vrot.slane %v6328_v55, 2 }
 0x72e   : > { %v6318_v24 = vrot.slane %v6317_v9, 1  ;;  %v6330_v46 = vadd.f32 %v6329_v17, %v6328_v55 }
 0x730   : > { %v6331_v43 = vrot.slane %v6330_v46, 1  ;;  %v10192_v8 = vadd.f32 %v6318_v24, %v6317_v9 }
 0x732   : > { %10671 = vst [vmem:[#allocation43_spill] sm:$0xff] %v10192_v8  ;;  %v10194_v33 = vadd.f32 %v6331_v43, %v6330_v46 }
 0x734   : > { %10672 = vst [vmem:[#allocation44_spill] sm:$0xff] %v10194_v33  ;;  %v10679_v33 = vld [vmem:[#allocation25_spill] sm:$0xff] }
 0x788   : > { %v5170_v25 = vpop.f32.mrf.mxu0 }
 0x789   : > { %v5330_v61 = vadd.f32 %v5170_v25, %v10673_v28 }
 0x78a   : > { %v5172_v59 = vpop.f32.mrf.mxu0 }
 0x78b   : > { %v5331_v49 = vadd.f32 %v5172_v59, %v10674_v21  ;;  %v10678_v59 = vld [vmem:[#allocation27_spill] sm:$0xff] }
 0x78c   : > { %v5176_v62 = vpop.f32.mrf.mxu0 }
 0x78d   : > { %v5334_v12 = vadd.f32 %v5176_v62, %v10675_v52 }
 0x78e   : > { %v5178_v26 = vpop.f32.mrf.mxu0 }
 0x78f   : > { %v5335_v50 = vadd.f32 %v5178_v26, %v10676_v23 }
 0x790   : > { %v5182_v5 = vpop.f32.mrf.mxu0 }
 0x791   : > { %v5338_v58 = vadd.f32 %v5182_v5, %v10677_v63 }
 0x792   : > { %v5184_v32 = vpop.f32.mrf.mxu0 }
 0x793   : > { %v5339_v21 = vadd.f32 %v5184_v32, %v10678_v59 }
 0x794   : > { %v5188_v34 = vpop.f32.mrf.mxu0 }
 0x795   : > { %v5342_v8 = vadd.f32 %v5188_v34, %v10679_v33  ;;  %v10681_v33 = vld [vmem:[#allocation21_spill] sm:$0xff] }
 0x796   : > { %v5190_v15 = vpop.f32.mrf.mxu0 }
 0x798   : > { %v5194_v31 = vpop.f32.mrf.mxu0 }
 0x799   : > { %v5346_v34 = vadd.f32 %v5194_v31, %v10681_v33 }
 0x79a   : > { %v5196_v41 = vpop.f32.mrf.mxu0 }
 0x79c   : > { %v5200_v57 = vpop.f32.mrf.mxu0 }
 0x79e   : > { %v5202_v19 = vpop.f32.mrf.mxu0 }
 0x7a0   : > { %v5206_v60 = vpop.f32.mrf.mxu0 }
 0x7a2   : > { %v5208_v53 = vpop.f32.mrf.mxu0 }
 0x7a4   : > { %v5212_v45 = vpop.f32.mrf.mxu0 }
 0x7a6   : > { %v5214_v36 = vpop.f32.mrf.mxu0 }
 0x7a8   : > { %v5461_v13 = vpop.f32.mrf.mxu0 }
 0x7a9   : > { %v5621_v43 = vadd.f32 %v5461_v13, %v5330_v61 }
 0x7aa   : > { %v5463_v22 = vpop.f32.mrf.mxu0 }
 0x7ab   : > { %v5622_v28 = vadd.f32 %v5463_v22, %v5331_v49  ;;  %v5959_v5 = vmul.f32 %v9935_v6, %v5621_v43 }
 0x7ac   : > { %v5467_v0 = vpop.f32.mrf.mxu0 }
 0x7ad   : > { %v5625_v62 = vadd.f32 %v5467_v0, %v5334_v12  ;;  %v5960_v44 = vmul.f32 %v9935_v6, %v5622_v28  ;;  %v10682_v6 = vld [vmem:[#allocation28_spill] sm:$0xff] }
 0x7ae   : > { %v5469_v37 = vpop.f32.mrf.mxu0  ;;  %v10684_v28 = vld [vmem:[#allocation20_spill] sm:$0xff] }
 0x7af   : > { %v5626_v52 = vadd.f32 %v5469_v37, %v5335_v50  ;;  %v5963_v30 = vmul.f32 %v9944_v20, %v5625_v62  ;;  %v10680_v50 = vld [vmem:[#allocation26_spill] sm:$0xff]  ;;  %v5347_v37 = vadd.f32 %v5196_v41, %v10682_v6  ;;  %v5351_v59 = vadd.f32 %v5202_v19, %v10684_v28 }
 0x7b0   : > { %v5473_v55 = vpop.f32.mrf.mxu0  ;;  %v5343_v32 = vadd.f32 %v5190_v15, %v10680_v50  ;;  %v10686_v41 = vld [vmem:[#allocation34_spill] sm:$0xff] }
 0x7b1   : > { %v5629_v23 = vadd.f32 %v5473_v55, %v5338_v58  ;;  %v5964_v61 = vmul.f32 %v9944_v20, %v5626_v52  ;;  %v6039_v58 = vadd.f32 %v9958_v29, %v5959_v5  ;;  %v6040_v55 = vadd.f32 %v9958_v29, %v5960_v44  ;;  %v10683_v20 = vld [vmem:[#allocation30_spill] sm:$0xff]  ;;  %v10687_v29 = vld [vmem:[#allocation39_spill] sm:$0xff] }
 0x7b2   : > { %v5475_v9 = vpop.f32.mrf.mxu0  ;;  %v6043_v43 = vadd.f32 %v9962_v39, %v5963_v30  ;;  %v5355_v52 = vadd.f32 %v5208_v53, %v10686_v41  ;;  %v10231_v44 = vadd.f32 %v5212_v45, %v10687_v29 }
 0x7b3   : > { %v5630_v63 = vadd.f32 %v5475_v9, %v5339_v21  ;;  %v5967_v49 = vmul.f32 %v9949_v2, %v5629_v23  ;;  %v5350_v9 = vadd.f32 %v5200_v57, %v10683_v20  ;;  %vm6072_vm7 = vcmp.gt.f32.partialorder %v6039_v58, 0.0 }
 0x7b4   : > { %v5479_v17 = vpop.f32.mrf.mxu0  ;;  %vm6073_vm8 = vcmp.gt.f32.partialorder %v6040_v55, 0.0  ;;  %v6109_v53 = vmul.f32 %v10044_v51, %v6043_v43  ;;  %vm6076_vm5 = vcmp.gt.f32.partialorder %v6043_v43, 0.0 }
 0x7b5   : > { %v5633_v12 = vadd.f32 %v5479_v17, %v5342_v8  ;;  %v5968_v22 = vmul.f32 %v9949_v2, %v5630_v63  ;;  %v6044_v8 = vadd.f32 %v9962_v39, %v5964_v61  ;;  %v10685_v2 = vld [vmem:[#allocation19_spill] sm:$0xff]  ;;  %v6047_v62 = vadd.f32 %v9972_v35, %v5967_v49 }
 0x7b6   : > { %v5481_v24 = vpop.f32.mrf.mxu0  ;;  %v5354_v21 = vadd.f32 %v5206_v60, %v10685_v2  ;;  %v6105_v39 = vmul.f32 %v10044_v51, %v6039_v58  ;;  %v6106_v60 = vmul.f32 %v10044_v51, %v6040_v55  ;;  %v6141_v6 = vsel %vm6076_vm5, %v6043_v43, %v6109_v53 }
 0x7b7   : > { %v5634_v17 = vadd.f32 %v5481_v24, %v5343_v32  ;;  %v5971_v31 = vmul.f32 %v9967_v7, %v5633_v12  ;;  %v6048_v30 = vadd.f32 %v9972_v35, %v5968_v22  ;;  %v10688_v24 = vld [vmem:[#allocation36_spill] sm:$0xff]  ;;  %v6110_v45 = vmul.f32 %v10044_v51, %v6044_v8 }
 0x7b8   : > { %v5485_v46 = vpop.f32.mrf.mxu0  ;;  %v10238_v23 = vadd.f32 %v5214_v36, %v10688_v24  ;;  %vm6077_vm1 = vcmp.gt.f32.partialorder %v6044_v8, 0.0  ;;  %v6113_v61 = vmul.f32 %v10044_v51, %v6047_v62  ;;  %v6137_v49 = vsel %vm6072_vm7, %v6039_v58, %v6105_v39 }
 0x7b9   : > { %v5637_v19 = vadd.f32 %v5485_v46, %v5346_v34  ;;  %v5972_v5 = vmul.f32 %v9967_v7, %v5634_v17  ;;  %v6051_v35 = vadd.f32 %v9986_v56, %v5971_v31  ;;  %vm6080_vm2 = vcmp.gt.f32.partialorder %v6047_v62, 0.0 }
 0x7ba   : > { %v5487_v25 = vpop.f32.mrf.mxu0  ;;  %v6114_v12 = vmul.f32 %v10044_v51, %v6048_v30  ;;  %v6138_v32 = vsel %vm6073_vm8, %v6040_v55, %v6106_v60  ;;  %vm6081_vm4 = vcmp.gt.f32.partialorder %v6048_v30, 0.0  ;;  %v6142_v20 = vsel %vm6077_vm1, %v6044_v8, %v6110_v45 }
 0x7bb   : > { %v5638_v36 = vadd.f32 %v5487_v25, %v5347_v37  ;;  %v5975_v7 = vmul.f32 %v9981_v4, %v5637_v19  ;;  %v6052_v22 = vadd.f32 %v9986_v56, %v5972_v5  ;;  %v6145_v2 = vsel %vm6080_vm2, %v6047_v62, %v6113_v61 }
 0x7bc   : > { %v5491_v26 = vpop.f32.mrf.mxu0  ;;  %vm6084_vm9 = vcmp.gt.f32.partialorder %v6051_v35, 0.0  ;;  %v6146_v31 = vsel %vm6081_vm4, %v6048_v30, %v6114_v12  ;;  %v6117_v41 = vmul.f32 %v10044_v51, %v6051_v35 }
 0x7bd   : > { %v5641_v33 = vadd.f32 %v5491_v26, %v5350_v9  ;;  %v5976_v25 = vmul.f32 %v9981_v4, %v5638_v36  ;;  %v6055_v55 = vadd.f32 %v10000_v10, %v5975_v7  ;;  %vm6085_vm10 = vcmp.gt.f32.partialorder %v6052_v22, 0.0 }
 0x7be   : > { %v5493_v38 = vpop.f32.mrf.mxu0  ;;  %v6118_v4 = vmul.f32 %v10044_v51, %v6052_v22  ;;  %v6149_v5 = vsel %vm6084_vm9, %v6051_v35, %v6117_v41 }
 0x7bf   : > { %v5642_v58 = vadd.f32 %v5493_v38, %v5351_v59  ;;  %v5979_v9 = vmul.f32 %v9991_v54, %v5641_v33  ;;  %v6056_v39 = vadd.f32 %v10000_v10, %v5976_v25  ;;  %vm6088_vm3 = vcmp.gt.f32.partialorder %v6055_v55, 0.0 }
 0x7c0   : > { %v10209_v13 = vpop.f32.mrf.mxu0  ;;  %v6150_v35 = vsel %vm6085_vm10, %v6052_v22, %v6118_v4 }
 0x7c1   : > { %v5645_v43 = vadd.f32 %v10209_v13, %v5354_v21  ;;  %v5980_v24 = vmul.f32 %v9991_v54, %v5642_v58  ;;  %v6121_v54 = vmul.f32 %v10044_v51, %v6055_v55  ;;  %v6122_v12 = vmul.f32 %v10044_v51, %v6056_v39 }
 0x7c2   : > { %v10215_v0 = vpop.f32.mrf.mxu0  ;;  %vm6089_vm12 = vcmp.gt.f32.partialorder %v6056_v39, 0.0 }
 0x7c3   : > { %v5646_v19 = vadd.f32 %v10215_v0, %v5355_v52  ;;  %v5983_v53 = vmul.f32 %v10060_v42, %v5645_v43  ;;  %v6060_v61 = vadd.f32 %v10079_v40, %v5980_v24 }
 0x7c4   : > { %v10223_v15 = vpop.f32.mrf.mxu0 }
 0x7c5   : > { %v5984_v36 = vmul.f32 %v10060_v42, %v5646_v19  ;;  %vm6093_vm13 = vcmp.gt.f32.partialorder %v6060_v61, 0.0 }
 0x7c6   : > { %v10234_v57 = vpop.f32.mrf.mxu0 }
 0x7c7   : > { %v6064_v33 = vadd.f32 %v10118_v14, %v5984_v36 }
 0x7c8   : > { %v5751_v63 = vpop.f32.mrf.mxu0 }
 0x7c9   : > { %v6169_v50 = vadd.f32 %v6137_v49, %v5751_v63  ;;  %v5650_v49 = vadd.f32 %v10234_v57, %v10238_v23  ;;  %vm6097_vm15 = vcmp.gt.f32.partialorder %v6064_v33, 0.0 }
 0x7ca   : > { %v5753_v46 = vpop.f32.mrf.mxu0 }
 0x7cb   : > { %v6170_v17 = vadd.f32 %v6138_v32, %v5753_v46  ;;  %v6249_v29 = vmul.f32 %v10020_v3, %v6169_v50 }
 0x7cc   : > { %v5757_v34 = vpop.f32.mrf.mxu0 }
 0x7cd   : > { %v6173_v28 = vadd.f32 %v6141_v6, %v5757_v34  ;;  %v6250_v38 = vmul.f32 %v10020_v3, %v6170_v17  ;;  %v6059_v3 = vadd.f32 %v10079_v40, %v5979_v9  ;;  %v6153_v40 = vsel %vm6088_vm3, %v6055_v55, %v6121_v54 }
 0x7ce   : > { %v5759_v37 = vpop.f32.mrf.mxu0  ;;  %v5988_v34 = vmul.f32 %v10101_v27, %v5650_v49  ;;  %v6126_v17 = vmul.f32 %v10044_v51, %v6060_v61 }
 0x7cf   : > { %v6253_v56 = vmul.f32 %v10029_v16, %v6173_v28  ;;  %v6174_v26 = vadd.f32 %v6142_v20, %v5759_v37  ;;  %v6125_v42 = vmul.f32 %v10044_v51, %v6059_v3  ;;  %vm6092_vm11 = vcmp.gt.f32.partialorder %v6059_v3, 0.0 }
 0x7d0   : > { %v5763_v8 = vpop.f32.mrf.mxu0  ;;  %v6154_v20 = vsel %vm6089_vm12, %v6056_v39, %v6122_v12 }
 0x7d1   : > { %v6281_v59 = vadd.f32 %v6253_v56, %v6249_v29  ;;  %v6254_v62 = vmul.f32 %v10029_v16, %v6174_v26  ;;  %v6177_v30 = vadd.f32 %v6145_v2, %v5763_v8  ;;  %v5649_v16 = vadd.f32 %v10223_v15, %v10231_v44 }
 0x7d2   : > { %v5765_v60 = vpop.f32.mrf.mxu0  ;;  %v6158_v56 = vsel %vm6093_vm13, %v6060_v61, %v6126_v17  ;;  %v6130_v26 = vmul.f32 %v10044_v51, %v6064_v33  ;;  %v10692_v17 = vld [vmem:[#allocation43_spill] sm:$0xff] }
 0x7d3   : > { %v6294_v13 = vadd.f32 %v6254_v62, %v6250_v38  ;;  %v6257_v21 = vmul.f32 %v10093_v47, %v6177_v30  ;;  %v6178_v63 = vadd.f32 %v6146_v31, %v5765_v60  ;;  %v5987_v50 = vmul.f32 %v10101_v27, %v5649_v16  ;;  %v10689_v60 = vld [vmem:[#allocation40_spill] sm:$0xff] }
 0x7d4   : > { %v5769_v10 = vpop.f32.mrf.mxu0  ;;  %v6157_v31 = vsel %vm6092_vm11, %v6059_v3, %v6125_v42  ;;  %v6068_v27 = vadd.f32 %v10145_v48, %v5988_v34 }
 0x7d5   : > { %v6282_v45 = vadd.f32 %v6281_v59, %v6257_v21  ;;  %v6258_v0 = vmul.f32 %v10093_v47, %v6178_v63  ;;  %v6181_v52 = vadd.f32 %v6149_v5, %v5769_v10  ;;  %v6063_v47 = vadd.f32 %v10118_v14, %v5983_v53 }
 0x7d6   : > { %v5771_v46 = vpop.f32.mrf.mxu0  ;;  %v6067_v58 = vadd.f32 %v10145_v48, %v5987_v50  ;;  %v6162_v48 = vsel %vm6097_vm15, %v6064_v33, %v6130_v26  ;;  %v6134_v24 = vmul.f32 %v10044_v51, %v6068_v27  ;;  %vm6101_vm6 = vcmp.gt.f32.partialorder %v6068_v27, 0.0  ;;  %v10691_v33 = vld [vmem:[#allocation16_spill] sm:$0xff] }
 0x7d7   : > { %v6295_v15 = vadd.f32 %v6294_v13, %v6258_v0  ;;  %v6261_v44 = vmul.f32 %v10127_v1, %v6181_v52  ;;  %v6182_v7 = vadd.f32 %v6150_v35, %v5771_v46  ;;  %vm6096_vm14 = vcmp.gt.f32.partialorder %v6063_v47, 0.0 }
 0x7d8   : > { %v5775_v32 = vpop.f32.mrf.mxu0  ;;  %v6133_v59 = vmul.f32 %v10044_v51, %v6067_v58  ;;  %vm6100_vm0 = vcmp.gt.f32.partialorder %v6067_v58, 0.0  ;;  %v6166_v54 = vsel %vm6101_vm6, %v6068_v27, %v6134_v24 }
 0x7d9   : > { %v6283_v22 = vadd.f32 %v6282_v45, %v6261_v44  ;;  %v6262_v57 = vmul.f32 %v10127_v1, %v6182_v7  ;;  %v6185_v23 = vadd.f32 %v6153_v40, %v5775_v32  ;;  %v6129_v1 = vmul.f32 %v10044_v51, %v6063_v47  ;;  %v10690_v45 = vld [vmem:[#allocation42_spill] sm:$0xff] }
 0x7da   : > { %v5777_v6 = vpop.f32.mrf.mxu0  ;;  %v6165_v63 = vsel %vm6100_vm0, %v6067_v58, %v6133_v59  ;;  %v7187_v44 = vmov 1966171168  }
 0x7db   : > { %v6296_v28 = vadd.f32 %v6295_v15, %v6262_v57  ;;  %v6265_v2 = vmul.f32 %v10154_v18, %v6185_v23  ;;  %v6186_v25 = vadd.f32 %v6154_v20, %v5777_v6  ;;  %v6161_v38 = vsel %vm6096_vm14, %v6063_v47, %v6129_v1 }
 0x7dc   : > { %v5781_v37 = vpop.f32.mrf.mxu0  ;;  %v6340_v7 = vunpack.c.l.s4 %v7187_v44 }
 0x7dd   : > { %v6284_v41 = vadd.f32 %v6283_v22, %v6265_v2  ;;  %v6266_v14 = vmul.f32 %v10154_v18, %v6186_v25  ;;  %v6189_v55 = vadd.f32 %v6157_v31, %v5781_v37  ;;  %v10695_v37 = vlaneseq }
 0x7de   : > { %v5783_v29 = vpop.f32.mrf.mxu0  ;;  %v6341_v42 = vunpack.c.0.s8 %v6340_v7 }
 0x7df   : > { %v6297_v9 = vadd.f32 %v6296_v28, %v6266_v14  ;;  %v6269_v43 = vmul.f32 %v10167_v11, %v6189_v55  ;;  %v6190_v8 = vadd.f32 %v6158_v56, %v5783_v29  ;;  %v10693_v28 = vld [vmem:[#allocation44_spill] sm:$0xff]  ;;  %vm6364_vm7 = vcmp.lt.s32.totalorder %v10695_v37, 512 }
 0x7e0   : > { %v5787_v4 = vpop.f32.mrf.mxu0  ;;  %v6344_v34 = vsub.s32 %v6341_v42, %v10691_v33  ;;  %v10694_v2 = vcombine.low %v10692_v17, %v10693_v28 }
 0x7e1   : > { %v6285_v62 = vadd.f32 %v6284_v41, %v6269_v43  ;;  %v6270_v18 = vmul.f32 %v10167_v11, %v6190_v8  ;;  %v6193_v30 = vadd.f32 %v6161_v38, %v5787_v4 }
 0x7e2   : > { %v5789_v39 = vpop.f32.mrf.mxu0  ;;  %v6352_v25 = vrot.slane %v10694_v2, %v6344_v34 }
 0x7e3   : > { %v6298_v19 = vadd.f32 %v6297_v9, %v6270_v18  ;;  %v6273_v5 = vmul.f32 %v10689_v60, %v6193_v30  ;;  %v6194_v13 = vadd.f32 %v6162_v48, %v5789_v39 }
 0x7e4   : > { %v5793_v21 = vpop.f32.mrf.mxu0 }
 0x7e5   : > { %v6286_v3 = vadd.f32 %v6285_v62, %v6273_v5  ;;  %v6274_v53 = vmul.f32 %v10689_v60, %v6194_v13  ;;  %v6197_v16 = vadd.f32 %v6165_v63, %v5793_v21 }
 0x7e6   : > { %v5795_v10 = vpop.f32.mrf.mxu0 }
 0x7e7   : > { %v6299_v11 = vadd.f32 %v6298_v19, %v6274_v53  ;;  %v6277_v0 = vmul.f32 %v10690_v45, %v6197_v16  ;;  %v6198_v52 = vadd.f32 %v6166_v54, %v5795_v10 }
 0x7e9   : > { %v6287_v35 = vadd.f32 %v6286_v3, %v6277_v0  ;;  %v6278_v51 = vmul.f32 %v10690_v45, %v6198_v52 }
 0x7eb   : > { %v6288_v61 = vrot.slane %v6287_v35, 4  ;;  %v6300_v36 = vadd.f32 %v6299_v11, %v6278_v51 }
 0x7ed   : > { %v6289_v49 = vadd.f32 %v6288_v61, %v6287_v35  ;;  %v6301_v46 = vrot.slane %v6300_v36, 4 }
 0x7ef   : > { %v6290_v12 = vrot.slane %v6289_v49, 2  ;;  %v6302_v15 = vadd.f32 %v6301_v46, %v6300_v36 }
 0x7f1   : > { %v6291_v47 = vadd.f32 %v6290_v12, %v6289_v49  ;;  %v6303_v50 = vrot.slane %v6302_v15, 2 }
 0x7f3   : > { %v6292_v32 = vrot.slane %v6291_v47, 1  ;;  %v6304_v40 = vadd.f32 %v6303_v50, %v6302_v15 }
 0x7f5   : > { %v6305_v22 = vrot.slane %v6304_v40, 1  ;;  %v6293_v57 = vadd.f32 %v6292_v32, %v6291_v47 }
 0x7f7   : > { %v6306_v23 = vadd.f32 %v6305_v22, %v6304_v40 }
 0x7f9   : > { %v6337_v6 = vcombine.low %v6293_v57, %v6306_v23 }
 0x7fb   : > { %v6345_v20 = vrot.slane %v6337_v6, %v6344_v34 }
 0x7fd   : > { %v6353_v58 = vcombine.low %v6345_v20, %v6352_v25 }
 0x7ff   : > { %v6360_v31 = vrot.slane %v6353_v58, %v6344_v34 }
 0x801   : > { %6366 = vst.msk [vmem:[%s614_s16] sm:$0xf] %vm6364_vm7, %v6360_v31 }
 0x802   : > { %7105 = shalt.err (!%p7102_p3)
}
 0x803   : > { %s7106_s20 = scalar_lea.hbm %s6382_s29, 64  ;;  %s7110_s16 = scalar_lea.hbm %s10358_s15, 128 }
 0x804   : > { %p7107_p5 = scmp.ne.s32.totalorder %s6382_s29, %s7106_s20  ;;  %p7111_p9 = scmp.lt.s32.totalorder %s6382_s29, %s10358_s15 }
 0x805   : > { %p7112_p12 = scmp.lt.s32.totalorder %s7110_s16, %s7106_s20 }
 0x806   : > { %p7108_p6 = pnand %p7107_p5, %p7309_p4 }
 0x807   : > { %p7113_p10 = por %p7112_p12, %p7111_p9 }
 0x808   : > { %p7109_p7 = pneg %p7108_p6 }
 0x80a   : > { %p7114_p11 = pnand %p7113_p10, %p7109_p7 }
 0x80c   : > { %7117 = shalt.err (!%p7114_p11)
}
 0x80d   : > { %6992 = dma.vmem_to_hbm [thread:$0]  (%p7309_p4), %s6385_s25, 64, %s6382_s29, %s6368_s17  }
 0x80e PF: > { %s10696_s22 = sld [smem:[#allocation11_spill]]  ;;  %p7004_p13 = scmp.ge.s32.totalorder %s7172_s23, 2 }
 0x810   : > { %p6999_p0 = pnand %p7004_p13, %p7316_p8 }
 0x812   : > { %p7000_p1 = pneg %p6999_p0 }
 0x814   : > { %s6396_s0 = sand.u32 1, %s10696_s22  }
 0x815   : > { %s6397_s21 = scalar_lea.sflag [#allocation6], %s6396_s0 }
 0x816   : > { %7147 = dma.done.wait (%p7000_p1), %s6397_s21, 64  }
 0x817   : > { %7149 = vsyncadd (%p7000_p1), %s6397_s21, 4294967232  ;;  %s29_s23 = sadd.s32 1, %s7172_s23   ;;  %s10697_s27 = sld [smem:[#allocation12_spill]] }
 0x818   : > { %p26_p2 = scmp.ge.s32.totalorder %s29_s23, 4   ;;  %s10698_s20 = sld [smem:[#allocation15_spill]] }
 0x819   : > { %s10699_s21 = sld [smem:[#allocation13_spill]]  ;;  %s10701_s18 = smov %s7156_s19 }
 0x81a   : > { %s10700_s22 = sld [smem:[#allocation14_spill]]  ;;  %28 = sbr.rel (!%p26_p2) target bundleno = 8 (0x8), region = 154 }
 0x81d   : > { %s10702_s19 = smov %s10697_s27 }
 0x81f   :  { %6402 = vsyncpa [#allocation6], 1 }
 0x820   :  { %6404 = vsyncpa [#allocation6 + $0x1], 1 }
 0x821   :  { %6405 = vsyncpa [#allocation7], 1 }
 0x822   :  { %6407 = vsyncpa [#allocation7 + $0x1], 1 }

</bundles_post_ra>
